<compile_context>
chip_gen: v6e
topology: v6e:2x2x1
jax: 0.10.0
libtpu: 0.0.40
codegen_flags: <defaults>
</compile_context>

<pallas_src>
import numpy as np

import jax
import jax.numpy as jnp
from jax.experimental import pallas as pl
from jax.experimental.pallas import tpu as pltpu

BN_EPS = 1e-5


# --------------------------------------------------------------------------
# Structural constant builders (run outside the kernel, once per batch size).
# --------------------------------------------------------------------------
def _row_select(B, H, OH, kh, stride, pad):
    """R[i]: (B*OH, B*H) 0/1 matrix selecting input row stride*ho+i-pad per image."""
    R = np.zeros((kh, B * OH, B * H), np.float32)
    for i in range(kh):
        for b in range(B):
            for ho in range(OH):
                hin = stride * ho + i - pad
                if 0 <= hin < H:
                    R[i, b * OH + ho, b * H + hin] = 1.0
    return R


def _col_mix(w, W, OW, stride, pad):
    """Fold kernel-row-i weights + W-stride/padding into M[i]: (W*Cin, OW*Cout)."""
    Cout, Cin, kh, kw = w.shape
    S = np.zeros((kw, W, OW), np.float32)
    for j in range(kw):
        for wo in range(OW):
            win = stride * wo + j - pad
            if 0 <= win < W:
                S[j, win, wo] = 1.0
    # M[i, win*Cin+ci, wo*Cout+co] = sum_j S[j,win,wo] * w[co,ci,i,j]
    M = jnp.einsum("jvo,dcij->ivcod", jnp.asarray(S), w)
    return M.reshape(kh, W * Cin, OW * Cout)


def _bn_mats(OW, C, N):
    """G: (OW*C, C) per-channel grouping (1/N folded in); T: (C, OW*C) tiling."""
    G = np.zeros((OW * C, C), np.float32)
    T = np.zeros((C, OW * C), np.float32)
    for wo in range(OW):
        for c in range(C):
            G[wo * C + c, c] = 1.0 / N
            T[c, wo * C + c] = 1.0
    return G, T


# --------------------------------------------------------------------------
# The fused kernel: conv1+BN+ReLU -> conv2+BN+ReLU -> conv3+BN+ReLU -> linear.
# --------------------------------------------------------------------------
def _fused_cnn_kernel(
    x_ref,
    r1_ref, m1_ref, g1_ref, t1_ref, gb1_ref,
    r2_ref, m2_ref, g2_ref, t2_ref, gb2_ref,
    r3_ref, m3_ref, g3_ref, t3_ref, gb3_ref,
    rl_ref, ml_ref, bl_ref,
    o_ref,
):
    f32 = jnp.float32
    bf16 = jnp.bfloat16

    def conv(a, r_ref, m_ref, kh):
        # Row selection on the MXU: kh tiny bf16 matmuls (R is 0/1 -> exact
        # copies of the bf16-rounded activations, accumulated in f32).
        a16 = a.astype(bf16)
        taps = [jnp.dot(r_ref[i], a16, preferred_element_type=f32)
                for i in range(kh)]
        # Tap fusion: concatenate the kh selected-row blocks along lanes and do
        # ONE large-K conv matmul against the pre-stacked weight matrix.
        slab = jnp.concatenate(taps, axis=-1).astype(bf16)   # (B*OH, kh*W*Cin)
        return jnp.dot(slab, m_ref[...], preferred_element_type=f32)

    def bn_relu(acc, g_ref, t_ref, gb_ref):
        # Train-mode BatchNorm, single pass (sum & sum-of-squares), fused into
        # 2 helper matmuls.  The 1/N is pre-folded into G so mom = [E[x],E[x^2]].
        # Stats matmul kept in f32 (variance cancellation); everything is M=2.
        stats = jnp.concatenate(
            [jnp.sum(acc, axis=0, keepdims=True),
             jnp.sum(acc * acc, axis=0, keepdims=True)], axis=0)        # (2, OW*C)
        mom = jnp.dot(stats, g_ref[...], preferred_element_type=f32)    # (2, C)
        mean, ex2 = mom[0:1], mom[1:2]
        scale = gb_ref[0:1] * jax.lax.rsqrt(ex2 - mean * mean + BN_EPS)  # (1, C)
        shift = gb_ref[1:2] - mean * scale                               # (1, C)
        # Tile per-channel scale/shift back to the (width, channel) lane layout
        # with one 0/1 matmul (T is exact in bf16).
        sst = jnp.dot(jnp.concatenate([scale, shift], axis=0).astype(jnp.bfloat16),
                      t_ref[...], preferred_element_type=f32)            # (2, OW*C)
        return jnp.maximum(acc * sst[0:1] + sst[1:2], 0.0)

    a1 = bn_relu(conv(x_ref[...], r1_ref, m1_ref, 2), g1_ref, t1_ref, gb1_ref)
    a2 = bn_relu(conv(a1, r2_ref, m2_ref, 3), g2_ref, t2_ref, gb2_ref)
    a3 = bn_relu(conv(a2, r3_ref, m3_ref, 3), g3_ref, t3_ref, gb3_ref)
    # Flatten + Linear(1568, 10) == a 7x7 "conv" with Cout=10 in this layout.
    o_ref[...] = conv(a3, rl_ref, ml_ref, 7) + bl_ref[...]


# --------------------------------------------------------------------------
# Wrappers.
# --------------------------------------------------------------------------
def prepare_params(params):
    """One-time re-layout of torch-convention weights into kernel operands."""
    def stack_bf16(m):                      # (kh, K, N) -> (kh*K, N) bf16
        kh, K, N = m.shape
        return m.reshape(kh * K, N).astype(jnp.bfloat16)

    return dict(
        M1=stack_bf16(_col_mix(params["w1"], 28, 27, 1, 0)),                      # (56, 216)
        M2=stack_bf16(_col_mix(params["w2"], 27, 14, 2, 1)),                      # (648, 448)
        M3=stack_bf16(_col_mix(params["w3"], 14, 7, 2, 1)),                       # (1344, 224)
        ML=stack_bf16(_col_mix(params["wl"].reshape(10, 32, 7, 7), 7, 1, 1, 0)),  # (1568, 10)
        gb1=jnp.stack([params["g1"], params["be1"]]).astype(jnp.float32),         # (2, 8)
        gb2=jnp.stack([params["g2"], params["be2"]]).astype(jnp.float32),         # (2, 32)
        gb3=jnp.stack([params["g3"], params["be3"]]).astype(jnp.float32),         # (2, 32)
        bl=params["bl"].reshape(1, -1).astype(jnp.float32),                       # (1, 10)
        # Conv biases b1/b2/b3 intentionally unused: a per-channel bias in front
        # of TRAIN-mode BatchNorm is exactly cancelled by the batch-mean
        # subtraction.  (Would need re-adding for eval-mode running stats.)
    )


def simple_cnn_forward_prepared(prep, imgs):
    B, C, H, W = imgs.shape
    assert (C, H, W) == (1, 28, 28), "SimpleCNN expects 1x28x28 inputs"
    # (B, 1, 28, 28) -> rows = (batch, height), lanes = width (Cin == 1).
    x = imgs.reshape(B * 28, 28).astype(jnp.float32)

    # Structural 0/1 matrices (batch-size dependent, weight independent):
    # numpy at trace time -> compile-time constants.  R/T are exact in bf16.
    R1 = jnp.asarray(_row_select(B, 28, 27, 2, 1, 0), jnp.bfloat16)
    R2 = jnp.asarray(_row_select(B, 27, 14, 3, 2, 1), jnp.bfloat16)
    R3 = jnp.asarray(_row_select(B, 14, 7, 3, 2, 1), jnp.bfloat16)
    RL = jnp.asarray(_row_select(B, 7, 1, 7, 1, 0), jnp.bfloat16)
    G1, T1 = _bn_mats(27, 8, B * 27 * 27)
    G2, T2 = _bn_mats(14, 32, B * 14 * 14)
    G3, T3 = _bn_mats(7, 32, B * 7 * 7)
    G1, G2, G3 = (jnp.asarray(g, jnp.float32) for g in (G1, G2, G3))
    T1, T2, T3 = (jnp.asarray(t, jnp.bfloat16) for t in (T1, T2, T3))

    operands = (
        x,
        R1, prep["M1"], G1, T1, prep["gb1"],
        R2, prep["M2"], G2, T2, prep["gb2"],
        R3, prep["M3"], G3, T3, prep["gb3"],
        RL, prep["ML"], prep["bl"],
    )
    vmem = pl.BlockSpec(memory_space=pltpu.MemorySpace.VMEM)
    return pl.pallas_call(
        _fused_cnn_kernel,
        out_shape=jax.ShapeDtypeStruct((B, 10), jnp.float32),
        in_specs=[vmem] * len(operands),
        out_specs=vmem,
        compiler_params=pltpu.CompilerParams(vmem_limit_bytes=32 * 1024 * 1024),
    )(*operands)


def simple_cnn_forward(params, imgs):
    return simple_cnn_forward_prepared(prepare_params(params), imgs)


# --------------------------------------------------------------------------
# Init + pure-JAX reference (correctness sanity check).
# --------------------------------------------------------------------------
def init_params(key):
    """Deterministic synthetic init (torch-like uniform(-1/sqrt(fan_in), ...))."""
    ks = jax.random.split(key, 5)

    def conv_init(k, cout, cin, kh, kw):
        fan_in = cin * kh * kw
        bound = 1.0 / float(fan_in) ** 0.5
        kw_, kb = jax.random.split(k)
        w = jax.random.uniform(kw_, (cout, cin, kh, kw), jnp.float32, -bound, bound)
        b = jax.random.uniform(kb, (cout,), jnp.float32, -bound, bound)
        return w, b

    w1, b1 = conv_init(ks[0], 8, 1, 2, 2)
    w2, b2 = conv_init(ks[1], 32, 8, 3, 3)
    w3, b3 = conv_init(ks[2], 32, 32, 3, 3)
    bound = 1.0 / float(1568) ** 0.5
    wl = jax.random.uniform(ks[3], (10, 1568), jnp.float32, -bound, bound)
    bl = jax.random.uniform(ks[4], (10,), jnp.float32, -bound, bound)
    return dict(
        w1=w1, b1=b1, g1=jnp.ones(8, jnp.float32), be1=jnp.zeros(8, jnp.float32),
        w2=w2, b2=b2, g2=jnp.ones(32, jnp.float32), be2=jnp.zeros(32, jnp.float32),
        w3=w3, b3=b3, g3=jnp.ones(32, jnp.float32), be3=jnp.zeros(32, jnp.float32),
        wl=wl, bl=bl,
    )


def _reference_forward(params, imgs):
    hp = jax.lax.Precision.HIGHEST

    def conv(x, w, b, stride, pad):
        y = jax.lax.conv_general_dilated(
            x, w, window_strides=(stride, stride),
            padding=[(pad, pad), (pad, pad)],
            dimension_numbers=("NCHW", "OIHW", "NCHW"), precision=hp)
        return y + b.reshape(1, -1, 1, 1)

    def bn_relu(x, gamma, beta):
        mean = x.mean(axis=(0, 2, 3), keepdims=True)
        var = ((x - mean) ** 2).mean(axis=(0, 2, 3), keepdims=True)
        y = (x - mean) * jax.lax.rsqrt(var + BN_EPS)
        y = y * gamma.reshape(1, -1, 1, 1) + beta.reshape(1, -1, 1, 1)
        return jnp.maximum(y, 0.0)

    x = bn_relu(conv(imgs, params["w1"], params["b1"], 1, 0), params["g1"], params["be1"])
    x = bn_relu(conv(x, params["w2"], params["b2"], 2, 1), params["g2"], params["be2"])
    x = bn_relu(conv(x, params["w3"], params["b3"], 2, 1), params["g3"], params["be3"])
    x = x.reshape(x.shape[0], -1)          # NCHW flatten order (matches torch)
    return jnp.dot(x, params["wl"].T, precision=hp) + params["bl"]


if __name__ == "__main__":
    key = jax.random.PRNGKey(0)
    kx, kp = jax.random.split(key)
    imgs = jax.random.normal(kx, (2, 1, 28, 28), jnp.float32)
    params = init_params(kp)

    prep = prepare_params(params)                      # one-time weight re-layout
    fwd = jax.jit(simple_cnn_forward_prepared)         # graph = single pallas_call
    out = fwd(prep, imgs)
    jax.block_until_ready(out)
    assert out.shape == (2, 10) and out.dtype == jnp.float32

    ref = _reference_forward(params, imgs)
    np.testing.assert_allclose(np.asarray(out), np.asarray(ref), rtol=5e-2, atol=5e-2)
    print("KERNEL_OK")
</pallas_src>

<mosaic_0001>
module attributes {stable_mosaic.version = 11 : i64} {
  func.func @_fused_cnn_kernel(%arg0: memref<56x28xf32, #tpu.memory_space<vmem>>, %arg1: memref<2x54x56xbf16, #tpu.memory_space<vmem>>, %arg2: memref<56x216xbf16, #tpu.memory_space<vmem>>, %arg3: memref<216x8xf32, #tpu.memory_space<vmem>>, %arg4: memref<8x216xbf16, #tpu.memory_space<vmem>>, %arg5: memref<2x8xf32, #tpu.memory_space<vmem>>, %arg6: memref<3x28x54xbf16, #tpu.memory_space<vmem>>, %arg7: memref<648x448xbf16, #tpu.memory_space<vmem>>, %arg8: memref<448x32xf32, #tpu.memory_space<vmem>>, %arg9: memref<32x448xbf16, #tpu.memory_space<vmem>>, %arg10: memref<2x32xf32, #tpu.memory_space<vmem>>, %arg11: memref<3x14x28xbf16, #tpu.memory_space<vmem>>, %arg12: memref<1344x224xbf16, #tpu.memory_space<vmem>>, %arg13: memref<224x32xf32, #tpu.memory_space<vmem>>, %arg14: memref<32x224xbf16, #tpu.memory_space<vmem>>, %arg15: memref<2x32xf32, #tpu.memory_space<vmem>>, %arg16: memref<7x2x14xbf16, #tpu.memory_space<vmem>>, %arg17: memref<1568x10xbf16, #tpu.memory_space<vmem>>, %arg18: memref<1x10xf32, #tpu.memory_space<vmem>>, %arg19: memref<2x10xf32, #tpu.memory_space<vmem>>) attributes {dimension_semantics = [], scalar_prefetch = 0 : i64, scratch_operands = 0 : i64, tpu.core_type = #tpu.core_type<tc>} {
    %c0 = arith.constant 0 : index
    %c0_0 = arith.constant 0 : index
    %0 = vector.load %arg0[%c0, %c0_0] : memref<56x28xf32, #tpu.memory_space<vmem>>, vector<56x28xf32>
    %1 = arith.truncf %0 : vector<56x28xf32> to vector<56x28xbf16>
    %c0_1 = arith.constant 0 : index
    %c0_2 = arith.constant 0 : index
    %c0_3 = arith.constant 0 : index
    %2 = vector.load %arg1[%c0_1, %c0_2, %c0_3] : memref<2x54x56xbf16, #tpu.memory_space<vmem>>, vector<1x54x56xbf16>
    %3 = vector.shape_cast %2 : vector<1x54x56xbf16> to vector<54x56xbf16>
    %cst = arith.constant dense<0.000000e+00> : vector<54x28xf32>
    %4 = tpu.matmul %3, %1, %cst {dimension_numbers = #tpu.dot_dimension_numbers<[1], [0], [0], [1], [0, 0, 1, 1], [], []>} : vector<54x56xbf16>, vector<56x28xbf16>, vector<54x28xf32> -> vector<54x28xf32>
    %c1 = arith.constant 1 : index
    %c0_4 = arith.constant 0 : index
    %c0_5 = arith.constant 0 : index
    %5 = vector.load %arg1[%c1, %c0_4, %c0_5] : memref<2x54x56xbf16, #tpu.memory_space<vmem>>, vector<1x54x56xbf16>
    %6 = vector.shape_cast %5 : vector<1x54x56xbf16> to vector<54x56xbf16>
    %cst_6 = arith.constant dense<0.000000e+00> : vector<54x28xf32>
    %7 = tpu.matmul %6, %1, %cst_6 {dimension_numbers = #tpu.dot_dimension_numbers<[1], [0], [0], [1], [0, 0, 1, 1], [], []>} : vector<54x56xbf16>, vector<56x28xbf16>, vector<54x28xf32> -> vector<54x28xf32>
    %8 = tpu.concatenate %4, %7 in 1 : vector<54x28xf32>, vector<54x28xf32> -> vector<54x56xf32>
    %9 = arith.truncf %8 : vector<54x56xf32> to vector<54x56xbf16>
    %c0_7 = arith.constant 0 : index
    %c0_8 = arith.constant 0 : index
    %10 = vector.load %arg2[%c0_7, %c0_8] : memref<56x216xbf16, #tpu.memory_space<vmem>>, vector<56x216xbf16>
    %cst_9 = arith.constant dense<0.000000e+00> : vector<54x216xf32>
    %11 = tpu.matmul %9, %10, %cst_9 {dimension_numbers = #tpu.dot_dimension_numbers<[1], [0], [0], [1], [0, 0, 1, 1], [], []>} : vector<54x56xbf16>, vector<56x216xbf16>, vector<54x216xf32> -> vector<54x216xf32>
    %cst_10 = arith.constant dense<0.000000e+00> : vector<216xf32>
    %12 = vector.multi_reduction <add>, %11, %cst_10 [0] : vector<54x216xf32> to vector<216xf32>
    %13 = vector.shape_cast %12 : vector<216xf32> to vector<1x216xf32>
    %14 = arith.mulf %11, %11 : vector<54x216xf32>
    %cst_11 = arith.constant dense<0.000000e+00> : vector<216xf32>
    %15 = vector.multi_reduction <add>, %14, %cst_11 [0] : vector<54x216xf32> to vector<216xf32>
    %16 = vector.shape_cast %15 : vector<216xf32> to vector<1x216xf32>
    %17 = tpu.concatenate %13, %16 in 0 : vector<1x216xf32>, vector<1x216xf32> -> vector<2x216xf32>
    %c0_12 = arith.constant 0 : index
    %c0_13 = arith.constant 0 : index
    %18 = vector.load %arg3[%c0_12, %c0_13] : memref<216x8xf32, #tpu.memory_space<vmem>>, vector<216x8xf32>
    %cst_14 = arith.constant dense<0.000000e+00> : vector<2x8xf32>
    %19 = tpu.matmul %17, %18, %cst_14 {dimension_numbers = #tpu.dot_dimension_numbers<[1], [0], [0], [1], [0, 0, 1, 1], [], []>} : vector<2x216xf32>, vector<216x8xf32>, vector<2x8xf32> -> vector<2x8xf32>
    %20 = vector.extract_strided_slice %19 {offsets = [0, 0], sizes = [1, 8], strides = [1, 1]} : vector<2x8xf32> to vector<1x8xf32>
    %21 = vector.extract_strided_slice %19 {offsets = [1, 0], sizes = [1, 8], strides = [1, 1]} : vector<2x8xf32> to vector<1x8xf32>
    %c0_15 = arith.constant 0 : index
    %c0_16 = arith.constant 0 : index
    %22 = vector.load %arg5[%c0_15, %c0_16] : memref<2x8xf32, #tpu.memory_space<vmem>>, vector<1x8xf32>
    %23 = arith.mulf %20, %20 : vector<1x8xf32>
    %24 = arith.subf %21, %23 : vector<1x8xf32>
    %cst_17 = arith.constant 9.99999974E-6 : f32
    %25 = vector.broadcast %cst_17 : f32 to vector<1x8xf32>
    %26 = arith.addf %24, %25 : vector<1x8xf32>
    %27 = math.rsqrt %26 : vector<1x8xf32>
    %28 = arith.mulf %22, %27 : vector<1x8xf32>
    %c1_18 = arith.constant 1 : index
    %c0_19 = arith.constant 0 : index
    %29 = vector.load %arg5[%c1_18, %c0_19] : memref<2x8xf32, #tpu.memory_space<vmem>>, vector<1x8xf32>
    %30 = arith.mulf %20, %28 : vector<1x8xf32>
    %31 = arith.subf %29, %30 : vector<1x8xf32>
    %32 = tpu.concatenate %28, %31 in 0 : vector<1x8xf32>, vector<1x8xf32> -> vector<2x8xf32>
    %33 = arith.truncf %32 : vector<2x8xf32> to vector<2x8xbf16>
    %c0_20 = arith.constant 0 : index
    %c0_21 = arith.constant 0 : index
    %34 = vector.load %arg4[%c0_20, %c0_21] : memref<8x216xbf16, #tpu.memory_space<vmem>>, vector<8x216xbf16>
    %cst_22 = arith.constant dense<0.000000e+00> : vector<2x216xf32>
    %35 = tpu.matmul %33, %34, %cst_22 {dimension_numbers = #tpu.dot_dimension_numbers<[1], [0], [0], [1], [0, 0, 1, 1], [], []>} : vector<2x8xbf16>, vector<8x216xbf16>, vector<2x216xf32> -> vector<2x216xf32>
    %36 = vector.extract_strided_slice %35 {offsets = [0, 0], sizes = [1, 216], strides = [1, 1]} : vector<2x216xf32> to vector<1x216xf32>
    %37 = vector.broadcast %36 : vector<1x216xf32> to vector<54x216xf32>
    %38 = arith.mulf %11, %37 : vector<54x216xf32>
    %39 = vector.extract_strided_slice %35 {offsets = [1, 0], sizes = [1, 216], strides = [1, 1]} : vector<2x216xf32> to vector<1x216xf32>
    %40 = vector.broadcast %39 : vector<1x216xf32> to vector<54x216xf32>
    %41 = arith.addf %38, %40 : vector<54x216xf32>
    %cst_23 = arith.constant 0.000000e+00 : f32
    %42 = vector.broadcast %cst_23 : f32 to vector<54x216xf32>
    %43 = arith.maximumf %41, %42 : vector<54x216xf32>
    %44 = arith.truncf %43 : vector<54x216xf32> to vector<54x216xbf16>
    %c0_24 = arith.constant 0 : index
    %c0_25 = arith.constant 0 : index
    %c0_26 = arith.constant 0 : index
    %45 = vector.load %arg6[%c0_24, %c0_25, %c0_26] : memref<3x28x54xbf16, #tpu.memory_space<vmem>>, vector<1x28x54xbf16>
    %46 = vector.shape_cast %45 : vector<1x28x54xbf16> to vector<28x54xbf16>
    %cst_27 = arith.constant dense<0.000000e+00> : vector<28x216xf32>
    %47 = tpu.matmul %46, %44, %cst_27 {dimension_numbers = #tpu.dot_dimension_numbers<[1], [0], [0], [1], [0, 0, 1, 1], [], []>} : vector<28x54xbf16>, vector<54x216xbf16>, vector<28x216xf32> -> vector<28x216xf32>
    %c1_28 = arith.constant 1 : index
    %c0_29 = arith.constant 0 : index
    %c0_30 = arith.constant 0 : index
    %48 = vector.load %arg6[%c1_28, %c0_29, %c0_30] : memref<3x28x54xbf16, #tpu.memory_space<vmem>>, vector<1x28x54xbf16>
    %49 = vector.shape_cast %48 : vector<1x28x54xbf16> to vector<28x54xbf16>
    %cst_31 = arith.constant dense<0.000000e+00> : vector<28x216xf32>
    %50 = tpu.matmul %49, %44, %cst_31 {dimension_numbers = #tpu.dot_dimension_numbers<[1], [0], [0], [1], [0, 0, 1, 1], [], []>} : vector<28x54xbf16>, vector<54x216xbf16>, vector<28x216xf32> -> vector<28x216xf32>
    %c2 = arith.constant 2 : index
    %c0_32 = arith.constant 0 : index
    %c0_33 = arith.constant 0 : index
    %51 = vector.load %arg6[%c2, %c0_32, %c0_33] : memref<3x28x54xbf16, #tpu.memory_space<vmem>>, vector<1x28x54xbf16>
    %52 = vector.shape_cast %51 : vector<1x28x54xbf16> to vector<28x54xbf16>
    %cst_34 = arith.constant dense<0.000000e+00> : vector<28x216xf32>
    %53 = tpu.matmul %52, %44, %cst_34 {dimension_numbers = #tpu.dot_dimension_numbers<[1], [0], [0], [1], [0, 0, 1, 1], [], []>} : vector<28x54xbf16>, vector<54x216xbf16>, vector<28x216xf32> -> vector<28x216xf32>
    %54 = tpu.concatenate %47, %50, %53 in 1 : vector<28x216xf32>, vector<28x216xf32>, vector<28x216xf32> -> vector<28x648xf32>
    %55 = arith.truncf %54 : vector<28x648xf32> to vector<28x648xbf16>
    %c0_35 = arith.constant 0 : index
    %c0_36 = arith.constant 0 : index
    %56 = vector.load %arg7[%c0_35, %c0_36] : memref<648x448xbf16, #tpu.memory_space<vmem>>, vector<648x448xbf16>
    %cst_37 = arith.constant dense<0.000000e+00> : vector<28x448xf32>
    %57 = tpu.matmul %55, %56, %cst_37 {dimension_numbers = #tpu.dot_dimension_numbers<[1], [0], [0], [1], [0, 0, 1, 1], [], []>} : vector<28x648xbf16>, vector<648x448xbf16>, vector<28x448xf32> -> vector<28x448xf32>
    %cst_38 = arith.constant dense<0.000000e+00> : vector<448xf32>
    %58 = vector.multi_reduction <add>, %57, %cst_38 [0] : vector<28x448xf32> to vector<448xf32>
    %59 = vector.shape_cast %58 : vector<448xf32> to vector<1x448xf32>
    %60 = arith.mulf %57, %57 : vector<28x448xf32>
    %cst_39 = arith.constant dense<0.000000e+00> : vector<448xf32>
    %61 = vector.multi_reduction <add>, %60, %cst_39 [0] : vector<28x448xf32> to vector<448xf32>
    %62 = vector.shape_cast %61 : vector<448xf32> to vector<1x448xf32>
    %63 = tpu.concatenate %59, %62 in 0 : vector<1x448xf32>, vector<1x448xf32> -> vector<2x448xf32>
    %c0_40 = arith.constant 0 : index
    %c0_41 = arith.constant 0 : index
    %64 = vector.load %arg8[%c0_40, %c0_41] : memref<448x32xf32, #tpu.memory_space<vmem>>, vector<448x32xf32>
    %cst_42 = arith.constant dense<0.000000e+00> : vector<2x32xf32>
    %65 = tpu.matmul %63, %64, %cst_42 {dimension_numbers = #tpu.dot_dimension_numbers<[1], [0], [0], [1], [0, 0, 1, 1], [], []>} : vector<2x448xf32>, vector<448x32xf32>, vector<2x32xf32> -> vector<2x32xf32>
    %66 = vector.extract_strided_slice %65 {offsets = [0, 0], sizes = [1, 32], strides = [1, 1]} : vector<2x32xf32> to vector<1x32xf32>
    %67 = vector.extract_strided_slice %65 {offsets = [1, 0], sizes = [1, 32], strides = [1, 1]} : vector<2x32xf32> to vector<1x32xf32>
    %c0_43 = arith.constant 0 : index
    %c0_44 = arith.constant 0 : index
    %68 = vector.load %arg10[%c0_43, %c0_44] : memref<2x32xf32, #tpu.memory_space<vmem>>, vector<1x32xf32>
    %69 = arith.mulf %66, %66 : vector<1x32xf32>
    %70 = arith.subf %67, %69 : vector<1x32xf32>
    %cst_45 = arith.constant 9.99999974E-6 : f32
    %71 = vector.broadcast %cst_45 : f32 to vector<1x32xf32>
    %72 = arith.addf %70, %71 : vector<1x32xf32>
    %73 = math.rsqrt %72 : vector<1x32xf32>
    %74 = arith.mulf %68, %73 : vector<1x32xf32>
    %c1_46 = arith.constant 1 : index
    %c0_47 = arith.constant 0 : index
    %75 = vector.load %arg10[%c1_46, %c0_47] : memref<2x32xf32, #tpu.memory_space<vmem>>, vector<1x32xf32>
    %76 = arith.mulf %66, %74 : vector<1x32xf32>
    %77 = arith.subf %75, %76 : vector<1x32xf32>
    %78 = tpu.concatenate %74, %77 in 0 : vector<1x32xf32>, vector<1x32xf32> -> vector<2x32xf32>
    %79 = arith.truncf %78 : vector<2x32xf32> to vector<2x32xbf16>
    %c0_48 = arith.constant 0 : index
    %c0_49 = arith.constant 0 : index
    %80 = vector.load %arg9[%c0_48, %c0_49] : memref<32x448xbf16, #tpu.memory_space<vmem>>, vector<32x448xbf16>
    %cst_50 = arith.constant dense<0.000000e+00> : vector<2x448xf32>
    %81 = tpu.matmul %79, %80, %cst_50 {dimension_numbers = #tpu.dot_dimension_numbers<[1], [0], [0], [1], [0, 0, 1, 1], [], []>} : vector<2x32xbf16>, vector<32x448xbf16>, vector<2x448xf32> -> vector<2x448xf32>
    %82 = vector.extract_strided_slice %81 {offsets = [0, 0], sizes = [1, 448], strides = [1, 1]} : vector<2x448xf32> to vector<1x448xf32>
    %83 = vector.broadcast %82 : vector<1x448xf32> to vector<28x448xf32>
    %84 = arith.mulf %57, %83 : vector<28x448xf32>
    %85 = vector.extract_strided_slice %81 {offsets = [1, 0], sizes = [1, 448], strides = [1, 1]} : vector<2x448xf32> to vector<1x448xf32>
    %86 = vector.broadcast %85 : vector<1x448xf32> to vector<28x448xf32>
    %87 = arith.addf %84, %86 : vector<28x448xf32>
    %cst_51 = arith.constant 0.000000e+00 : f32
    %88 = vector.broadcast %cst_51 : f32 to vector<28x448xf32>
    %89 = arith.maximumf %87, %88 : vector<28x448xf32>
    %90 = arith.truncf %89 : vector<28x448xf32> to vector<28x448xbf16>
    %c0_52 = arith.constant 0 : index
    %c0_53 = arith.constant 0 : index
    %c0_54 = arith.constant 0 : index
    %91 = vector.load %arg11[%c0_52, %c0_53, %c0_54] : memref<3x14x28xbf16, #tpu.memory_space<vmem>>, vector<1x14x28xbf16>
    %92 = vector.shape_cast %91 : vector<1x14x28xbf16> to vector<14x28xbf16>
    %cst_55 = arith.constant dense<0.000000e+00> : vector<14x448xf32>
    %93 = tpu.matmul %92, %90, %cst_55 {dimension_numbers = #tpu.dot_dimension_numbers<[1], [0], [0], [1], [0, 0, 1, 1], [], []>} : vector<14x28xbf16>, vector<28x448xbf16>, vector<14x448xf32> -> vector<14x448xf32>
    %c1_56 = arith.constant 1 : index
    %c0_57 = arith.constant 0 : index
    %c0_58 = arith.constant 0 : index
    %94 = vector.load %arg11[%c1_56, %c0_57, %c0_58] : memref<3x14x28xbf16, #tpu.memory_space<vmem>>, vector<1x14x28xbf16>
    %95 = vector.shape_cast %94 : vector<1x14x28xbf16> to vector<14x28xbf16>
    %cst_59 = arith.constant dense<0.000000e+00> : vector<14x448xf32>
    %96 = tpu.matmul %95, %90, %cst_59 {dimension_numbers = #tpu.dot_dimension_numbers<[1], [0], [0], [1], [0, 0, 1, 1], [], []>} : vector<14x28xbf16>, vector<28x448xbf16>, vector<14x448xf32> -> vector<14x448xf32>
    %c2_60 = arith.constant 2 : index
    %c0_61 = arith.constant 0 : index
    %c0_62 = arith.constant 0 : index
    %97 = vector.load %arg11[%c2_60, %c0_61, %c0_62] : memref<3x14x28xbf16, #tpu.memory_space<vmem>>, vector<1x14x28xbf16>
    %98 = vector.shape_cast %97 : vector<1x14x28xbf16> to vector<14x28xbf16>
    %cst_63 = arith.constant dense<0.000000e+00> : vector<14x448xf32>
    %99 = tpu.matmul %98, %90, %cst_63 {dimension_numbers = #tpu.dot_dimension_numbers<[1], [0], [0], [1], [0, 0, 1, 1], [], []>} : vector<14x28xbf16>, vector<28x448xbf16>, vector<14x448xf32> -> vector<14x448xf32>
    %100 = tpu.concatenate %93, %96, %99 in 1 : vector<14x448xf32>, vector<14x448xf32>, vector<14x448xf32> -> vector<14x1344xf32>
    %101 = arith.truncf %100 : vector<14x1344xf32> to vector<14x1344xbf16>
    %c0_64 = arith.constant 0 : index
    %c0_65 = arith.constant 0 : index
    %102 = vector.load %arg12[%c0_64, %c0_65] : memref<1344x224xbf16, #tpu.memory_space<vmem>>, vector<1344x224xbf16>
    %cst_66 = arith.constant dense<0.000000e+00> : vector<14x224xf32>
    %103 = tpu.matmul %101, %102, %cst_66 {dimension_numbers = #tpu.dot_dimension_numbers<[1], [0], [0], [1], [0, 0, 1, 1], [], []>} : vector<14x1344xbf16>, vector<1344x224xbf16>, vector<14x224xf32> -> vector<14x224xf32>
    %cst_67 = arith.constant dense<0.000000e+00> : vector<224xf32>
    %104 = vector.multi_reduction <add>, %103, %cst_67 [0] : vector<14x224xf32> to vector<224xf32>
    %105 = vector.shape_cast %104 : vector<224xf32> to vector<1x224xf32>
    %106 = arith.mulf %103, %103 : vector<14x224xf32>
    %cst_68 = arith.constant dense<0.000000e+00> : vector<224xf32>
    %107 = vector.multi_reduction <add>, %106, %cst_68 [0] : vector<14x224xf32> to vector<224xf32>
    %108 = vector.shape_cast %107 : vector<224xf32> to vector<1x224xf32>
    %109 = tpu.concatenate %105, %108 in 0 : vector<1x224xf32>, vector<1x224xf32> -> vector<2x224xf32>
    %c0_69 = arith.constant 0 : index
    %c0_70 = arith.constant 0 : index
    %110 = vector.load %arg13[%c0_69, %c0_70] : memref<224x32xf32, #tpu.memory_space<vmem>>, vector<224x32xf32>
    %cst_71 = arith.constant dense<0.000000e+00> : vector<2x32xf32>
    %111 = tpu.matmul %109, %110, %cst_71 {dimension_numbers = #tpu.dot_dimension_numbers<[1], [0], [0], [1], [0, 0, 1, 1], [], []>} : vector<2x224xf32>, vector<224x32xf32>, vector<2x32xf32> -> vector<2x32xf32>
    %112 = vector.extract_strided_slice %111 {offsets = [0, 0], sizes = [1, 32], strides = [1, 1]} : vector<2x32xf32> to vector<1x32xf32>
    %113 = vector.extract_strided_slice %111 {offsets = [1, 0], sizes = [1, 32], strides = [1, 1]} : vector<2x32xf32> to vector<1x32xf32>
    %c0_72 = arith.constant 0 : index
    %c0_73 = arith.constant 0 : index
    %114 = vector.load %arg15[%c0_72, %c0_73] : memref<2x32xf32, #tpu.memory_space<vmem>>, vector<1x32xf32>
    %115 = arith.mulf %112, %112 : vector<1x32xf32>
    %116 = arith.subf %113, %115 : vector<1x32xf32>
    %cst_74 = arith.constant 9.99999974E-6 : f32
    %117 = vector.broadcast %cst_74 : f32 to vector<1x32xf32>
    %118 = arith.addf %116, %117 : vector<1x32xf32>
    %119 = math.rsqrt %118 : vector<1x32xf32>
    %120 = arith.mulf %114, %119 : vector<1x32xf32>
    %c1_75 = arith.constant 1 : index
    %c0_76 = arith.constant 0 : index
    %121 = vector.load %arg15[%c1_75, %c0_76] : memref<2x32xf32, #tpu.memory_space<vmem>>, vector<1x32xf32>
    %122 = arith.mulf %112, %120 : vector<1x32xf32>
    %123 = arith.subf %121, %122 : vector<1x32xf32>
    %124 = tpu.concatenate %120, %123 in 0 : vector<1x32xf32>, vector<1x32xf32> -> vector<2x32xf32>
    %125 = arith.truncf %124 : vector<2x32xf32> to vector<2x32xbf16>
    %c0_77 = arith.constant 0 : index
    %c0_78 = arith.constant 0 : index
    %126 = vector.load %arg14[%c0_77, %c0_78] : memref<32x224xbf16, #tpu.memory_space<vmem>>, vector<32x224xbf16>
    %cst_79 = arith.constant dense<0.000000e+00> : vector<2x224xf32>
    %127 = tpu.matmul %125, %126, %cst_79 {dimension_numbers = #tpu.dot_dimension_numbers<[1], [0], [0], [1], [0, 0, 1, 1], [], []>} : vector<2x32xbf16>, vector<32x224xbf16>, vector<2x224xf32> -> vector<2x224xf32>
    %128 = vector.extract_strided_slice %127 {offsets = [0, 0], sizes = [1, 224], strides = [1, 1]} : vector<2x224xf32> to vector<1x224xf32>
    %129 = vector.broadcast %128 : vector<1x224xf32> to vector<14x224xf32>
    %130 = arith.mulf %103, %129 : vector<14x224xf32>
    %131 = vector.extract_strided_slice %127 {offsets = [1, 0], sizes = [1, 224], strides = [1, 1]} : vector<2x224xf32> to vector<1x224xf32>
    %132 = vector.broadcast %131 : vector<1x224xf32> to vector<14x224xf32>
    %133 = arith.addf %130, %132 : vector<14x224xf32>
    %cst_80 = arith.constant 0.000000e+00 : f32
    %134 = vector.broadcast %cst_80 : f32 to vector<14x224xf32>
    %135 = arith.maximumf %133, %134 : vector<14x224xf32>
    %136 = arith.truncf %135 : vector<14x224xf32> to vector<14x224xbf16>
    %c0_81 = arith.constant 0 : index
    %c0_82 = arith.constant 0 : index
    %c0_83 = arith.constant 0 : index
    %137 = vector.load %arg16[%c0_81, %c0_82, %c0_83] : memref<7x2x14xbf16, #tpu.memory_space<vmem>>, vector<1x2x14xbf16>
    %138 = vector.shape_cast %137 : vector<1x2x14xbf16> to vector<2x14xbf16>
    %cst_84 = arith.constant dense<0.000000e+00> : vector<2x224xf32>
    %139 = tpu.matmul %138, %136, %cst_84 {dimension_numbers = #tpu.dot_dimension_numbers<[1], [0], [0], [1], [0, 0, 1, 1], [], []>} : vector<2x14xbf16>, vector<14x224xbf16>, vector<2x224xf32> -> vector<2x224xf32>
    %c1_85 = arith.constant 1 : index
    %c0_86 = arith.constant 0 : index
    %c0_87 = arith.constant 0 : index
    %140 = vector.load %arg16[%c1_85, %c0_86, %c0_87] : memref<7x2x14xbf16, #tpu.memory_space<vmem>>, vector<1x2x14xbf16>
    %141 = vector.shape_cast %140 : vector<1x2x14xbf16> to vector<2x14xbf16>
    %cst_88 = arith.constant dense<0.000000e+00> : vector<2x224xf32>
    %142 = tpu.matmul %141, %136, %cst_88 {dimension_numbers = #tpu.dot_dimension_numbers<[1], [0], [0], [1], [0, 0, 1, 1], [], []>} : vector<2x14xbf16>, vector<14x224xbf16>, vector<2x224xf32> -> vector<2x224xf32>
    %c2_89 = arith.constant 2 : index
    %c0_90 = arith.constant 0 : index
    %c0_91 = arith.constant 0 : index
    %143 = vector.load %arg16[%c2_89, %c0_90, %c0_91] : memref<7x2x14xbf16, #tpu.memory_space<vmem>>, vector<1x2x14xbf16>
    %144 = vector.shape_cast %143 : vector<1x2x14xbf16> to vector<2x14xbf16>
    %cst_92 = arith.constant dense<0.000000e+00> : vector<2x224xf32>
    %145 = tpu.matmul %144, %136, %cst_92 {dimension_numbers = #tpu.dot_dimension_numbers<[1], [0], [0], [1], [0, 0, 1, 1], [], []>} : vector<2x14xbf16>, vector<14x224xbf16>, vector<2x224xf32> -> vector<2x224xf32>
    %c3 = arith.constant 3 : index
    %c0_93 = arith.constant 0 : index
    %c0_94 = arith.constant 0 : index
    %146 = vector.load %arg16[%c3, %c0_93, %c0_94] : memref<7x2x14xbf16, #tpu.memory_space<vmem>>, vector<1x2x14xbf16>
    %147 = vector.shape_cast %146 : vector<1x2x14xbf16> to vector<2x14xbf16>
    %cst_95 = arith.constant dense<0.000000e+00> : vector<2x224xf32>
    %148 = tpu.matmul %147, %136, %cst_95 {dimension_numbers = #tpu.dot_dimension_numbers<[1], [0], [0], [1], [0, 0, 1, 1], [], []>} : vector<2x14xbf16>, vector<14x224xbf16>, vector<2x224xf32> -> vector<2x224xf32>
    %c4 = arith.constant 4 : index
    %c0_96 = arith.constant 0 : index
    %c0_97 = arith.constant 0 : index
    %149 = vector.load %arg16[%c4, %c0_96, %c0_97] : memref<7x2x14xbf16, #tpu.memory_space<vmem>>, vector<1x2x14xbf16>
    %150 = vector.shape_cast %149 : vector<1x2x14xbf16> to vector<2x14xbf16>
    %cst_98 = arith.constant dense<0.000000e+00> : vector<2x224xf32>
    %151 = tpu.matmul %150, %136, %cst_98 {dimension_numbers = #tpu.dot_dimension_numbers<[1], [0], [0], [1], [0, 0, 1, 1], [], []>} : vector<2x14xbf16>, vector<14x224xbf16>, vector<2x224xf32> -> vector<2x224xf32>
    %c5 = arith.constant 5 : index
    %c0_99 = arith.constant 0 : index
    %c0_100 = arith.constant 0 : index
    %152 = vector.load %arg16[%c5, %c0_99, %c0_100] : memref<7x2x14xbf16, #tpu.memory_space<vmem>>, vector<1x2x14xbf16>
    %153 = vector.shape_cast %152 : vector<1x2x14xbf16> to vector<2x14xbf16>
    %cst_101 = arith.constant dense<0.000000e+00> : vector<2x224xf32>
    %154 = tpu.matmul %153, %136, %cst_101 {dimension_numbers = #tpu.dot_dimension_numbers<[1], [0], [0], [1], [0, 0, 1, 1], [], []>} : vector<2x14xbf16>, vector<14x224xbf16>, vector<2x224xf32> -> vector<2x224xf32>
    %c6 = arith.constant 6 : index
    %c0_102 = arith.constant 0 : index
    %c0_103 = arith.constant 0 : index
    %155 = vector.load %arg16[%c6, %c0_102, %c0_103] : memref<7x2x14xbf16, #tpu.memory_space<vmem>>, vector<1x2x14xbf16>
    %156 = vector.shape_cast %155 : vector<1x2x14xbf16> to vector<2x14xbf16>
    %cst_104 = arith.constant dense<0.000000e+00> : vector<2x224xf32>
    %157 = tpu.matmul %156, %136, %cst_104 {dimension_numbers = #tpu.dot_dimension_numbers<[1], [0], [0], [1], [0, 0, 1, 1], [], []>} : vector<2x14xbf16>, vector<14x224xbf16>, vector<2x224xf32> -> vector<2x224xf32>
    %158 = tpu.concatenate %139, %142, %145, %148, %151, %154, %157 in 1 : vector<2x224xf32>, vector<2x224xf32>, vector<2x224xf32>, vector<2x224xf32>, vector<2x224xf32>, vector<2x224xf32>, vector<2x224xf32> -> vector<2x1568xf32>
    %159 = arith.truncf %158 : vector<2x1568xf32> to vector<2x1568xbf16>
    %c0_105 = arith.constant 0 : index
    %c0_106 = arith.constant 0 : index
    %160 = vector.load %arg17[%c0_105, %c0_106] : memref<1568x10xbf16, #tpu.memory_space<vmem>>, vector<1568x10xbf16>
    %cst_107 = arith.constant dense<0.000000e+00> : vector<2x10xf32>
    %161 = tpu.matmul %159, %160, %cst_107 {dimension_numbers = #tpu.dot_dimension_numbers<[1], [0], [0], [1], [0, 0, 1, 1], [], []>} : vector<2x1568xbf16>, vector<1568x10xbf16>, vector<2x10xf32> -> vector<2x10xf32>
    %c0_108 = arith.constant 0 : index
    %c0_109 = arith.constant 0 : index
    %162 = vector.load %arg18[%c0_108, %c0_109] : memref<1x10xf32, #tpu.memory_space<vmem>>, vector<1x10xf32>
    %163 = vector.broadcast %162 : vector<1x10xf32> to vector<2x10xf32>
    %164 = arith.addf %161, %163 : vector<2x10xf32>
    %c0_110 = arith.constant 0 : index
    %c0_111 = arith.constant 0 : index
    %165 = vector.load %arg19[%c0_110, %c0_111] : memref<2x10xf32, #tpu.memory_space<vmem>>, vector<2x10xf32>
    tpu.vector_store %arg19[%c0_110, %c0_111], %164 {strides = array<i32>} : memref<2x10xf32, #tpu.memory_space<vmem>>, vector<2x10xf32>,
    return
  }
}

</mosaic_0001>

<bundles_post_ra>
// kernel: simple_cnn_forward_prepared.1
= control target key start
LH: loop header
LB: loop body
LE: loop exit
PB: predicated region body
PF: predicated region fallthrough
CT: control target
= control target key end

     0   :  { %s10439_s0 = inlined_call_operand.vmem [shape: f32[56,28], index: 0, kind: input, shape index: {}]   ;;  %s10440_s1 = inlined_call_operand.vmem [shape: bf16[2,54,56], index: 1, kind: input, shape index: {}]   ;;  %s10441_s2 = inlined_call_operand.vmem [shape: bf16[56,216], index: 2, kind: input, shape index: {}]   ;;  %s10442_s3 = inlined_call_operand.vmem [shape: f32[216,8], index: 3, kind: input, shape index: {}]   ;;  %s10443_s4 = inlined_call_operand.vmem [shape: bf16[8,216], index: 4, kind: input, shape index: {}]   ;;  %s10444_s5 = inlined_call_operand.vmem [shape: f32[2,8], index: 5, kind: input, shape index: {}]   ;;  %s10445_s6 = inlined_call_operand.vmem [shape: bf16[3,28,54], index: 6, kind: input, shape index: {}]   ;;  %s10446_s7 = inlined_call_operand.vmem [shape: bf16[648,448], index: 7, kind: input, shape index: {}]   ;;  %s10447_s8 = inlined_call_operand.vmem [shape: f32[448,32], index: 8, kind: input, shape index: {}]   ;;  %s10448_s9 = inlined_call_operand.vmem [shape: bf16[32,448], index: 9, kind: input, shape index: {}]   ;;  %s10449_s10 = inlined_call_operand.vmem [shape: f32[2,32], index: 10, kind: input, shape index: {}]   ;;  %s10450_s11 = inlined_call_operand.vmem [shape: bf16[3,14,28], index: 11, kind: input, shape index: {}]   ;;  %s10451_s12 = inlined_call_operand.vmem [shape: bf16[1344,224], index: 12, kind: input, shape index: {}]   ;;  %s10452_s13 = inlined_call_operand.vmem [shape: f32[224,32], index: 13, kind: input, shape index: {}]   ;;  %s10453_s14 = inlined_call_operand.vmem [shape: bf16[32,224], index: 14, kind: input, shape index: {}]   ;;  %s10454_s15 = inlined_call_operand.vmem [shape: f32[2,32], index: 15, kind: input, shape index: {}]   ;;  %s10455_s16 = inlined_call_operand.vmem [shape: bf16[7,2,14], index: 16, kind: input, shape index: {}]   ;;  %s10456_s17 = inlined_call_operand.vmem [shape: bf16[1568,10], index: 17, kind: input, shape index: {}]   ;;  %s10457_s18 = inlined_call_operand.vmem [shape: f32[1,10], index: 18, kind: input, shape index: {}]   ;;  %s10458_s19 = inlined_call_operand.hbm [shape: f32[2,10], index: 19, kind: output, shape index: {}]  }
   0x1   :  { %10463 = sst [smem:[#allocation5_spill]] %s10439_s0 }
   0x2   :  { %10464 = sst [smem:[#allocation6_spill]] %s10440_s1 }
   0x3   :  { %10465 = sst [smem:[#allocation7_spill]] %s10441_s2 }
   0x4   :  { %10466 = sst [smem:[#allocation8_spill]] %s10442_s3 }
   0x5   :  { %s10467_s20 = sld [smem:[#allocation5_spill]]  ;;  %vm113_vm0 = vcmask 1043456   ;;  %vm100_vm1 = vcmask 457728  }
   0x6   :  { %s10468_s28 = sld [smem:[#allocation6_spill]] }
   0x7   :  { %s10469_s2 = sld [smem:[#allocation7_spill]] }
   0xb   :  { %v70_v0 = vld [vmem:[%s10467_s20 + $0x30] sm:$0xff]  ;;  %v68_v1 = vld [vmem:[%s10467_s20 + $0x20] sm:$0xff]  ;;  %v69_v2 = vld [vmem:[%s10467_s20 + $0x28] sm:$0xff] }
   0xc   :  { %v74_v3 = vpack.c.bf16 %v70_v0, %v70_v0  ;;  %v73_v4 = vpack.c.bf16 %v69_v2, %v68_v1  ;;  %v66_v5 = vld [vmem:[%s10467_s20 + $0x10] sm:$0xff]  ;;  %v67_v6 = vld [vmem:[%s10467_s20 + $0x18] sm:$0xff]  ;;  %v64_v10 = vld [vmem:[%s10467_s20] sm:$0xff] }
   0xd   :  { %v7219_v8 = vld [vmem:[%s10468_s28 + $0x1c] sm:$0xff]   ;;  %v72_v9 = vpack.c.bf16 %v67_v6, %v66_v5  ;;  %v65_v11 = vld [vmem:[%s10467_s20 + $0x8] sm:$0xff]  ;;  %v7225_v17 = vld [vmem:[%s10468_s28 + $0x10] sm:$0xff]  }
   0xe   :  { %7123 = vmatprep.subr.msk.bf16.mxu1 %vm113_vm0, %v74_v3  ;;  %v115_v7 = vsel %vm113_vm0, %v74_v3, 0  ;;  %7122 = vmatprep.subr.msk.bf16.mxu0 %vm113_vm0, %v74_v3  ;;  %v7223_v12 = vld [vmem:[%s10468_s28] sm:$0xff]   ;;  %v71_v13 = vpack.c.bf16 %v65_v11, %v64_v10  ;;  %v7224_v15 = vld [vmem:[%s10468_s28 + $0x8] sm:$0xff]   ;;  %v7222_v18 = vld [vmem:[%s10468_s28 + $0x34] ss:$0 sps:$4 sm:$0x77]  }
   0xf   :  { %7099 = vmatpush3.bf16.msra.mxu1 %v115_v7  ;;  %7083 = vmatpush3.bf16.msra.mxu0 %v115_v7  ;;  %v7220_v14 = vld [vmem:[%s10468_s28 + $0x24] sm:$0xff]   ;;  %v7221_v16 = vld [vmem:[%s10468_s28 + $0x2c] sm:$0xff]   ;;  %v7226_v19 = vld [vmem:[%s10468_s28 + $0x18] ss:$0 sps:$4 sm:$0x77]  }
  0x10   :  { %7100 = vmatprep.subr.bf16.mxu1 %v73_v4  ;;  %7106 = vmatprep.mubr.msk.bf16.mxu1 %vm100_vm1, %v7219_v8  ;;  %v329_v20 = vld [vmem:[%s10469_s2 + $0x30] sm:$0xff]  ;;  %v7231_v23 = vld [vmem:[%s10469_s2 + $0x24] ss:$8 sps:$4 sm:$0xff]   ;;  %v7229_v24 = vld [vmem:[%s10469_s2 + $0x20] ss:$8 sps:$4 sm:$0xff]  }
  0x11   :  { %7084 = vmatprep.subr.bf16.mxu0 %v73_v4  ;;  %7090 = vmatprep.mubr.msk.bf16.mxu0 %vm100_vm1, %v7223_v12  ;;  %v6367_v21 = vcombine.high %v329_v20, %v329_v20  ;;  %v6366_v22 = vcombine.low %v329_v20, %v329_v20  ;;  %v7234_v26 = vld [vmem:[%s10469_s2 + $0x14] ss:$8 sps:$4 sm:$0xff]   ;;  %v7232_v27 = vld [vmem:[%s10469_s2 + $0x10] ss:$8 sps:$4 sm:$0xff]  }
  0x13   :  { %7101 = vmatpush3.bf16.msra.mxu1 %v73_v4  ;;  %7085 = vmatpush3.bf16.msra.mxu0 %v73_v4  ;;  %v378_v25 = vsel %vm113_vm0, %v6366_v22, 0 }
  0x14   :  { %7102 = vmatprep.subr.bf16.mxu1 %v72_v9  ;;  %7086 = vmatprep.subr.bf16.mxu0 %v72_v9 }
  0x17   :  { %7103 = vmatpush3.bf16.msra.mxu1 %v72_v9  ;;  %7087 = vmatpush3.bf16.msra.mxu0 %v72_v9 }
  0x18   :  { %7104 = vmatprep.subr.bf16.mxu1 %v71_v13  ;;  %7088 = vmatprep.subr.bf16.mxu0 %v71_v13 }
  0x1b   :  { %7105 = vmatpush3.bf16.msra.mxu1 %v71_v13  ;;  %7089 = vmatpush3.bf16.msra.mxu0 %v71_v13 }
  0x1c   :  { %6368 = vmatprep.subr.msk.bf16.mxu0 %vm113_vm0, %v6367_v21 }
  0x1e   :  { %7107 = vmatmul.mubr.msk.bf16.vlgmr.msra.gmra.mxu1 %vm100_vm1, %v7220_v14  ;;  %7091 = vmatmul.mubr.msk.bf16.vlgmr.msra.gmra.mxu0 %vm100_vm1, %v7224_v15 }
  0x1f   :  { %7110 = vmatprep.mubr.msk.bf16.mxu1 %vm100_vm1, %v7221_v16  ;;  %7094 = vmatprep.mubr.msk.bf16.mxu0 %vm100_vm1, %v7225_v17 }
  0x20   :  { %392 = vmatpush1.bf16.msra.mxu0 %v378_v25 }
  0x21   :  { %393 = vmatprep.subr.bf16.mxu0 %v7231_v23 }
  0x24   :  { %394 = vmatpush1.bf16.msra.mxu0 %v7229_v24 }
  0x25   :  { %395 = vmatprep.subr.bf16.mxu0 %v7234_v26 }
  0x26   :  { %7111 = vmatmul.mubr.msk.bf16.gmra.mxu1 %vm100_vm1, %v7222_v18  ;;  %7095 = vmatmul.mubr.msk.bf16.gmra.mxu0 %vm100_vm1, %v7226_v19 }
  0x28   :  { %396 = vmatpush1.bf16.msra.mxu0 %v7232_v27 }
  0x29   :  { %24 = vsyncpa [#allocation3], 0  ;;  %v7237_v28 = vld [vmem:[%s10469_s2 + $0x4] ss:$8 sps:$4 sm:$0xff]   ;;  %v7235_v29 = vld [vmem:[%s10469_s2] ss:$8 sps:$4 sm:$0xff]  }
  0x2a   :  { %397 = vmatprep.subr.bf16.mxu0 %v7237_v28  ;;  %v7889_v32 = vmov 0   ;;  %s7890_s1 = smov 28   ;;  %s10470_s23 = sld [smem:[#allocation8_spill]]  ;;  %v7891_v50 = vmov 0.0   ;;  %vm311_vm2 = vcmask 228352   ;;  %vm468_vm3 = vcmask 719872  }
  0x2b   :  { %415 = vmatprep.mubr.bf16.mxu0 %v7889_v32  ;;  %568 = vmatprep.subr.mxu1 %v7891_v50  ;;  %vm459_vm4 = vcmask 1045504   ;;  %vm480_vm5 = vcmask 717824   ;;  %vm535_vm6 = vcmask 1040384   ;;  %vm664_vm7 = vcmask 64512   ;;  %s7892_s29 = smov 88   ;;  %s7893_s24 = smov 48  }
  0x2c   :  { %398 = vmatpush1.bf16.msra.mxu0 %v7235_v29  ;;  %vm802_vm8 = vcmask 1042432   ;;  %vm795_vm9 = vcmask 441344   ;;  %vm1074_vm10 = vcmask 392192   ;;  %vm2449_vm11 = vcmask 523264   ;;  %s7896_s22 = smov 32  }
  0x2d   :  { %vm2455_vm12 = vcmask 519168   ;;  %vm2794_vm13 = vcmask 261120   ;;  %vm4598_vm14 = vcmask 785408   ;;  %vm4600_vm15 = vcmask 783360  }
  0x30   :  { %v553_v49 = vld [vmem:[%s10470_s23 + $0x78] sm:$0xff]  ;;  %v552_v51 = vld [vmem:[%s10470_s23 + $0x70] sm:$0xff]  ;;  %v551_v52 = vld [vmem:[%s10470_s23 + $0x68] sm:$0xff] }
  0x31   :  { %569 = vmatpush1.msra.mxu1 %v553_v49  ;;  %v550_v53 = vld [vmem:[%s10470_s23 + $0x60] sm:$0xff]  ;;  %v549_v12 = vld [vmem:[%s10470_s23 + $0x58] sm:$0xff]  ;;  %v548_v13 = vld [vmem:[%s10470_s23 + $0x50] sm:$0xff] }
  0x32   :  { %570 = vmatprep.subr.mxu1 %v7891_v50  ;;  %v547_v14 = vld [vmem:[%s10470_s23 + $0x48] sm:$0xff]  ;;  %v546_v15 = vld [vmem:[%s10470_s23 + $0x40] sm:$0xff]  ;;  %v545_v16 = vld [vmem:[%s10470_s23 + $0x38] sm:$0xff] }
  0x33   :  { %571 = vmatpush1.msra.mxu1 %v552_v51  ;;  %v544_v17 = vld [vmem:[%s10470_s23 + $0x30] sm:$0xff]  ;;  %v543_v18 = vld [vmem:[%s10470_s23 + $0x28] sm:$0xff]  ;;  %v542_v19 = vld [vmem:[%s10470_s23 + $0x20] sm:$0xff] }
  0x34   :  { %572 = vmatprep.subr.mxu1 %v7891_v50  ;;  %v541_v20 = vld [vmem:[%s10470_s23 + $0x18] sm:$0xff]  ;;  %v540_v21 = vld [vmem:[%s10470_s23 + $0x10] sm:$0xff]  ;;  %v539_v22 = vld [vmem:[%s10470_s23 + $0x8] sm:$0xff] }
  0x35   :  { %573 = vmatpush1.msra.mxu1 %v551_v52  ;;  %v538_v23 = vld [vmem:[%s10470_s23] sm:$0xff]  ;;  %v564_v24 = vld [vmem:[%s10470_s23 + $0xd0] sm:$0xff]  ;;  %v563_v25 = vld [vmem:[%s10470_s23 + $0xc8] sm:$0xff] }
  0x36   :  { %574 = vmatprep.subr.mxu1 %v7891_v50  ;;  %v562_v26 = vld [vmem:[%s10470_s23 + $0xc0] sm:$0xff]  ;;  %v561_v27 = vld [vmem:[%s10470_s23 + $0xb8] sm:$0xff]  ;;  %v560_v28 = vld [vmem:[%s10470_s23 + $0xb0] sm:$0xff] }
  0x37   :  { %575 = vmatpush1.msra.mxu1 %v550_v53  ;;  %v559_v29 = vld [vmem:[%s10470_s23 + $0xa8] sm:$0xff] }
  0x38   :  { %576 = vmatprep.subr.mxu1 %v7891_v50 }
  0x39   :  { %577 = vmatpush1.msra.mxu1 %v549_v12 }
  0x3a   :  { %578 = vmatprep.subr.mxu1 %v7891_v50 }
  0x3b   :  { %579 = vmatpush1.msra.mxu1 %v548_v13 }
  0x3c   :  { %580 = vmatprep.subr.mxu1 %v7891_v50 }
  0x3d   :  { %581 = vmatpush1.msra.mxu1 %v547_v14 }
  0x3e   :  { %582 = vmatprep.subr.mxu1 %v7891_v50 }
  0x3f   :  { %583 = vmatpush1.msra.mxu1 %v546_v15 }
  0x40   :  { %584 = vmatprep.subr.mxu1 %v7891_v50 }
  0x41   :  { %585 = vmatpush1.msra.mxu1 %v545_v16 }
  0x42   :  { %586 = vmatprep.subr.mxu1 %v7891_v50 }
  0x43   :  { %587 = vmatpush1.msra.mxu1 %v544_v17 }
  0x44   :  { %588 = vmatprep.subr.mxu1 %v7891_v50 }
  0x45   :  { %589 = vmatpush1.msra.mxu1 %v543_v18 }
  0x46   :  { %590 = vmatprep.subr.mxu1 %v7891_v50 }
  0x47   :  { %591 = vmatpush1.msra.mxu1 %v542_v19 }
  0x48   :  { %592 = vmatprep.subr.mxu1 %v7891_v50 }
  0x49   :  { %593 = vmatpush1.msra.mxu1 %v541_v20 }
  0x4a   :  { %594 = vmatprep.subr.mxu1 %v7891_v50 }
  0x4b   :  { %595 = vmatpush1.msra.mxu1 %v540_v21 }
  0x4c   :  { %596 = vmatprep.subr.mxu1 %v7891_v50 }
  0x4d   :  { %597 = vmatpush1.msra.mxu1 %v539_v22 }
  0x4e   :  { %598 = vmatprep.subr.mxu1 %v7891_v50 }
  0x4f   :  { %599 = vmatpush1.msra.mxu1 %v538_v23 }
  0x50   :  { %610 = vmatprep.subr.mxu1 %v7891_v50 }
  0x51   :  { %611 = vmatpush2.msra.mxu1 %v564_v24 }
  0x52   :  { %612 = vmatprep.subr.mxu1 %v7891_v50 }
  0x53   :  { %613 = vmatpush2.msra.mxu1 %v563_v25 }
  0x54   :  { %614 = vmatprep.subr.mxu1 %v7891_v50 }
  0x55   :  { %615 = vmatpush2.msra.mxu1 %v562_v26 }
  0x56   :  { %616 = vmatprep.subr.mxu1 %v7891_v50 }
  0x57   :  { %617 = vmatpush2.msra.mxu1 %v561_v27 }
  0x58   :  { %618 = vmatprep.subr.mxu1 %v7891_v50 }
  0x59   :  { %619 = vmatpush2.msra.mxu1 %v560_v28 }
  0x5a   :  { %620 = vmatprep.subr.mxu1 %v7891_v50 }
  0x5b   :  { %621 = vmatpush2.msra.mxu1 %v559_v29 }
  0x5c   :  { %622 = vmatprep.subr.mxu1 %v7891_v50 }
  0xde   :  { %v7108_v30 = vpop.f32.mrf.mxu1  ;;  %v7092_v31 = vpop.f32.mrf.mxu0 }
  0xe0   :  { %v253_v33 = vpop.f32.mrf.mxu1  ;;  %v151_v34 = vpop.f32.mrf.mxu0 }
  0xe2   :  { %v7109_v35 = vpop.f32.mrf.mxu1  ;;  %v7093_v36 = vpop.f32.mrf.mxu0 }
  0xe3   :  { %v7139_v44 = vpack.i.bf16 %v7109_v35, %v7108_v30  ;;  %v558_v30 = vld [vmem:[%s10470_s23 + $0xa0] sm:$0xff] }
  0xe4   :  { %v256_v37 = vpop.f32.mrf.mxu1  ;;  %v154_v38 = vpop.f32.mrf.mxu0  ;;  %623 = vmatpush2.msra.mxu1 %v558_v30  ;;  %v554_v35 = vld [vmem:[%s10470_s23 + $0x80] sm:$0xff] }
  0xe5   :  { %v7134_v39 = vpack.i.bf16 %v256_v37, %v253_v33  ;;  %624 = vmatprep.subr.mxu1 %v7891_v50  ;;  %v556_v33 = vld [vmem:[%s10470_s23 + $0x90] sm:$0xff] }
  0xe6   :  { %v7112_v40 = vpop.f32.mrf.mxu1  ;;  %v7096_v41 = vpop.f32.mrf.mxu0 }
  0xe7   :  { %7135 = vrot.lane.b32.xlu0 %v7134_v39, %s7890_s1 }
  0xe8   :  { %v269_v42 = vpop.f32.mrf.mxu1  ;;  %v167_v43 = vpop.f32.mrf.mxu0 }
  0xea   :  { %v7113_v45 = vpop.f32.mrf.mxu1  ;;  %v7097_v46 = vpop.f32.mrf.mxu0 }
  0xeb   :  { %7140 = vrot.lane.b32.xlu0 %v7139_v44, %s7890_s1 }
  0xec   :  { %v272_v47 = vpop.f32.mrf.mxu1  ;;  %v170_v5 = vpop.f32.mrf.mxu0 }
  0xed   :  { %v7144_v48 = vpack.i.bf16 %v272_v47, %v269_v42 }
  0xef   :  { %7145 = vrot.lane.b32.xlu1 %v7144_v48, %s7890_s1 }
  0xf3   :  { %302 = vrot.lane.b32.xlu1 %v7112_v40, %s7890_s1 }
 0x159   :  { %v7136_v54 = vpop.permute.xlu0 %7135 }
 0x15a   :  { %v7138_v55 = vunpack.i.h.bf16 %v7136_v54  ;;  %v7137_v56 = vunpack.i.l.bf16 %v7136_v54 }
 0x15c   :  { %v312_v57 = vsel %vm311_vm2, %v151_v34, %v7137_v56  ;;  %v313_v58 = vsel %vm311_vm2, %v154_v38, %v7138_v55  ;;  %v555_v34 = vld [vmem:[%s10470_s23 + $0x88] sm:$0xff] }
 0x15d   :  { %v319_v59 = vpack.c.bf16 %v313_v58, %v312_v57  ;;  %v7141_v60 = vpop.permute.xlu0 %7140 }
 0x15e   :  { %v7143_v61 = vunpack.i.h.bf16 %v7141_v60  ;;  %v7142_v62 = vunpack.i.l.bf16 %v7141_v60 }
 0x15f   :  { %6369 = vmatmul.mubr.msk.bf16.vlgmr.msra.gmra.mxu0 %vm100_vm1, %v319_v59 }
 0x160   :  { %425 = vmatprep.mubr.bf16.mxu0 %v7889_v32  ;;  %v314_v63 = vsel %vm311_vm2, %v7092_v31, %v7142_v62  ;;  %v315_v0 = vsel %vm311_vm2, %v7093_v36, %v7143_v61  ;;  %v557_v31 = vld [vmem:[%s10470_s23 + $0x98] sm:$0xff] }
 0x161   :  { %v320_v1 = vpack.c.bf16 %v315_v0, %v314_v63  ;;  %v7146_v2 = vpop.permute.xlu1 %7145  ;;  %625 = vmatpush2.msra.mxu1 %v557_v31 }
 0x162   :  { %v7148_v3 = vunpack.i.h.bf16 %v7146_v2  ;;  %v7147_v4 = vunpack.i.l.bf16 %v7146_v2  ;;  %626 = vmatprep.subr.mxu1 %v7891_v50 }
 0x163   :  { %627 = vmatpush2.msra.mxu1 %v556_v33 }
 0x164   :  { %v316_v6 = vsel %vm311_vm2, %v167_v43, %v7147_v4  ;;  %v317_v7 = vsel %vm311_vm2, %v170_v5, %v7148_v3  ;;  %628 = vmatprep.subr.mxu1 %v7891_v50 }
 0x165   :  { %v321_v8 = vpack.c.bf16 %v317_v7, %v316_v6  ;;  %v303_v9 = vpop.permute.xlu1 %302  ;;  %629 = vmatpush2.msra.mxu1 %v555_v34 }
 0x166   :  { %v318_v10 = vsel %vm311_vm2, %v7096_v41, %v303_v9  ;;  %630 = vmatprep.subr.mxu1 %v7891_v50 }
 0x167   :  { %6370 = vmatmul.mubr.msk.bf16.gmra.mxu0 %vm100_vm1, %v320_v1  ;;  %v322_v11 = vpack.c.bf16 %v318_v10, %v318_v10  ;;  %631 = vmatpush2.msra.mxu1 %v554_v35 }
 0x168   :  { %435 = vmatprep.mubr.bf16.mxu0 %v7889_v32 }
 0x16f   :  { %6371 = vmatmul.mubr.msk.bf16.gmra.mxu0 %vm100_vm1, %v321_v8 }
 0x170   :  { %445 = vmatprep.mubr.bf16.mxu0 %v7889_v32 }
 0x177   :  { %6372 = vmatmul.mubr.msk.bf16.gmra.mxu0 %vm100_vm1, %v322_v11  ;;  %vm4852_vm1 = vcmask 113664  }
 0x178   :  { %706 = vmatprep.mubr.bf16.mxu0 %v7889_v32 }
 0x21f   :  { %v8202_v36 = vpop.f32.mrf.mxu0 }
 0x220   :  { %v489_v48 = vmul.f32 %v8202_v36, %v8202_v36 }
 0x221   :  { %v8204_v37 = vpop.f32.mrf.mxu0 }
 0x222   :  { %v490_v44 = vmul.f32 %v8204_v37, %v8204_v37  ;;  %v469_v52 = vsel %vm468_vm3, %v8204_v37, 0.0 }
 0x223   :  { %v8206_v38 = vpop.f32.mrf.mxu0 }
 0x224   :  { %v491_v45 = vmul.f32 %v8206_v38, %v8206_v38  ;;  %v454_v51 = vadd.f32 %v8206_v38, %v8202_v36  ;;  %v516_v57 = vsel %vm468_vm3, %v490_v44, 0.0 }
 0x225   :  { %v8208_v39 = vpop.f32.mrf.mxu0 }
 0x226   :  { %v492_v42 = vmul.f32 %v8208_v39, %v8208_v39  ;;  %v470_v49 = vsel %vm468_vm3, %v8208_v39, 0.0  ;;  %v503_v56 = vadd.f32 %v491_v45, %v489_v48 }
 0x227   :  { %v8210_v40 = vpop.f32.mrf.mxu0  ;;  %v471_v60 = vadd.f32 %v470_v49, %v469_v52 }
 0x228   :  { %v517_v53 = vsel %vm468_vm3, %v492_v42, 0.0  ;;  %v493_v54 = vmul.f32 %v8210_v40, %v8210_v40  ;;  %v455_v61 = vadd.f32 %v454_v51, %v8210_v40 }
 0x229   :  { %v8212_v41 = vpop.f32.mrf.mxu0  ;;  %v518_v1 = vadd.f32 %v517_v53, %v516_v57 }
 0x22a   :  { %v494_v46 = vmul.f32 %v8212_v41, %v8212_v41  ;;  %v472_v58 = vsel %vm468_vm3, %v8212_v41, 0.0  ;;  %v504_v4 = vadd.f32 %v503_v56, %v493_v54 }
 0x22b   :  { %v8216_v43 = vpop.f32.mrf.mxu0  ;;  %v473_v5 = vadd.f32 %v472_v58, %v471_v60 }
 0x22c   :  { %v519_v62 = vsel %vm468_vm3, %v494_v46, 0.0  ;;  %v495_v63 = vmul.f32 %v8216_v43, %v8216_v43  ;;  %v456_v6 = vadd.f32 %v455_v61, %v8216_v43 }
 0x22d   :  { %v8224_v47 = vpop.f32.mrf.mxu0  ;;  %v520_v9 = vadd.f32 %v519_v62, %v518_v1 }
 0x22e   :  { %v496_v59 = vmul.f32 %v8224_v47, %v8224_v47  ;;  %v474_v2 = vsel %vm468_vm3, %v8224_v47, 0.0  ;;  %v505_v12 = vadd.f32 %v504_v4, %v495_v63 }
 0x22f   :  { %v8237_v55 = vpop.f32.mrf.mxu0  ;;  %v475_v13 = vadd.f32 %v474_v2, %v473_v5 }
 0x230   :  { %v497_v7 = vmul.f32 %v8237_v55, %v8237_v55  ;;  %v521_v10 = vsel %vm468_vm3, %v496_v59, 0.0  ;;  %v457_v14 = vadd.f32 %v456_v6, %v8237_v55 }
 0x231   :  { %v8248_v0 = vpop.f32.mrf.mxu0  ;;  %v522_v20 = vadd.f32 %v521_v10, %v520_v9 }
 0x232   :  { %v498_v3 = vmul.f32 %v8248_v0, %v8248_v0  ;;  %v476_v11 = vsel %vm468_vm3, %v8248_v0, 0.0  ;;  %v506_v21 = vadd.f32 %v505_v12, %v497_v7 }
 0x233   :  { %v8257_v8 = vpop.f32.mrf.mxu0  ;;  %v477_v22 = vadd.f32 %v476_v11, %v475_v13 }
 0x234   :  { %v499_v15 = vmul.f32 %v8257_v8, %v8257_v8  ;;  %v523_v17 = vsel %vm468_vm3, %v498_v3, 0.0  ;;  %v458_v23 = vadd.f32 %v457_v14, %v8257_v8 }
 0x235   :  { %v8265_v16 = vpop.f32.mrf.mxu0  ;;  %v524_v28 = vadd.f32 %v523_v17, %v522_v20 }
 0x236   :  { %v478_v18 = vsel %vm468_vm3, %v8265_v16, 0.0  ;;  %v500_v19 = vmul.f32 %v8265_v16, %v8265_v16  ;;  %v507_v29 = vadd.f32 %v506_v21, %v499_v15 }
 0x237   :  { %v8273_v24 = vpop.f32.mrf.mxu0  ;;  %v479_v30 = vadd.f32 %v478_v18, %v477_v22 }
 0x238   :  { %v525_v25 = vsel %vm468_vm3, %v500_v19, 0.0  ;;  %v460_v26 = vsel %vm459_vm4, %v8273_v24, 0.0  ;;  %v501_v27 = vmul.f32 %v8273_v24, %v8273_v24  ;;  %v658_v19 = vld [vmem:[%s10443_s4] sm:$0xff] }
 0x239   :  { %v461_v31 = vadd.f32 %v460_v26, %v458_v23  ;;  %v8280_v33 = vpop.f32.mrf.mxu0  ;;  %v526_v44 = vadd.f32 %v525_v25, %v524_v28  ;;  %v6375_v20 = vcombine.high %v658_v19, %v658_v19  ;;  %v6374_v21 = vcombine.low %v658_v19, %v658_v19 }
 0x23a   :  { %v508_v34 = vsel %vm459_vm4, %v501_v27, 0.0  ;;  %v481_v35 = vsel %vm480_vm5, %v8280_v33, 0.0  ;;  %v502_v42 = vmul.f32 %v8280_v33, %v8280_v33 }
 0x23b   :  { %v462_v45 = vrot.slane %v461_v31, 4  ;;  %v509_v46 = vadd.f32 %v508_v34, %v507_v29  ;;  %v482_v48 = vadd.f32 %v481_v35, %v479_v30  ;;  %v451_v49 = vpop.f32.mrf.mxu0  ;;  %6376 = vmatprep.subr.msk.bf16.mxu0 %vm113_vm0, %v6375_v20  ;;  %v669_v22 = vsel %vm113_vm0, %v6374_v21, 0 }
 0x23c   :  { %v527_v51 = vsel %vm480_vm5, %v502_v42, 0.0  ;;  %689 = vmatpush1.bf16.msra.mxu0 %v669_v22  ;;  %v650_v42 = vld [vmem:[%s10444_s5 + $0x1] sm:$0x1] }
 0x23d   :  { %v463_v52 = vadd.f32 %v462_v45, %v461_v31  ;;  %v510_v53 = vrot.slane %v509_v46, 4  ;;  %v483_v54 = vrot.slane %v482_v48, 4  ;;  %v528_v56 = vadd.f32 %v527_v51, %v526_v44  ;;  %v452_v57 = vpop.f32.mrf.mxu0  ;;  %v638_v31 = vld [vmem:[%s10444_s5] sm:$0x1] }
 0x23e   :  { %v715_v51 = vlaneseq }
 0x23f   :  { %v464_v58 = vrot.slane %v463_v52, 2  ;;  %v511_v59 = vadd.f32 %v510_v53, %v509_v46  ;;  %v484_v60 = vadd.f32 %v483_v54, %v482_v48  ;;  %v529_v61 = vrot.slane %v528_v56, 4 }
 0x241   :  { %v512_v62 = vrot.slane %v511_v59, 2  ;;  %v485_v63 = vrot.slane %v484_v60, 2  ;;  %v530_v1 = vadd.f32 %v529_v61, %v528_v56  ;;  %v465_v2 = vadd.f32 %v464_v58, %v463_v52 }
 0x242   :  { %v716_v52 = vshrl.u32 %v715_v51, 7 }
 0x243   :  { %v513_v3 = vadd.f32 %v512_v62, %v511_v59  ;;  %v486_v4 = vadd.f32 %v485_v63, %v484_v60  ;;  %v531_v5 = vrot.slane %v530_v1, 2  ;;  %v466_v10 = vrot.slane %v465_v2, 1 }
 0x244   :  { %v8306_v53 = vsub.s32 0, %v716_v52  ;;  %v8308_v54 = vsub.s32 1, %v716_v52  ;;  %v7240_v52 = vld [vmem:[%s10445_s6] sm:$0xff]  }
 0x245   :  { %v487_v6 = vrot.slane %v486_v4, 1  ;;  %v532_v7 = vadd.f32 %v531_v5, %v530_v1  ;;  %v514_v9 = vrot.slane %v513_v3, 1  ;;  %v467_v15 = vadd.f32 %v466_v10, %v465_v2 }
 0x247   :  { %v533_v11 = vrot.slane %v532_v7, 1  ;;  %v515_v12 = vadd.f32 %v514_v9, %v513_v3  ;;  %v488_v13 = vadd.f32 %v487_v6, %v486_v4 }
 0x249   :  { %v534_v14 = vadd.f32 %v533_v11, %v532_v7  ;;  %v536_v18 = vsel %vm535_vm6, %v467_v15, %v515_v12 }
 0x24b   :  { %v537_v17 = vsel %vm535_vm6, %v488_v13, %v534_v14 }
 0x24c   :  { %6373 = vmatprep.mubr.msk.f32.mxu1 %vm468_vm3, %v537_v17 }
 0x24d   :  { %633 = vmatmul.mubr.f32.vlgmr.msra.gmra.mxu1 %v536_v18 }
 0x24e   :  { %915 = vmatprep.mubr.bf16.mxu1 %v7889_v32 }
 0x30d   :  { %v634_v23 = vpop.f32.mrf.mxu1 }
 0x30e   :  { %v639_v25 = vmul.f32 %v634_v23, %v634_v23 }
 0x30f   :  { %v636_v26 = vpop.f32.mrf.mxu1 }
 0x310   :  { %v641_v27 = vrot.slane %v639_v25, 7 }
 0x312   :  { %v643_v28 = vsub.f32 %v634_v23, %v641_v27 }
 0x314   :  { %v644_v29 = vadd.f32 1e-05, %v643_v28 }
 0x316   :  { %7861 = vrsqrt.f32 %v644_v29 }
 0x323   :  { %v7862_v30 = vpop.eup %7861 }
 0x324   :  { %v647_v34 = vrot.slane %v7862_v30, 1 }
 0x326   :  { %v649_v35 = vmul.f32 %v647_v34, %v638_v31 }
 0x328   :  { %v651_v44 = vmul.f32 %v649_v35, %v634_v23 }
 0x32a   :  { %v652_v45 = vsub.f32 %v650_v42, %v651_v44 }
 0x32c   :  { %v654_v46 = vrot.slane %v652_v45, 7 }
 0x32e   :  { %v656_v48 = vsel %vm535_vm6, %v649_v35, %v654_v46 }
 0x32f   :  { %v657_v49 = vpack.c.bf16 %v656_v48, %v656_v48 }
 0x331   :  { %6377 = vmatmul.mubr.msk.bf16.vlgmr.msra.gmra.mxu0 %vm664_vm7, %v657_v49 }
 0x332   :  { %841 = vmatprep.mubr.bf16.mxu0 %v7889_v32 }
 0x3f1   :  { %v708_v56 = vpop.f32.mrf.mxu0 }
 0x3f2   :  { %v718_v57 = vrot.slane %v708_v56, %v8306_v53  ;;  %v740_v59 = vrot.slane %v708_v56, %v8308_v54  ;;  %v7241_v56 = vld [vmem:[%s10445_s6 + $0x10] sm:$0xff]  }
 0x3f3   :  { %v710_v58 = vpop.f32.mrf.mxu0 }
 0x3f4   :  { %v722_v60 = vrot.slane %v710_v58, %v8306_v53  ;;  %v735_v61 = vmul.f32 %v718_v57, %v8273_v24  ;;  %v731_v62 = vmul.f32 %v718_v57, %v8237_v55  ;;  %v744_v63 = vrot.slane %v710_v58, %v8308_v54  ;;  %v7243_v58 = vld [vmem:[%s10445_s6 + $0x18] sm:$0x3f]  }
 0x3f5   :  { %v712_v1 = vpop.f32.mrf.mxu0  ;;  %v733_v2 = vmul.f32 %v718_v57, %v8257_v8  ;;  %v729_v17 = vmul.f32 %v718_v57, %v8216_v43  ;;  %v723_v20 = vmul.f32 %v718_v57, %v8202_v36  ;;  %v725_v36 = vmul.f32 %v718_v57, %v8206_v38 }
 0x3f6   :  { %v736_v3 = vmul.f32 %v722_v60, %v8280_v33  ;;  %v757_v4 = vadd.f32 %v740_v59, %v735_v61  ;;  %v732_v5 = vmul.f32 %v722_v60, %v8248_v0  ;;  %v734_v6 = vmul.f32 %v722_v60, %v8265_v16  ;;  %v7246_v61 = vld [vmem:[%s10446_s7 + $0xe0] ss:$16 sps:$4 sm:$0xff]  }
 0x3f7   :  { %v713_v7 = vpop.f32.mrf.mxu0  ;;  %v753_v9 = vadd.f32 %v740_v59, %v731_v62  ;;  %v755_v10 = vadd.f32 %v740_v59, %v733_v2  ;;  %v728_v11 = vmul.f32 %v722_v60, %v8212_v41  ;;  %v730_v24 = vmul.f32 %v722_v60, %v8224_v47  ;;  %v7248_v62 = vld [vmem:[%s10446_s7 + $0xe4] ss:$16 sps:$4 sm:$0xff]   ;;  %v7249_v1 = vld [vmem:[%s10446_s7 + $0xc0] ss:$16 sps:$4 sm:$0xff]  }
 0x3f8   :  { %v758_v55 = vadd.f32 %v744_v63, %v736_v3  ;;  %v771_v12 = vmax.f32 %v757_v4, 0.0  ;;  %v754_v13 = vadd.f32 %v744_v63, %v732_v5  ;;  %v756_v14 = vadd.f32 %v744_v63, %v734_v6  ;;  %v7261_v2 = vld [vmem:[%s10446_s7 + $0x2e0] ss:$16 sps:$4 sm:$0xff]   ;;  %v7263_v3 = vld [vmem:[%s10446_s7 + $0x2e4] ss:$16 sps:$4 sm:$0xff]  }
 0x3f9   :  { %v750_v15 = vadd.f32 %v744_v63, %v728_v11  ;;  %v752_v8 = vadd.f32 %v744_v63, %v730_v24  ;;  %v727_v33 = vmul.f32 %v718_v57, %v8210_v40  ;;  %v767_v21 = vmax.f32 %v753_v9, 0.0  ;;  %v7242_v57 = vld [vmem:[%s10445_s6 + $0x8] sm:$0x3f]   ;;  %v7254_v4 = vld [vmem:[%s10446_s7 + $0xa4] ss:$16 sps:$4 sm:$0xff]  }
 0x3fa   :  { %v772_v0 = vmax.f32 %v758_v55, 0.0  ;;  %v779_v18 = vpack.c.bf16 %v771_v12, %v771_v12  ;;  %v768_v16 = vmax.f32 %v754_v13, 0.0  ;;  %v770_v19 = vmax.f32 %v756_v14, 0.0  ;;  %v7269_v5 = vld [vmem:[%s10446_s7 + $0x2c4] ss:$16 sps:$4 sm:$0xff]  }
 0x3fb   :  { %v769_v47 = vmax.f32 %v755_v10, 0.0  ;;  %v764_v22 = vmax.f32 %v750_v15, 0.0  ;;  %v749_v23 = vadd.f32 %v740_v59, %v727_v33  ;;  %v751_v25 = vadd.f32 %v740_v59, %v729_v17  ;;  %v7267_v6 = vld [vmem:[%s10446_s7 + $0x2c0] ss:$16 sps:$4 sm:$0xff]   ;;  %v7275_v9 = vld [vmem:[%s10446_s7 + $0x2a4] ss:$16 sps:$4 sm:$0xff]  }
 0x3fc   :  { %v780_v41 = vpack.c.bf16 %v772_v0, %v772_v0  ;;  %v724_v26 = vmul.f32 %v722_v60, %v8204_v37  ;;  %v726_v27 = vmul.f32 %v722_v60, %v8208_v39  ;;  %v804_v40 = vsel %vm802_vm8, %v779_v18, 0  ;;  %v7245_v60 = vld [vmem:[%s10445_s6 + $0x28] sm:$0x3f]   ;;  %v7252_v7 = vld [vmem:[%s10446_s7 + $0xa0] ss:$16 sps:$4 sm:$0xff]  }
 0x3fd   :  { %v778_v43 = vpack.c.bf16 %v770_v19, %v768_v16  ;;  %v766_v28 = vmax.f32 %v752_v8, 0.0  ;;  %v777_v31 = vpack.c.bf16 %v769_v47, %v767_v21  ;;  %v763_v37 = vmax.f32 %v749_v23, 0.0  ;;  %v7257_v10 = vld [vmem:[%s10446_s7 + $0x84] ss:$16 sps:$4 sm:$0xff]   ;;  %v7273_v11 = vld [vmem:[%s10446_s7 + $0x2a0] ss:$16 sps:$4 sm:$0xff]  }
 0x3fe   :  { %6380 = vmatprep.subr.msk.bf16.mxu0 %vm802_vm8, %v780_v41  ;;  %6389 = vmatprep.subr.msk.bf16.mxu1 %vm802_vm8, %v780_v41  ;;  %v746_v29 = vadd.f32 %v744_v63, %v724_v26  ;;  %v748_v30 = vadd.f32 %v744_v63, %v726_v27  ;;  %v765_v34 = vmax.f32 %v751_v25, 0.0  ;;  %v745_v39 = vadd.f32 %v740_v59, %v723_v20  ;;  %v7251_v63 = vld [vmem:[%s10446_s7 + $0xc4] ss:$16 sps:$4 sm:$0xff]   ;;  %v7255_v24 = vld [vmem:[%s10446_s7 + $0x80] ss:$16 sps:$4 sm:$0xff]  }
 0x3ff   :  { %818 = vmatpush1.bf16.msra.mxu0 %v804_v40  ;;  %892 = vmatpush1.bf16.msra.mxu1 %v804_v40  ;;  %v747_v35 = vadd.f32 %v740_v59, %v725_v36  ;;  %v776_v42 = vpack.c.bf16 %v766_v28, %v764_v22  ;;  %v7244_v59 = vld [vmem:[%s10445_s6 + $0x20] sm:$0xff]  }
 0x400   :  { %819 = vmatprep.subr.bf16.mxu0 %v778_v43  ;;  %893 = vmatprep.subr.bf16.mxu1 %v778_v43  ;;  %v760_v44 = vmax.f32 %v746_v29, 0.0  ;;  %v762_v45 = vmax.f32 %v748_v30, 0.0  ;;  %v775_v46 = vpack.c.bf16 %v765_v34, %v763_v37  ;;  %v759_v38 = vmax.f32 %v745_v39, 0.0  ;;  %v7281_v55 = vld [vmem:[%s10446_s7 + $0x284] ss:$16 sps:$4 sm:$0xff]  }
 0x401   :  { %v761_v48 = vmax.f32 %v747_v35, 0.0  ;;  %v7260_v12 = vld [vmem:[%s10446_s7 + $0x64] ss:$16 sps:$4 sm:$0xff]   ;;  %v7279_v13 = vld [vmem:[%s10446_s7 + $0x280] ss:$16 sps:$4 sm:$0xff]  }
 0x402   :  { %v774_v49 = vpack.c.bf16 %v762_v45, %v760_v44  ;;  %v7258_v14 = vld [vmem:[%s10446_s7 + $0x60] ss:$16 sps:$4 sm:$0xff]   ;;  %v7287_v15 = vld [vmem:[%s10446_s7 + $0x264] ss:$16 sps:$4 sm:$0xff]  }
 0x403   :  { %820 = vmatpush1.bf16.msra.mxu0 %v777_v31  ;;  %894 = vmatpush1.bf16.msra.mxu1 %v777_v31  ;;  %v773_v51 = vpack.c.bf16 %v761_v48, %v759_v38  ;;  %v7266_v8 = vld [vmem:[%s10446_s7 + $0x44] ss:$16 sps:$4 sm:$0xff]   ;;  %v7285_v33 = vld [vmem:[%s10446_s7 + $0x260] ss:$16 sps:$4 sm:$0xff]  }
 0x404   :  { %821 = vmatprep.subr.bf16.mxu0 %v776_v42  ;;  %895 = vmatprep.subr.bf16.mxu1 %v776_v42  ;;  %v7264_v17 = vld [vmem:[%s10446_s7 + $0x40] ss:$16 sps:$4 sm:$0xff]   ;;  %v7293_v0 = vld [vmem:[%s10446_s7 + $0x244] ss:$16 sps:$4 sm:$0xff]  }
 0x405   :  { %v7272_v18 = vld [vmem:[%s10446_s7 + $0x24] ss:$16 sps:$4 sm:$0xff]   ;;  %v7291_v16 = vld [vmem:[%s10446_s7 + $0x240] ss:$16 sps:$4 sm:$0xff]  }
 0x406   :  { %v7270_v19 = vld [vmem:[%s10446_s7 + $0x20] ss:$16 sps:$4 sm:$0xff]   ;;  %v7299_v20 = vld [vmem:[%s10446_s7 + $0x224] ss:$16 sps:$4 sm:$0xff]  }
 0x407   :  { %822 = vmatpush1.bf16.msra.mxu0 %v775_v46  ;;  %896 = vmatpush1.bf16.msra.mxu1 %v775_v46  ;;  %v7297_v21 = vld [vmem:[%s10446_s7 + $0x220] ss:$16 sps:$4 sm:$0xff]   ;;  %v7305_v22 = vld [vmem:[%s10446_s7 + $0x204] ss:$16 sps:$4 sm:$0xff]  }
 0x408   :  { %823 = vmatprep.subr.bf16.mxu0 %v774_v49  ;;  %897 = vmatprep.subr.bf16.mxu1 %v774_v49  ;;  %v7276_v47 = vld [vmem:[%s10446_s7] ss:$16 sps:$4 sm:$0xff]   ;;  %v7284_v23 = vld [vmem:[%s10446_s7 + $0x1e4] ss:$16 sps:$4 sm:$0xff]  }
 0x409   :  { %v7303_v25 = vld [vmem:[%s10446_s7 + $0x200] ss:$16 sps:$4 sm:$0xff]   ;;  %v7311_v27 = vld [vmem:[%s10446_s7 + $0x3e4] ss:$16 sps:$4 sm:$0xff]  }
 0x40a   :  { %v7282_v26 = vld [vmem:[%s10446_s7 + $0x1e0] ss:$16 sps:$4 sm:$0xff]   ;;  %v7317_v36 = vld [vmem:[%s10446_s7 + $0x3c4] ss:$16 sps:$4 sm:$0xff]  }
 0x40b   :  { %824 = vmatpush1.bf16.msra.mxu0 %v773_v51  ;;  %898 = vmatpush1.bf16.msra.mxu1 %v773_v51  ;;  %v7288_v28 = vld [vmem:[%s10446_s7 + $0x1c0] ss:$16 sps:$4 sm:$0xff]   ;;  %v7296_v29 = vld [vmem:[%s10446_s7 + $0x1a4] ss:$16 sps:$4 sm:$0xff]  }
 0x40c   :  { %6398 = vmatprep.subr.msk.bf16.mxu0 %vm802_vm8, %v780_v41  ;;  %2101 = vmatprep.subr.bf16.mxu1 %v7248_v62  ;;  %v7278_v41 = vld [vmem:[%s10446_s7 + $0x4] ss:$16 sps:$4 sm:$0xff]   ;;  %v7315_v30 = vld [vmem:[%s10446_s7 + $0x3c0] ss:$16 sps:$4 sm:$0xff]  }
 0x40d   :  { %v7323_v37 = vld [vmem:[%s10446_s7 + $0x3a4] ss:$16 sps:$4 sm:$0xff]   ;;  %v7321_v39 = vld [vmem:[%s10446_s7 + $0x3a0] ss:$16 sps:$4 sm:$0xff]  }
 0x40e   :  { %6381 = vmatmul.mubr.msk.bf16.vlgmr.msra.gmra.mxu0 %vm795_vm9, %v7240_v52  ;;  %6390 = vmatmul.mubr.msk.bf16.vlgmr.msra.gmra.mxu1 %vm795_vm9, %v7241_v56  ;;  %v7302_v34 = vld [vmem:[%s10446_s7 + $0x184] ss:$16 sps:$4 sm:$0xff]   ;;  %v7300_v35 = vld [vmem:[%s10446_s7 + $0x180] ss:$16 sps:$4 sm:$0xff]  }
 0x40f   :  { %966 = vmatpush1.bf16.msra.mxu0 %v804_v40  ;;  %851 = vmatprep.mubr.bf16.mxu0 %v7889_v32  ;;  %v7290_v40 = vld [vmem:[%s10446_s7 + $0x1c4] ss:$16 sps:$4 sm:$0xff]   ;;  %v7306_v44 = vld [vmem:[%s10446_s7 + $0x160] ss:$16 sps:$4 sm:$0xff]  }
 0x410   :  { %967 = vmatprep.subr.bf16.mxu0 %v778_v43  ;;  %925 = vmatprep.mubr.bf16.mxu1 %v7889_v32  ;;  %v7309_v43 = vld [vmem:[%s10446_s7 + $0x3e0] ss:$16 sps:$4 sm:$0xff]   ;;  %v7314_v45 = vld [vmem:[%s10446_s7 + $0x144] ss:$16 sps:$4 sm:$0xff]  }
 0x411   :  { %2102 = vmatpush1.bf16.msra.mxu1 %v7246_v61  ;;  %v7320_v38 = vld [vmem:[%s10446_s7 + $0x124] ss:$16 sps:$4 sm:$0xff]   ;;  %v7318_v48 = vld [vmem:[%s10446_s7 + $0x120] ss:$16 sps:$4 sm:$0xff]  }
 0x412   :  { %2103 = vmatprep.subr.bf16.mxu1 %v7251_v63  ;;  %v7327_v52 = vld [vmem:[%s10446_s7 + $0x380] ss:$16 sps:$4 sm:$0xff]   ;;  %v7329_v56 = vld [vmem:[%s10446_s7 + $0x384] ss:$16 sps:$4 sm:$0xff]  }
 0x413   :  { %968 = vmatpush1.bf16.msra.mxu0 %v777_v31  ;;  %v7294_v31 = vld [vmem:[%s10446_s7 + $0x1a0] ss:$16 sps:$4 sm:$0xff]   ;;  %v7335_v61 = vld [vmem:[%s10446_s7 + $0x4e4] ss:$16 sps:$4 sm:$0xff]  }
 0x414   :  { %969 = vmatprep.subr.bf16.mxu0 %v776_v42  ;;  %v7308_v42 = vld [vmem:[%s10446_s7 + $0x164] ss:$16 sps:$4 sm:$0xff]  }
 0x415   :  { %2104 = vmatpush1.bf16.msra.mxu1 %v7249_v1  ;;  %v7336_v1 = vld [vmem:[%s10446_s7 + $0x340] ss:$16 sps:$4 sm:$0xff]  }
 0x416   :  { %6382 = vmatmul.mubr.msk.bf16.gmra.mxu0 %vm795_vm9, %v7242_v57  ;;  %6391 = vmatmul.mubr.msk.bf16.gmra.mxu1 %vm795_vm9, %v7243_v58  ;;  %v7330_v57 = vld [vmem:[%s10446_s7 + $0x360] ss:$16 sps:$4 sm:$0xff]   ;;  %v7332_v58 = vld [vmem:[%s10446_s7 + $0x364] ss:$16 sps:$4 sm:$0xff]  }
 0x417   :  { %970 = vmatpush1.bf16.msra.mxu0 %v775_v46  ;;  %989 = vmatprep.mubr.bf16.mxu0 %v7889_v32  ;;  %v7312_v46 = vld [vmem:[%s10446_s7 + $0x140] ss:$16 sps:$4 sm:$0xff]  }
 0x418   :  { %971 = vmatprep.subr.bf16.mxu0 %v774_v49  ;;  %2105 = vmatprep.subr.bf16.mxu1 %v7254_v4  ;;  %v7324_v49 = vld [vmem:[%s10446_s7 + $0x100] ss:$16 sps:$4 sm:$0xff]  }
 0x419   :  { %2106 = vmatpush1.bf16.msra.mxu1 %v7252_v7 }
 0x41a   :  { %2107 = vmatprep.subr.bf16.mxu1 %v7257_v10 }
 0x41b   :  { %972 = vmatpush1.bf16.msra.mxu0 %v773_v51  ;;  %v7326_v51 = vld [vmem:[%s10446_s7 + $0x104] ss:$16 sps:$4 sm:$0xff]  }
 0x41c   :  { %2154 = vmatprep.subr.bf16.mxu0 %v7263_v3 }
 0x41d   :  { %2108 = vmatpush1.bf16.msra.mxu1 %v7255_v24  ;;  %v7344_v24 = vld [vmem:[%s10446_s7 + $0x324] ss:$16 sps:$4 sm:$0xff]  }
 0x41e   :  { %6399 = vmatmul.mubr.msk.bf16.vlgmr.msra.gmra.mxu0 %vm795_vm9, %v7244_v59  ;;  %2109 = vmatprep.subr.bf16.mxu1 %v7260_v12 }
 0x41f   :  { %999 = vmatprep.mubr.bf16.mxu0 %v7889_v32  ;;  %2155 = vmatpush1.bf16.msra.mxu0 %v7261_v2  ;;  %v7338_v2 = vld [vmem:[%s10446_s7 + $0x344] ss:$16 sps:$4 sm:$0xff]  }
 0x420   :  { %2156 = vmatprep.subr.bf16.mxu0 %v7269_v5 }
 0x421   :  { %2110 = vmatpush1.bf16.msra.mxu1 %v7258_v14 }
 0x422   :  { %2111 = vmatprep.subr.bf16.mxu1 %v7266_v8  ;;  %v7350_v8 = vld [vmem:[%s10446_s7 + $0x304] ss:$16 sps:$4 sm:$0xff]  }
 0x423   :  { %2157 = vmatpush1.bf16.msra.mxu0 %v7267_v6 }
 0x424   :  { %2158 = vmatprep.subr.bf16.mxu0 %v7275_v9 }
 0x425   :  { %2112 = vmatpush1.bf16.msra.mxu1 %v7264_v17 }
 0x426   :  { %6400 = vmatmul.mubr.msk.bf16.gmra.mxu0 %vm795_vm9, %v7245_v60  ;;  %2113 = vmatprep.subr.bf16.mxu1 %v7272_v18 }
 0x427   :  { %2159 = vmatpush1.bf16.msra.mxu0 %v7273_v11  ;;  %v7342_v11 = vld [vmem:[%s10446_s7 + $0x320] ss:$16 sps:$4 sm:$0xff]  }
 0x428   :  { %2160 = vmatprep.subr.bf16.mxu0 %v7281_v55 }
 0x429   :  { %2114 = vmatpush1.bf16.msra.mxu1 %v7270_v19 }
 0x42a   :  { %2115 = vmatprep.subr.bf16.mxu1 %v7278_v41 }
 0x42b   :  { %2161 = vmatpush1.bf16.msra.mxu0 %v7279_v13 }
 0x42c   :  { %2162 = vmatprep.subr.bf16.mxu0 %v7287_v15  ;;  %v7348_v15 = vld [vmem:[%s10446_s7 + $0x300] ss:$16 sps:$4 sm:$0xff]  }
 0x42d   :  { %2116 = vmatpush1.bf16.msra.mxu1 %v7276_v47  ;;  %v7359_v47 = vld [vmem:[%s10446_s7 + $0xec] ss:$16 sps:$4 sm:$0xff]  }
 0x42e   :  { %2117 = vmatprep.subr.bf16.mxu1 %v7284_v23 }
 0x42f   :  { %2163 = vmatpush1.bf16.msra.mxu0 %v7285_v33 }
 0x430   :  { %2164 = vmatprep.subr.bf16.mxu0 %v7293_v0 }
 0x431   :  { %2118 = vmatpush2.bf16.msra.mxu1 %v7282_v26 }
 0x432   :  { %2119 = vmatprep.subr.bf16.mxu1 %v7290_v40 }
 0x433   :  { %2165 = vmatpush1.bf16.msra.mxu0 %v7291_v16 }
 0x434   :  { %2166 = vmatprep.subr.bf16.mxu0 %v7299_v20 }
 0x435   :  { %2120 = vmatpush2.bf16.msra.mxu1 %v7288_v28 }
 0x436   :  { %2121 = vmatprep.subr.bf16.mxu1 %v7296_v29 }
 0x437   :  { %2167 = vmatpush1.bf16.msra.mxu0 %v7297_v21 }
 0x438   :  { %2168 = vmatprep.subr.bf16.mxu0 %v7305_v22 }
 0x439   :  { %2122 = vmatpush2.bf16.msra.mxu1 %v7294_v31 }
 0x43a   :  { %2123 = vmatprep.subr.bf16.mxu1 %v7302_v34 }
 0x43b   :  { %2169 = vmatpush1.bf16.msra.mxu0 %v7303_v25 }
 0x43c   :  { %2170 = vmatprep.subr.bf16.mxu0 %v7311_v27 }
 0x43d   :  { %2124 = vmatpush2.bf16.msra.mxu1 %v7300_v35 }
 0x43e   :  { %2125 = vmatprep.subr.bf16.mxu1 %v7308_v42 }
 0x43f   :  { %2171 = vmatpush2.bf16.msra.mxu0 %v7309_v43 }
 0x440   :  { %2172 = vmatprep.subr.bf16.mxu0 %v7317_v36 }
 0x441   :  { %2126 = vmatpush2.bf16.msra.mxu1 %v7306_v44  ;;  %v7333_v44 = vld [vmem:[%s10446_s7 + $0x4e0] ss:$16 sps:$4 sm:$0xff]  }
 0x442   :  { %2127 = vmatprep.subr.bf16.mxu1 %v7314_v45  ;;  %v7341_v45 = vld [vmem:[%s10446_s7 + $0x4c4] ss:$16 sps:$4 sm:$0xff]  }
 0x443   :  { %2173 = vmatpush2.bf16.msra.mxu0 %v7315_v30 }
 0x444   :  { %2174 = vmatprep.subr.bf16.mxu0 %v7323_v37 }
 0x445   :  { %2128 = vmatpush2.bf16.msra.mxu1 %v7312_v46 }
 0x446   :  { %2129 = vmatprep.subr.bf16.mxu1 %v7320_v38  ;;  %v7339_v38 = vld [vmem:[%s10446_s7 + $0x4c0] ss:$16 sps:$4 sm:$0xff]  }
 0x447   :  { %2175 = vmatpush2.bf16.msra.mxu0 %v7321_v39 }
 0x448   :  { %2176 = vmatprep.subr.bf16.mxu0 %v7329_v56 }
 0x449   :  { %2130 = vmatpush2.bf16.msra.mxu1 %v7318_v48 }
 0x44a   :  { %2131 = vmatprep.subr.bf16.mxu1 %v7326_v51  ;;  %v7347_v51 = vld [vmem:[%s10446_s7 + $0x4a4] ss:$16 sps:$4 sm:$0xff]  }
 0x44b   :  { %2177 = vmatpush2.bf16.msra.mxu0 %v7327_v52 }
 0x44c   :  { %2178 = vmatprep.subr.bf16.mxu0 %v7332_v58  ;;  %v7345_v58 = vld [vmem:[%s10446_s7 + $0x4a0] ss:$16 sps:$4 sm:$0xff]  }
 0x44d   :  { %2132 = vmatpush2.bf16.msra.mxu1 %v7324_v49 }
 0x44e   :  { %2207 = vmatprep.subr.bf16.mxu1 %v7335_v61 }
 0x44f   :  { %2179 = vmatpush2.bf16.msra.mxu0 %v7330_v57 }
 0x450   :  { %2180 = vmatprep.subr.bf16.mxu0 %v7338_v2 }
 0x453   :  { %2181 = vmatpush2.bf16.msra.mxu0 %v7336_v1 }
 0x454   :  { %2182 = vmatprep.subr.bf16.mxu0 %v7344_v24 }
 0x457   :  { %2183 = vmatpush2.bf16.msra.mxu0 %v7342_v11 }
 0x458   :  { %2184 = vmatprep.subr.bf16.mxu0 %v7350_v8 }
 0x45b   :  { %2185 = vmatpush2.bf16.msra.mxu0 %v7348_v15 }
 0x45c   :  { %2260 = vmatprep.subr.bf16.mxu0 %v7359_v47 }
 0x4ce   :  { %v843_v59 = vpop.f32.mrf.mxu0  ;;  %v917_v60 = vpop.f32.mrf.mxu1 }
 0x4d0   :  { %v8537_v62 = vpop.f32.mrf.mxu0  ;;  %v919_v63 = vpop.f32.mrf.mxu1 }
 0x4d2   :  { %v847_v3 = vpop.f32.mrf.mxu0  ;;  %v921_v4 = vpop.f32.mrf.mxu1 }
 0x4d3   :  { %v8545_v5 = vpack.c.bf16 %v847_v3, %v843_v59  ;;  %v7149_v6 = vpack.i.bf16 %v921_v4, %v917_v60  ;;  %v7353_v59 = vld [vmem:[%s10446_s7 + $0x484] ss:$16 sps:$4 sm:$0xff]  }
 0x4d4   :  { %v849_v7 = vpop.f32.mrf.mxu0  ;;  %v923_v9 = vpop.f32.mrf.mxu1  ;;  %v7356_v3 = vld [vmem:[%s10446_s7 + $0x464] ss:$16 sps:$4 sm:$0xff]  }
 0x4d5   :  { %v7154_v10 = vpack.i.bf16 %v923_v9, %v919_v63  ;;  %7150 = vrot.lane.b32.xlu0 %v7149_v6, %s7892_s29  ;;  %v7351_v63 = vld [vmem:[%s10446_s7 + $0x480] ss:$16 sps:$4 sm:$0xff]  }
 0x4d6   :  { %v853_v55 = vpop.f32.mrf.mxu0  ;;  %v927_v12 = vpop.f32.mrf.mxu1 }
 0x4d7   :  { %7155 = vrot.lane.b32.xlu1 %v7154_v10, %s7892_s29 }
 0x4d8   :  { %v855_v13 = vpop.f32.mrf.mxu0  ;;  %v929_v14 = vpop.f32.mrf.mxu1 }
 0x4da   :  { %v857_v33 = vpop.f32.mrf.mxu0  ;;  %v931_v17 = vpop.f32.mrf.mxu1 }
 0x4db   :  { %v8559_v0 = vpack.c.bf16 %v857_v33, %v853_v55  ;;  %v7164_v18 = vpack.i.bf16 %v931_v17, %v927_v12  ;;  %v7354_v55 = vld [vmem:[%s10446_s7 + $0x460] ss:$16 sps:$4 sm:$0xff]   ;;  %v7357_v12 = vld [vmem:[%s10446_s7 + $0xe8] ss:$16 sps:$4 sm:$0xff]   ;;  %v7362_v17 = vld [vmem:[%s10446_s7 + $0x444] ss:$16 sps:$4 sm:$0xff]  }
 0x4dc   :  { %v859_v16 = vpop.f32.mrf.mxu0  ;;  %v933_v19 = vpop.f32.mrf.mxu1 }
 0x4dd   :  { %7165 = vrot.lane.b32.xlu1 %v7164_v18, %s7892_s29  ;;  %v7174_v20 = vpack.i.bf16 %v933_v19, %v929_v14  ;;  %v7365_v18 = vld [vmem:[%s10446_s7 + $0xcc] ss:$16 sps:$4 sm:$0xff]  }
 0x4de   :  { %v991_v41 = vpop.f32.mrf.mxu0 }
 0x4e0   :  { %v993_v21 = vpop.f32.mrf.mxu0 }
 0x4e1   :  { %7175 = vrot.lane.b32.xlu1 %v7174_v20, %s7892_s29  ;;  %v7360_v20 = vld [vmem:[%s10446_s7 + $0x440] ss:$16 sps:$4 sm:$0xff]  }
 0x4e2   :  { %v995_v22 = vpop.f32.mrf.mxu0 }
 0x4e3   :  { %v7159_v23 = vpack.i.bf16 %v995_v22, %v991_v41  ;;  %v7363_v41 = vld [vmem:[%s10446_s7 + $0xc8] ss:$16 sps:$4 sm:$0xff]  }
 0x4e4   :  { %v997_v25 = vpop.f32.mrf.mxu0 }
 0x4e5   :  { %7160 = vrot.lane.b32.xlu0 %v7159_v23, %s7893_s24  ;;  %v7169_v27 = vpack.i.bf16 %v997_v25, %v993_v21  ;;  %v7368_v25 = vld [vmem:[%s10446_s7 + $0x424] ss:$16 sps:$4 sm:$0xff]  }
 0x4e6   :  { %v1001_v26 = vpop.f32.mrf.mxu0 }
 0x4e8   :  { %v1003_v40 = vpop.f32.mrf.mxu0 }
 0x4e9   :  { %7170 = vrot.lane.b32.xlu0 %v7169_v27, %s7893_s24 }
 0x4ea   :  { %v1005_v43 = vpop.f32.mrf.mxu0 }
 0x4eb   :  { %v7179_v28 = vpack.i.bf16 %v1005_v43, %v1001_v26  ;;  %v7371_v26 = vld [vmem:[%s10446_s7 + $0xac] ss:$16 sps:$4 sm:$0xff]  }
 0x4ec   :  { %v1007_v36 = vpop.f32.mrf.mxu0 }
 0x4ed   :  { %7180 = vrot.lane.b32.xlu0 %v7179_v28, %s7893_s24  ;;  %v7184_v29 = vpack.i.bf16 %v1007_v36, %v1003_v40  ;;  %v7366_v36 = vld [vmem:[%s10446_s7 + $0x420] ss:$16 sps:$4 sm:$0xff]  }
 0x4ef   :  { %7185 = vrot.lane.b32.xlu1 %v7184_v29, %s7893_s24  ;;  %v7369_v29 = vld [vmem:[%s10446_s7 + $0xa8] ss:$16 sps:$4 sm:$0xff]  }
 0x547   :  { %v7151_v30 = vpop.permute.xlu0 %7150 }
 0x548   :  { %v7153_v31 = vunpack.i.h.bf16 %v7151_v30  ;;  %v7152_v37 = vunpack.i.l.bf16 %v7151_v30  ;;  %v7374_v30 = vld [vmem:[%s10446_s7 + $0x404] ss:$16 sps:$4 sm:$0xff]  }
 0x549   :  { %v7156_v34 = vpop.permute.xlu1 %7155 }
 0x54a   :  { %v1091_v39 = vsel %vm468_vm3, %v8537_v62, %v7152_v37  ;;  %v1092_v35 = vsel %vm468_vm3, %v849_v7, %v7153_v31  ;;  %v7158_v60 = vunpack.i.h.bf16 %v7156_v34  ;;  %v7157_v61 = vunpack.i.l.bf16 %v7156_v34  ;;  %v7372_v34 = vld [vmem:[%s10446_s7 + $0x400] ss:$16 sps:$4 sm:$0xff]  }
 0x54b   :  { %v8567_v42 = vpack.c.bf16 %v1092_v35, %v1091_v39  ;;  %v7375_v39 = vld [vmem:[%s10446_s7 + $0x88] ss:$16 sps:$4 sm:$0xff]  }
 0x54c   :  { %v1035_v6 = vsel %vm468_vm3, %v7153_v31, %v7158_v60  ;;  %v1034_v7 = vsel %vm468_vm3, %v7152_v37, %v7157_v61  ;;  %v7377_v31 = vld [vmem:[%s10446_s7 + $0x8c] ss:$16 sps:$4 sm:$0xff]   ;;  %v1271_v37 = vld [vmem:[%s10446_s7 + $0x500] sm:$0xff] }
 0x54d   :  { %2133 = vmatprep.mubr.bf16.mxu1 %v8567_v42  ;;  %v8623_v15 = vpack.c.bf16 %v1035_v6, %v1034_v7  ;;  %v6562_v35 = vcombine.high %v1271_v37, %v1271_v37  ;;  %v7397_v7 = vld [vmem:[%s10446_s7 + $0xc] ss:$16 sps:$4 sm:$0xff]  }
 0x54e   :  { %2134 = vmatmul.mubr.bf16.vlgmr.msra.gmra.mxu1 %v8545_v5 }
 0x54f   :  { %2208 = vmatpush1.bf16.msra.mxu1 %v7333_v44  ;;  %v7166_v46 = vpop.permute.xlu1 %7165  ;;  %v7381_v44 = vld [vmem:[%s10446_s7 + $0x6c] ss:$16 sps:$4 sm:$0xff]  }
 0x550   :  { %v7168_v48 = vunpack.i.h.bf16 %v7166_v46  ;;  %v7167_v49 = vunpack.i.l.bf16 %v7166_v46  ;;  %2209 = vmatprep.subr.bf16.mxu1 %v7341_v45  ;;  %v6561_v45 = vcombine.low %v1271_v37, %v1271_v37  ;;  %v7434_v37 = vld [vmem:[%s10446_s7 + $0x3e8] ss:$16 sps:$4 sm:$0xff]  }
 0x552   :  { %v1093_v52 = vsel %vm468_vm3, %v855_v13, %v7167_v49  ;;  %v1094_v56 = vsel %vm468_vm3, %v859_v16, %v7168_v48 }
 0x553   :  { %2210 = vmatpush1.bf16.msra.mxu1 %v7339_v38  ;;  %v8585_v57 = vpack.c.bf16 %v1094_v56, %v1093_v52  ;;  %v7176_v4 = vpop.permute.xlu1 %7175  ;;  %v7379_v38 = vld [vmem:[%s10446_s7 + $0x68] ss:$16 sps:$4 sm:$0xff]  }
 0x554   :  { %2211 = vmatprep.subr.bf16.mxu1 %v7347_v51  ;;  %v7178_v13 = vunpack.i.h.bf16 %v7176_v4  ;;  %v7177_v14 = vunpack.i.l.bf16 %v7176_v4 }
 0x555   :  { %2143 = vmatprep.mubr.bf16.mxu1 %v8585_v57 }
 0x556   :  { %2144 = vmatmul.mubr.bf16.gmra.mxu1 %v8559_v0  ;;  %v1036_v21 = vsel %vm468_vm3, %v7167_v49, %v7177_v14  ;;  %v1037_v47 = vsel %vm468_vm3, %v7168_v48, %v7178_v13  ;;  %v7385_v48 = vld [vmem:[%s10446_s7 + $0x4c] ss:$16 sps:$4 sm:$0xff]   ;;  %vm6321_vm3 = vcmask 74752  }
 0x557   :  { %2212 = vmatpush1.bf16.msra.mxu1 %v7345_v58  ;;  %v8595_v62 = vpop.permute.xlu0 %7160  ;;  %v8659_v43 = vpack.c.bf16 %v1037_v47, %v1036_v21  ;;  %v7388_v49 = vld [vmem:[%s10446_s7 + $0x2ec] ss:$16 sps:$4 sm:$0xff]   ;;  %v7416_v21 = vld [vmem:[%s10446_s7 + $0x248] ss:$16 sps:$4 sm:$0xff]  }
 0x558   :  { %v7163_v1 = vunpack.i.h.bf16 %v8595_v62  ;;  %v7162_v2 = vunpack.i.l.bf16 %v8595_v62  ;;  %2213 = vmatprep.subr.bf16.mxu1 %v7353_v59  ;;  %v7383_v59 = vld [vmem:[%s10446_s7 + $0x48] ss:$16 sps:$4 sm:$0xff]   ;;  %v7391_v62 = vld [vmem:[%s10446_s7 + $0x2c] ss:$16 sps:$4 sm:$0xff]  }
 0x559   :  { %v7421_v47 = vld [vmem:[%s10446_s7 + $0x18c] ss:$16 sps:$4 sm:$0xff]  }
 0x55a   :  { %v1095_v9 = vsel %vm1074_vm10, %v7157_v61, %v7162_v2  ;;  %v1096_v10 = vsel %vm1074_vm10, %v7158_v60, %v7163_v1  ;;  %v7386_v60 = vld [vmem:[%s10446_s7 + $0x2e8] ss:$16 sps:$4 sm:$0xff]  }
 0x55b   :  { %2214 = vmatpush1.bf16.msra.mxu1 %v7351_v63  ;;  %v8613_v11 = vpop.permute.xlu0 %7170  ;;  %v8615_v24 = vpack.c.bf16 %v1096_v10, %v1095_v9  ;;  %v7394_v63 = vld [vmem:[%s10446_s7 + $0x2cc] ss:$16 sps:$4 sm:$0xff]  }
 0x55c   :  { %v7173_v8 = vunpack.i.h.bf16 %v8613_v11  ;;  %v7172_v33 = vunpack.i.l.bf16 %v8613_v11  ;;  %2215 = vmatprep.subr.bf16.mxu1 %v7356_v3  ;;  %v7392_v3 = vld [vmem:[%s10446_s7 + $0x2c8] ss:$16 sps:$4 sm:$0xff]   ;;  %v7400_v9 = vld [vmem:[%s10446_s7 + $0x2ac] ss:$16 sps:$4 sm:$0xff]  }
 0x55d   :  { %2186 = vmatprep.mubr.bf16.mxu0 %v8615_v24  ;;  %v7395_v11 = vld [vmem:[%s10446_s7 + $0x8] ss:$16 sps:$4 sm:$0xff]  }
 0x55e   :  { %v8634_v16 = vpack.c.bf16 %v7173_v8, %v7172_v33  ;;  %2187 = vmatmul.mubr.bf16.vlgmr.msra.gmra.mxu0 %v8623_v15  ;;  %v1076_v51 = vsel %vm1074_vm10, %v7163_v1, %v7173_v8  ;;  %v1075_v52 = vsel %vm1074_vm10, %v7162_v2, %v7172_v33  ;;  %v7389_v2 = vld [vmem:[%s10446_s7 + $0x28] ss:$16 sps:$4 sm:$0xff]   ;;  %v7409_v33 = vld [vmem:[%s10446_s7 + $0x1cc] ss:$16 sps:$4 sm:$0xff]  }
 0x55f   :  { %2216 = vmatpush1.bf16.msra.mxu1 %v7354_v55  ;;  %2261 = vmatpush1.bf16.msra.mxu0 %v7357_v12  ;;  %v8637_v19 = vpop.permute.xlu0 %7180  ;;  %v8713_v61 = vpack.c.bf16 %v1076_v51, %v1075_v52  ;;  %v7398_v55 = vld [vmem:[%s10446_s7 + $0x2a8] ss:$16 sps:$4 sm:$0xff]   ;;  %v7403_v12 = vld [vmem:[%s10446_s7 + $0x1ec] ss:$16 sps:$4 sm:$0xff]  }
 0x560   :  { %v7183_v22 = vunpack.i.h.bf16 %v8637_v19  ;;  %v7182_v23 = vunpack.i.l.bf16 %v8637_v19  ;;  %6566 = vmatprep.mubr.msk.bf16.mxu1 %vm664_vm7, %v8634_v16  ;;  %2217 = vmatprep.subr.bf16.mxu1 %v7362_v17  ;;  %v7404_v8 = vld [vmem:[%s10446_s7 + $0x288] ss:$16 sps:$4 sm:$0xff]   ;;  %v7412_v17 = vld [vmem:[%s10446_s7 + $0x26c] ss:$16 sps:$4 sm:$0xff]  }
 0x561   :  { %2262 = vmatprep.subr.bf16.mxu0 %v7365_v18  ;;  %v7186_v46 = vpop.permute.xlu1 %7185  ;;  %v7407_v18 = vld [vmem:[%s10446_s7 + $0x1c8] ss:$16 sps:$4 sm:$0xff]   ;;  %v7415_v19 = vld [vmem:[%s10446_s7 + $0x1ac] ss:$16 sps:$4 sm:$0xff]  }
 0x562   :  { %v1097_v27 = vsel %vm1074_vm10, %v7177_v14, %v7182_v23  ;;  %v1098_v40 = vsel %vm1074_vm10, %v7178_v13, %v7183_v22  ;;  %v7188_v56 = vunpack.i.h.bf16 %v7186_v46  ;;  %v7187_v58 = vunpack.i.l.bf16 %v7186_v46  ;;  %v7406_v13 = vld [vmem:[%s10446_s7 + $0x28c] ss:$16 sps:$4 sm:$0xff]   ;;  %v7401_v14 = vld [vmem:[%s10446_s7 + $0x1e8] ss:$16 sps:$4 sm:$0xff]  }
 0x563   :  { %2218 = vmatpush1.bf16.msra.mxu1 %v7360_v20  ;;  %2263 = vmatpush1.bf16.msra.mxu0 %v7363_v41  ;;  %v8661_v28 = vpack.c.bf16 %v1098_v40, %v1097_v27  ;;  %v7418_v20 = vld [vmem:[%s10446_s7 + $0x24c] ss:$16 sps:$4 sm:$0xff]   ;;  %v7413_v41 = vld [vmem:[%s10446_s7 + $0x1a8] ss:$16 sps:$4 sm:$0xff]  }
 0x564   :  { %2219 = vmatprep.subr.bf16.mxu1 %v7368_v25  ;;  %2264 = vmatprep.subr.bf16.mxu0 %v7371_v26  ;;  %v8721_v1 = vpack.c.bf16 %v7188_v56, %v7187_v58  ;;  %v1077_v4 = vsel %vm1074_vm10, %v7182_v23, %v7187_v58  ;;  %v1078_v6 = vsel %vm1074_vm10, %v7183_v22, %v7188_v56  ;;  %v7424_v22 = vld [vmem:[%s10446_s7 + $0x22c] ss:$16 sps:$4 sm:$0xff]   ;;  %v7419_v23 = vld [vmem:[%s10446_s7 + $0x188] ss:$16 sps:$4 sm:$0xff]  }
 0x565   :  { %2196 = vmatprep.mubr.bf16.mxu0 %v8661_v28  ;;  %v8740_v10 = vpack.c.bf16 %v1078_v6, %v1077_v4  ;;  %v7422_v25 = vld [vmem:[%s10446_s7 + $0x228] ss:$16 sps:$4 sm:$0xff]   ;;  %v7427_v26 = vld [vmem:[%s10446_s7 + $0x16c] ss:$16 sps:$4 sm:$0xff]  }
 0x566   :  { %2197 = vmatmul.mubr.bf16.gmra.mxu0 %v8659_v43  ;;  %v7430_v27 = vld [vmem:[%s10446_s7 + $0x20c] ss:$16 sps:$4 sm:$0xff]   ;;  %v7425_v40 = vld [vmem:[%s10446_s7 + $0x168] ss:$16 sps:$4 sm:$0xff]  }
 0x567   :  { %2220 = vmatpush1.bf16.msra.mxu1 %v7366_v36  ;;  %2265 = vmatpush1.bf16.msra.mxu0 %v7369_v29  ;;  %v7428_v36 = vld [vmem:[%s10446_s7 + $0x208] ss:$16 sps:$4 sm:$0xff]   ;;  %v7433_v29 = vld [vmem:[%s10446_s7 + $0x14c] ss:$16 sps:$4 sm:$0xff]  }
 0x568   :  { %2292 = vmatprep.mubr.bf16.mxu0 %v8567_v42  ;;  %2221 = vmatprep.subr.bf16.mxu1 %v7374_v30  ;;  %v2090_v42 = vsel %vm113_vm0, %v6561_v45, 0  ;;  %v7436_v30 = vld [vmem:[%s10446_s7 + $0x3ec] ss:$16 sps:$4 sm:$0xff]   ;;  %v7449_v51 = vld [vmem:[%s10446_s7 + $0x388] ss:$16 sps:$4 sm:$0xff]  }
 0x569   :  { %2266 = vmatprep.subr.bf16.mxu0 %v7377_v31  ;;  %v7431_v31 = vld [vmem:[%s10446_s7 + $0x148] ss:$16 sps:$4 sm:$0xff]   ;;  %v7445_v45 = vld [vmem:[%s10446_s7 + $0x10c] ss:$16 sps:$4 sm:$0xff]  }
 0x56a   :  { %v7448_v46 = vld [vmem:[%s10446_s7 + $0x3ac] ss:$16 sps:$4 sm:$0xff]   ;;  %v7452_v52 = vld [vmem:[%s10446_s7 + $0x4e8] ss:$16 sps:$4 sm:$0xff]  }
 0x56b   :  { %2222 = vmatpush1.bf16.msra.mxu1 %v7372_v34  ;;  %2267 = vmatpush1.bf16.msra.mxu0 %v7375_v39  ;;  %v7439_v34 = vld [vmem:[%s10446_s7 + $0x12c] ss:$16 sps:$4 sm:$0xff]   ;;  %v7467_v4 = vld [vmem:[%s10446_s7 + $0x328] ss:$16 sps:$4 sm:$0xff]  }
 0x56c   :  { %6565 = vmatprep.subr.msk.bf16.mxu1 %vm113_vm0, %v6562_v35  ;;  %2268 = vmatprep.subr.bf16.mxu0 %v7381_v44  ;;  %v7442_v39 = vld [vmem:[%s10446_s7 + $0x3cc] ss:$16 sps:$4 sm:$0xff]   ;;  %v7437_v35 = vld [vmem:[%s10446_s7 + $0x128] ss:$16 sps:$4 sm:$0xff]  }
 0x56d   :  { %v7440_v44 = vld [vmem:[%s10446_s7 + $0x3c8] ss:$16 sps:$4 sm:$0xff]   ;;  %v7457_v56 = vld [vmem:[%s10446_s7 + $0x36c] ss:$16 sps:$4 sm:$0xff]  }
 0x56e   :  { %v7460_v58 = vld [vmem:[%s10446_s7 + $0x4cc] ss:$16 sps:$4 sm:$0xff]   ;;  %v7470_v6 = vld [vmem:[%s10446_s7 + $0x488] ss:$16 sps:$4 sm:$0xff]  }
 0x56f   :  { %2238 = vmatpush2.bf16.msra.mxu1 %v2090_v42  ;;  %2269 = vmatpush1.bf16.msra.mxu0 %v7379_v38  ;;  %v7443_v38 = vld [vmem:[%s10446_s7 + $0x108] ss:$16 sps:$4 sm:$0xff]  }
 0x570   :  { %2270 = vmatprep.subr.bf16.mxu0 %v7385_v48  ;;  %2313 = vmatprep.subr.bf16.mxu1 %v7388_v49  ;;  %v7446_v42 = vld [vmem:[%s10446_s7 + $0x3a8] ss:$16 sps:$4 sm:$0xff]   ;;  %v7451_v48 = vld [vmem:[%s10446_s7 + $0x38c] ss:$16 sps:$4 sm:$0xff]  }
 0x571   :  { %v7454_v49 = vld [vmem:[%s10446_s7 + $0x4ec] ss:$16 sps:$4 sm:$0xff]  }
 0x572   :  { %2240 = vmatmul.mubr.bf16.vlgmr.msra.gmra.mxu1 %v8713_v61 }
 0x573   :  { %2271 = vmatpush1.bf16.msra.mxu0 %v7383_v59  ;;  %2314 = vmatpush1.bf16.msra.mxu1 %v7386_v60  ;;  %v7455_v59 = vld [vmem:[%s10446_s7 + $0x368] ss:$16 sps:$4 sm:$0xff]  }
 0x574   :  { %2272 = vmatprep.subr.bf16.mxu0 %v7391_v62  ;;  %2315 = vmatprep.subr.bf16.mxu1 %v7394_v63  ;;  %v7458_v60 = vld [vmem:[%s10446_s7 + $0x4c8] ss:$16 sps:$4 sm:$0xff]   ;;  %v7463_v62 = vld [vmem:[%s10446_s7 + $0x34c] ss:$16 sps:$4 sm:$0xff]  }
 0x575   :  { %6567 = vmatprep.mubr.msk.bf16.mxu1 %vm664_vm7, %v8721_v1  ;;  %v7464_v63 = vld [vmem:[%s10446_s7 + $0x4a8] ss:$16 sps:$4 sm:$0xff]  }
 0x577   :  { %2273 = vmatpush1.bf16.msra.mxu0 %v7389_v2  ;;  %2316 = vmatpush1.bf16.msra.mxu1 %v7392_v3  ;;  %v7469_v2 = vld [vmem:[%s10446_s7 + $0x32c] ss:$16 sps:$4 sm:$0xff]  }
 0x578   :  { %2274 = vmatprep.subr.bf16.mxu0 %v7397_v7  ;;  %2317 = vmatprep.subr.bf16.mxu1 %v7400_v9  ;;  %v7472_v3 = vld [vmem:[%s10446_s7 + $0x48c] ss:$16 sps:$4 sm:$0xff]   ;;  %v7476_v9 = vld [vmem:[%s10446_s7 + $0x468] ss:$16 sps:$4 sm:$0xff]  }
 0x579   :  { %v7475_v7 = vld [vmem:[%s10446_s7 + $0x30c] ss:$16 sps:$4 sm:$0xff]  }
 0x57a   :  { %2250 = vmatmul.mubr.bf16.gmra.mxu1 %v8740_v10 }
 0x57b   :  { %2275 = vmatpush1.bf16.msra.mxu0 %v7395_v11  ;;  %2318 = vmatpush1.bf16.msra.mxu1 %v7398_v55  ;;  %v7481_v11 = vld [vmem:[%s10446_s7 + $0x44c] ss:$16 sps:$4 sm:$0xff]   ;;  %v7479_v55 = vld [vmem:[%s10446_s7 + $0x448] ss:$16 sps:$4 sm:$0xff]  }
 0x57c   :  { %2345 = vmatprep.mubr.bf16.mxu1 %v8615_v24  ;;  %2276 = vmatprep.subr.bf16.mxu0 %v7403_v12  ;;  %v7410_v24 = vld [vmem:[%s10446_s7 + $0x268] ss:$16 sps:$4 sm:$0xff]   ;;  %v7484_v12 = vld [vmem:[%s10446_s7 + $0x42c] ss:$16 sps:$4 sm:$0xff]  }
 0x57d   :  { %2319 = vmatprep.subr.bf16.mxu1 %v7406_v13  ;;  %v7482_v13 = vld [vmem:[%s10446_s7 + $0x428] ss:$16 sps:$4 sm:$0xff]  }
 0x57f   :  { %2277 = vmatpush2.bf16.msra.mxu0 %v7401_v14  ;;  %2320 = vmatpush1.bf16.msra.mxu1 %v7404_v8  ;;  %v7487_v14 = vld [vmem:[%s10446_s7 + $0x40c] ss:$16 sps:$4 sm:$0xff]  }
 0x580   :  { %2278 = vmatprep.subr.bf16.mxu0 %v7409_v33  ;;  %2321 = vmatprep.subr.bf16.mxu1 %v7412_v17  ;;  %v1272_v8 = vld [vmem:[%s10446_s7 + $0x508] sm:$0xff]  ;;  %v2558_v17 = vld [vmem:[%s10447_s8 + $0xf8] sm:$0xff] }
 0x581   :  { %v6563_v33 = vcombine.low %v1272_v8, %v1272_v8 }
 0x583   :  { %2279 = vmatpush2.bf16.msra.mxu0 %v7407_v18  ;;  %2322 = vmatpush1.bf16.msra.mxu1 %v7410_v24  ;;  %v2542_v18 = vld [vmem:[%s10447_s8 + $0x78] sm:$0xff]  ;;  %v2096_v24 = vsel %vm113_vm0, %v6563_v33, 0 }
 0x584   :  { %2280 = vmatprep.subr.bf16.mxu0 %v7415_v19  ;;  %2323 = vmatprep.subr.bf16.mxu1 %v7418_v20  ;;  %v2557_v19 = vld [vmem:[%s10447_s8 + $0xf0] sm:$0xff]  ;;  %v2556_v20 = vld [vmem:[%s10447_s8 + $0xe8] sm:$0xff] }
 0x587   :  { %2281 = vmatpush2.bf16.msra.mxu0 %v7413_v41  ;;  %2324 = vmatpush1.bf16.msra.mxu1 %v7416_v21  ;;  %v2540_v41 = vld [vmem:[%s10447_s8 + $0x68] sm:$0xff]  ;;  %v2555_v21 = vld [vmem:[%s10447_s8 + $0xe0] sm:$0xff] }
 0x588   :  { %2282 = vmatprep.subr.bf16.mxu0 %v7421_v47  ;;  %2325 = vmatprep.subr.bf16.mxu1 %v7424_v22  ;;  %v2539_v47 = vld [vmem:[%s10447_s8 + $0x60] sm:$0xff]  ;;  %v2554_v22 = vld [vmem:[%s10447_s8 + $0xd8] sm:$0xff] }
 0x58b   :  { %2283 = vmatpush2.bf16.msra.mxu0 %v7419_v23  ;;  %2326 = vmatpush1.bf16.msra.mxu1 %v7422_v25  ;;  %v2538_v23 = vld [vmem:[%s10447_s8 + $0x58] sm:$0xff]  ;;  %v2553_v25 = vld [vmem:[%s10447_s8 + $0xd0] sm:$0xff] }
 0x58c   :  { %2284 = vmatprep.subr.bf16.mxu0 %v7427_v26  ;;  %2327 = vmatprep.subr.bf16.mxu1 %v7430_v27  ;;  %v2536_v26 = vld [vmem:[%s10447_s8 + $0x48] sm:$0xff]  ;;  %v2551_v27 = vld [vmem:[%s10447_s8 + $0xc0] sm:$0xff] }
 0x58f   :  { %2285 = vmatpush2.bf16.msra.mxu0 %v7425_v40  ;;  %2328 = vmatpush1.bf16.msra.mxu1 %v7428_v36  ;;  %v2535_v40 = vld [vmem:[%s10447_s8 + $0x40] sm:$0xff]  ;;  %v2550_v36 = vld [vmem:[%s10447_s8 + $0xb8] sm:$0xff] }
 0x590   :  { %2286 = vmatprep.subr.bf16.mxu0 %v7433_v29  ;;  %2329 = vmatprep.subr.bf16.mxu1 %v7436_v30  ;;  %v2549_v29 = vld [vmem:[%s10447_s8 + $0xb0] sm:$0xff] }
 0x591   :  { %v2533_v30 = vld [vmem:[%s10447_s8 + $0x30] sm:$0xff] }
 0x593   :  { %2287 = vmatpush2.bf16.msra.mxu0 %v7431_v31  ;;  %2330 = vmatpush2.bf16.msra.mxu1 %v7434_v37  ;;  %v2548_v31 = vld [vmem:[%s10447_s8 + $0xa8] sm:$0xff] }
 0x594   :  { %2288 = vmatprep.subr.bf16.mxu0 %v7439_v34  ;;  %2331 = vmatprep.subr.bf16.mxu1 %v7442_v39  ;;  %v2532_v37 = vld [vmem:[%s10447_s8 + $0x28] sm:$0xff]  ;;  %v2547_v34 = vld [vmem:[%s10447_s8 + $0xa0] sm:$0xff] }
 0x595   :  { %v2531_v39 = vld [vmem:[%s10447_s8 + $0x20] sm:$0xff] }
 0x597   :  { %2289 = vmatpush2.bf16.msra.mxu0 %v7437_v35  ;;  %2332 = vmatpush2.bf16.msra.mxu1 %v7440_v44  ;;  %v2546_v35 = vld [vmem:[%s10447_s8 + $0x98] sm:$0xff] }
 0x598   :  { %2290 = vmatprep.subr.bf16.mxu0 %v7445_v45  ;;  %2333 = vmatprep.subr.bf16.mxu1 %v7448_v46  ;;  %v2530_v44 = vld [vmem:[%s10447_s8 + $0x18] sm:$0xff]  ;;  %v2545_v45 = vld [vmem:[%s10447_s8 + $0x90] sm:$0xff] }
 0x599   :  { %v2529_v46 = vld [vmem:[%s10447_s8 + $0x10] sm:$0xff] }
 0x59b   :  { %2291 = vmatpush2.bf16.msra.mxu0 %v7443_v38  ;;  %2334 = vmatpush2.bf16.msra.mxu1 %v7446_v42  ;;  %v2544_v38 = vld [vmem:[%s10447_s8 + $0x88] sm:$0xff] }
 0x59c   :  { %2335 = vmatprep.subr.bf16.mxu1 %v7451_v48  ;;  %2366 = vmatprep.subr.bf16.mxu0 %v7454_v49  ;;  %v2528_v42 = vld [vmem:[%s10447_s8 + $0x8] sm:$0xff]  ;;  %v2543_v48 = vld [vmem:[%s10447_s8 + $0x80] sm:$0xff] }
 0x59d   :  { %v2527_v49 = vld [vmem:[%s10447_s8] sm:$0xff] }
 0x59e   :  { %2293 = vmatmul.mubr.bf16.vlgmr.msra.gmra.mxu0 %v8545_v5  ;;  %v7466_v5 = vld [vmem:[%s10446_s7 + $0x4ac] ss:$16 sps:$4 sm:$0xff]  }
 0x59f   :  { %2302 = vmatprep.mubr.bf16.mxu0 %v8585_v57  ;;  %2336 = vmatpush2.bf16.msra.mxu1 %v7449_v51  ;;  %v7461_v57 = vld [vmem:[%s10446_s7 + $0x348] ss:$16 sps:$4 sm:$0xff]  }
 0x5a0   :  { %2367 = vmatpush1.bf16.msra.mxu0 %v7452_v52  ;;  %2337 = vmatprep.subr.bf16.mxu1 %v7457_v56  ;;  %v2574_v51 = vld [vmem:[%s10447_s8 + $0x178] sm:$0xff]  ;;  %v2573_v52 = vld [vmem:[%s10447_s8 + $0x170] sm:$0xff]  ;;  %v2572_v56 = vld [vmem:[%s10447_s8 + $0x168] sm:$0xff] }
 0x5a1   :  { %2368 = vmatprep.subr.bf16.mxu0 %v7460_v58  ;;  %v2571_v58 = vld [vmem:[%s10447_s8 + $0x160] sm:$0xff] }
 0x5a3   :  { %2338 = vmatpush2.bf16.msra.mxu1 %v7455_v59  ;;  %v2570_v59 = vld [vmem:[%s10447_s8 + $0x158] sm:$0xff] }
 0x5a4   :  { %2369 = vmatpush1.bf16.msra.mxu0 %v7458_v60  ;;  %2339 = vmatprep.subr.bf16.mxu1 %v7463_v62  ;;  %v2569_v60 = vld [vmem:[%s10447_s8 + $0x150] sm:$0xff]  ;;  %v2568_v62 = vld [vmem:[%s10447_s8 + $0x148] sm:$0xff] }
 0x5a5   :  { %2370 = vmatprep.subr.bf16.mxu0 %v7466_v5  ;;  %v2567_v5 = vld [vmem:[%s10447_s8 + $0x140] sm:$0xff] }
 0x5a6   :  { %2303 = vmatmul.mubr.bf16.gmra.mxu0 %v8559_v0  ;;  %v7478_v0 = vld [vmem:[%s10446_s7 + $0x46c] ss:$16 sps:$4 sm:$0xff]  }
 0x5a7   :  { %2340 = vmatpush2.bf16.msra.mxu1 %v7461_v57  ;;  %6569 = vmatprep.mubr.msk.bf16.mxu0 %vm664_vm7, %v8634_v16  ;;  %v7473_v16 = vld [vmem:[%s10446_s7 + $0x308] ss:$16 sps:$4 sm:$0xff]  }
 0x5a8   :  { %2371 = vmatpush1.bf16.msra.mxu0 %v7464_v63  ;;  %2341 = vmatprep.subr.bf16.mxu1 %v7469_v2  ;;  %v2566_v57 = vld [vmem:[%s10447_s8 + $0x138] sm:$0xff]  ;;  %v2565_v63 = vld [vmem:[%s10447_s8 + $0x130] sm:$0xff]  ;;  %v2564_v2 = vld [vmem:[%s10447_s8 + $0x128] sm:$0xff] }
 0x5a9   :  { %2372 = vmatprep.subr.bf16.mxu0 %v7472_v3  ;;  %v2563_v3 = vld [vmem:[%s10447_s8 + $0x120] sm:$0xff] }
 0x5ab   :  { %2342 = vmatpush2.bf16.msra.mxu1 %v7467_v4 }
 0x5ac   :  { %2373 = vmatpush1.bf16.msra.mxu0 %v7470_v6  ;;  %2343 = vmatprep.subr.bf16.mxu1 %v7475_v7  ;;  %v2562_v6 = vld [vmem:[%s10447_s8 + $0x118] sm:$0xff] }
 0x5ad   :  { %2374 = vmatprep.subr.bf16.mxu0 %v7478_v0  ;;  %v2561_v0 = vld [vmem:[%s10447_s8 + $0x110] sm:$0xff] }
 0x5af   :  { %2344 = vmatpush2.bf16.msra.mxu1 %v7473_v16  ;;  %v2560_v16 = vld [vmem:[%s10447_s8 + $0x108] sm:$0xff] }
 0x5b0   :  { %2375 = vmatpush1.bf16.msra.mxu0 %v7476_v9  ;;  %6912 = vmatprep.subr.mxu1 %v2558_v17  ;;  %v2578_v17 = vld [vmem:[%s10447_s8 + $0x198] sm:$0xff] }
 0x5b1   :  { %2376 = vmatprep.subr.bf16.mxu0 %v7481_v11  ;;  %v2559_v11 = vld [vmem:[%s10447_s8 + $0x100] sm:$0xff] }
 0x5b2   :  { %2346 = vmatmul.mubr.bf16.vlgmr.msra.gmra.mxu1 %v8623_v15  ;;  %v7485_v15 = vld [vmem:[%s10446_s7 + $0x408] ss:$16 sps:$4 sm:$0xff]  }
 0x5b3   :  { %2355 = vmatprep.mubr.bf16.mxu1 %v8661_v28  ;;  %v6564_v28 = vcombine.high %v1272_v8, %v1272_v8  ;;  %6913 = vmatpush3.msra.mxu1 %v2542_v18  ;;  %v2580_v8 = vld [vmem:[%s10447_s8 + $0x1a8] sm:$0xff]  ;;  %v2577_v18 = vld [vmem:[%s10447_s8 + $0x190] sm:$0xff] }
 0x5b4   :  { %2377 = vmatpush1.bf16.msra.mxu0 %v7479_v55  ;;  %6914 = vmatprep.subr.mxu1 %v2557_v19  ;;  %v2582_v55 = vld [vmem:[%s10447_s8 + $0x1b8] sm:$0xff] }
 0x5b5   :  { %2378 = vmatprep.subr.bf16.mxu0 %v7484_v12  ;;  %v2581_v12 = vld [vmem:[%s10447_s8 + $0x1b0] sm:$0xff] }
 0x5b8   :  { %2379 = vmatpush1.bf16.msra.mxu0 %v7482_v13 }
 0x5b9   :  { %2380 = vmatprep.subr.bf16.mxu0 %v7487_v14 }
 0x5ba   :  { %2356 = vmatmul.mubr.bf16.gmra.mxu1 %v8659_v43  ;;  %v2541_v43 = vld [vmem:[%s10447_s8 + $0x70] sm:$0xff] }
 0x5bb   :  { %6915 = vmatpush3.msra.mxu1 %v2541_v43  ;;  %v2576_v43 = vld [vmem:[%s10447_s8 + $0x188] sm:$0xff] }
 0x5bc   :  { %2381 = vmatpush1.bf16.msra.mxu0 %v7485_v15  ;;  %6916 = vmatprep.subr.mxu1 %v2556_v20  ;;  %v2579_v15 = vld [vmem:[%s10447_s8 + $0x1a0] sm:$0xff] }
 0x5bd   :  { %6568 = vmatprep.subr.msk.bf16.mxu0 %vm113_vm0, %v6564_v28  ;;  %6917 = vmatpush3.msra.mxu1 %v2540_v41  ;;  %v2575_v20 = vld [vmem:[%s10447_s8 + $0x180] sm:$0xff] }
 0x5be   :  { %6918 = vmatprep.subr.mxu1 %v2555_v21 }
 0x5bf   :  { %6919 = vmatpush3.msra.mxu1 %v2539_v47 }
 0x5c0   :  { %2397 = vmatpush2.bf16.msra.mxu0 %v2096_v24  ;;  %6920 = vmatprep.subr.mxu1 %v2554_v22 }
 0x5c1   :  { %2656 = vmatprep.subr.mxu0 %v7891_v50  ;;  %6921 = vmatpush3.msra.mxu1 %v2538_v23 }
 0x5c2   :  { %6922 = vmatprep.subr.mxu1 %v2553_v25 }
 0x5c3   :  { %2399 = vmatmul.mubr.bf16.vlgmr.msra.gmra.mxu0 %v8713_v61  ;;  %v2537_v61 = vld [vmem:[%s10447_s8 + $0x50] sm:$0xff] }
 0x5c4   :  { %6570 = vmatprep.mubr.msk.bf16.mxu0 %vm664_vm7, %v8721_v1  ;;  %6923 = vmatpush3.msra.mxu1 %v2537_v61  ;;  %v2552_v1 = vld [vmem:[%s10447_s8 + $0xc8] sm:$0xff] }
 0x5c5   :  { %6924 = vmatprep.subr.mxu1 %v2552_v1  ;;  %2657 = vmatpush1.msra.mxu0 %v2574_v51 }
 0x5c6   :  { %6925 = vmatpush3.msra.mxu1 %v2536_v26  ;;  %2658 = vmatprep.subr.mxu0 %v7891_v50 }
 0x5c7   :  { %6926 = vmatprep.subr.mxu1 %v2551_v27  ;;  %2659 = vmatpush1.msra.mxu0 %v2573_v52 }
 0x5c8   :  { %6927 = vmatpush3.msra.mxu1 %v2535_v40  ;;  %2660 = vmatprep.subr.mxu0 %v7891_v50 }
 0x5c9   :  { %6928 = vmatprep.subr.mxu1 %v2550_v36  ;;  %2661 = vmatpush1.msra.mxu0 %v2572_v56 }
 0x5ca   :  { %2662 = vmatprep.subr.mxu0 %v7891_v50 }
 0x5cb   :  { %2409 = vmatmul.mubr.bf16.gmra.mxu0 %v8740_v10  ;;  %v2534_v10 = vld [vmem:[%s10447_s8 + $0x38] sm:$0xff]  ;;  %s7894_s8 = smov 64  }
 0x5cc   :  { %6929 = vmatpush3.msra.mxu1 %v2534_v10  ;;  %2663 = vmatpush1.msra.mxu0 %v2571_v58 }
 0x5cd   :  { %6930 = vmatprep.subr.mxu1 %v2549_v29  ;;  %2664 = vmatprep.subr.mxu0 %v7891_v50 }
 0x5ce   :  { %6931 = vmatpush3.msra.mxu1 %v2533_v30  ;;  %2665 = vmatpush1.msra.mxu0 %v2570_v59 }
 0x5cf   :  { %6932 = vmatprep.subr.mxu1 %v2548_v31  ;;  %2666 = vmatprep.subr.mxu0 %v7891_v50 }
 0x5d0   :  { %6933 = vmatpush3.msra.mxu1 %v2532_v37  ;;  %2667 = vmatpush1.msra.mxu0 %v2569_v60 }
 0x5d1   :  { %6934 = vmatprep.subr.mxu1 %v2547_v34  ;;  %2668 = vmatprep.subr.mxu0 %v7891_v50 }
 0x5d2   :  { %6935 = vmatpush3.msra.mxu1 %v2531_v39  ;;  %2669 = vmatpush1.msra.mxu0 %v2568_v62 }
 0x5d3   :  { %6936 = vmatprep.subr.mxu1 %v2546_v35  ;;  %2670 = vmatprep.subr.mxu0 %v7891_v50 }
 0x5d4   :  { %6937 = vmatpush3.msra.mxu1 %v2530_v44  ;;  %2671 = vmatpush1.msra.mxu0 %v2567_v5 }
 0x5d5   :  { %6938 = vmatprep.subr.mxu1 %v2545_v45  ;;  %2672 = vmatprep.subr.mxu0 %v7891_v50 }
 0x5d6   :  { %6939 = vmatpush3.msra.mxu1 %v2529_v46  ;;  %2673 = vmatpush1.msra.mxu0 %v2566_v57 }
 0x5d7   :  { %6940 = vmatprep.subr.mxu1 %v2544_v38  ;;  %2674 = vmatprep.subr.mxu0 %v7891_v50 }
 0x5d8   :  { %6941 = vmatpush3.msra.mxu1 %v2528_v42  ;;  %2675 = vmatpush1.msra.mxu0 %v2565_v63 }
 0x5d9   :  { %6942 = vmatprep.subr.mxu1 %v2543_v48  ;;  %2676 = vmatprep.subr.mxu0 %v7891_v50 }
 0x5da   :  { %6943 = vmatpush3.msra.mxu1 %v2527_v49  ;;  %2677 = vmatpush1.msra.mxu0 %v2564_v2 }
 0x5db   :  { %2678 = vmatprep.subr.mxu0 %v7891_v50 }
 0x5dc   :  { %2679 = vmatpush1.msra.mxu0 %v2563_v3 }
 0x5dd   :  { %2680 = vmatprep.subr.mxu0 %v7891_v50 }
 0x5de   :  { %2681 = vmatpush1.msra.mxu0 %v2562_v6 }
 0x5df   :  { %2682 = vmatprep.subr.mxu0 %v7891_v50 }
 0x5e0   :  { %2683 = vmatpush1.msra.mxu0 %v2561_v0 }
 0x5e1   :  { %2684 = vmatprep.subr.mxu0 %v7891_v50 }
 0x5e2   :  { %2685 = vmatpush1.msra.mxu0 %v2560_v16 }
 0x5e3   :  { %2686 = vmatprep.subr.mxu0 %v7891_v50 }
 0x5e4   :  { %2687 = vmatpush1.msra.mxu0 %v2559_v11 }
 0x5e5   :  { %2704 = vmatprep.subr.mxu0 %v7891_v50 }
 0x5e6   :  { %2705 = vmatpush2.msra.mxu0 %v2582_v55 }
 0x5e7   :  { %2706 = vmatprep.subr.mxu0 %v7891_v50 }
 0x5e8   :  { %2707 = vmatpush2.msra.mxu0 %v2581_v12 }
 0x5e9   :  { %2708 = vmatprep.subr.mxu0 %v7891_v50 }
 0x5ea   :  { %2709 = vmatpush2.msra.mxu0 %v2580_v8 }
 0x5eb   :  { %2710 = vmatprep.subr.mxu0 %v7891_v50 }
 0x5ec   :  { %2711 = vmatpush2.msra.mxu0 %v2579_v15 }
 0x5ed   :  { %2712 = vmatprep.subr.mxu0 %v7891_v50 }
 0x5ee   :  { %2713 = vmatpush2.msra.mxu0 %v2578_v17 }
 0x5ef   :  { %2714 = vmatprep.subr.mxu0 %v7891_v50 }
 0x5f0   :  { %2715 = vmatpush2.msra.mxu0 %v2577_v18 }
 0x5f1   :  { %2716 = vmatprep.subr.mxu0 %v7891_v50 }
 0x5f2   :  { %2717 = vmatpush2.msra.mxu0 %v2576_v43 }
 0x5f3   :  { %2718 = vmatprep.subr.mxu0 %v7891_v50 }
 0x5f4   :  { %2719 = vmatpush2.msra.mxu0 %v2575_v20 }
 0x60e   :  { %v2135_v4 = vpop.f32.mrf.mxu1 }
 0x610   :  { %v2137_v7 = vpop.f32.mrf.mxu1 }
 0x612   :  { %v2139_v9 = vpop.f32.mrf.mxu1 }
 0x614   :  { %v2141_v13 = vpop.f32.mrf.mxu1 }
 0x616   :  { %v2145_v28 = vpop.f32.mrf.mxu1 }
 0x618   :  { %v2147_v24 = vpop.f32.mrf.mxu1 }
 0x61a   :  { %v2149_v41 = vpop.f32.mrf.mxu1 }
 0x61c   :  { %v2151_v47 = vpop.f32.mrf.mxu1 }
 0x61e   :  { %v2188_v14 = vpop.f32.mrf.mxu0 }
 0x61f   :  { %v2189_v27 = vadd.f32 %v2188_v14, %v2135_v4 }
 0x620   :  { %v2190_v33 = vpop.f32.mrf.mxu0 }
 0x621   :  { %v2191_v30 = vadd.f32 %v2190_v33, %v2137_v7 }
 0x622   :  { %v2192_v19 = vpop.f32.mrf.mxu0 }
 0x623   :  { %v2193_v1 = vadd.f32 %v2192_v19, %v2139_v9 }
 0x624   :  { %v2194_v21 = vpop.f32.mrf.mxu0 }
 0x625   :  { %v2195_v40 = vadd.f32 %v2194_v21, %v2141_v13 }
 0x626   :  { %v2198_v22 = vpop.f32.mrf.mxu0 }
 0x627   :  { %v2199_v31 = vadd.f32 %v2198_v22, %v2145_v28 }
 0x628   :  { %v2200_v25 = vpop.f32.mrf.mxu0 }
 0x629   :  { %v2201_v35 = vadd.f32 %v2200_v25, %v2147_v24 }
 0x62a   :  { %v2202_v36 = vpop.f32.mrf.mxu0 }
 0x62b   :  { %v2203_v48 = vadd.f32 %v2202_v36, %v2149_v41 }
 0x62c   :  { %v2204_v46 = vpop.f32.mrf.mxu0 }
 0x62d   :  { %v2205_v60 = vadd.f32 %v2204_v46, %v2151_v47 }
 0x632   :  { %v2241_v23 = vpop.f32.mrf.mxu1 }
 0x633   :  { %v9135_v37 = vadd.f32 %v2241_v23, %v2189_v27 }
 0x634   :  { %v2243_v61 = vpop.f32.mrf.mxu1 }
 0x635   :  { %v9139_v44 = vadd.f32 %v2243_v61, %v2191_v30  ;;  %v2464_v51 = vmul.f32 %v9135_v37, %v9135_v37 }
 0x636   :  { %v2245_v26 = vpop.f32.mrf.mxu1 }
 0x637   :  { %v9133_v10 = vadd.f32 %v2245_v26, %v2193_v1  ;;  %v2465_v62 = vmul.f32 %v9139_v44, %v9139_v44 }
 0x638   :  { %v2247_v29 = vpop.f32.mrf.mxu1 }
 0x639   :  { %v9137_v34 = vadd.f32 %v2247_v29, %v2195_v40  ;;  %v2468_v38 = vmul.f32 %v9133_v10, %v9133_v10  ;;  %v2419_v52 = vadd.f32 %v9133_v10, %v9135_v37 }
 0x63a   :  { %v2251_v39 = vpop.f32.mrf.mxu1 }
 0x63b   :  { %v9141_v45 = vadd.f32 %v2251_v39, %v2199_v31  ;;  %v2469_v56 = vmul.f32 %v9137_v34, %v9137_v34  ;;  %v2480_v57 = vadd.f32 %v2468_v38, %v2464_v51  ;;  %v2429_v63 = vadd.f32 %v9137_v34, %v9139_v44 }
 0x63c   :  { %v2253_v42 = vpop.f32.mrf.mxu1 }
 0x63d   :  { %v9145_v49 = vadd.f32 %v2253_v42, %v2201_v35  ;;  %v2472_v58 = vmul.f32 %v9141_v45, %v9141_v45  ;;  %v2420_v2 = vadd.f32 %v2419_v52, %v9141_v45  ;;  %v2490_v16 = vadd.f32 %v2469_v56, %v2465_v62 }
 0x63e   :  { %v2255_v59 = vpop.f32.mrf.mxu1 }
 0x63f   :  { %v9157_v5 = vadd.f32 %v2255_v59, %v2203_v48  ;;  %v2473_v3 = vmul.f32 %v9145_v49, %v9145_v49  ;;  %v2481_v9 = vadd.f32 %v2480_v57, %v2472_v58  ;;  %v2430_v11 = vadd.f32 %v2429_v63, %v9145_v49 }
 0x640   :  { %v2257_v4 = vpop.f32.mrf.mxu1 }
 0x641   :  { %v2421_v6 = vsel %vm113_vm0, %v9157_v5, 0.0  ;;  %v2476_v7 = vmul.f32 %v9157_v5, %v9157_v5  ;;  %v9168_v0 = vadd.f32 %v2257_v4, %v2205_v60  ;;  %v2491_v8 = vadd.f32 %v2490_v16, %v2473_v3 }
 0x642   :  { %v2422_v55 = vadd.f32 %v2421_v6, %v2420_v2 }
 0x643   :  { %v2482_v12 = vsel %vm113_vm0, %v2476_v7, 0.0  ;;  %v2431_v13 = vsel %vm113_vm0, %v9168_v0, 0.0  ;;  %v2477_v14 = vmul.f32 %v9168_v0, %v9168_v0 }
 0x644   :  { %v2423_v15 = vrot.slane %v2422_v55, 4  ;;  %v2483_v28 = vadd.f32 %v2482_v12, %v2481_v9  ;;  %v2432_v33 = vadd.f32 %v2431_v13, %v2430_v11 }
 0x645   :  { %v2492_v17 = vsel %vm113_vm0, %v2477_v14, 0.0 }
 0x646   :  { %v2424_v18 = vadd.f32 %v2423_v15, %v2422_v55  ;;  %v2484_v24 = vrot.slane %v2483_v28, 4  ;;  %v2433_v19 = vrot.slane %v2432_v33, 4  ;;  %v2493_v43 = vadd.f32 %v2492_v17, %v2491_v8 }
 0x648   :  { %v2425_v20 = vrot.slane %v2424_v18, 2  ;;  %v2485_v41 = vadd.f32 %v2484_v24, %v2483_v28  ;;  %v2434_v21 = vadd.f32 %v2433_v19, %v2432_v33  ;;  %v2494_v47 = vrot.slane %v2493_v43, 4 }
 0x64a   :  { %v2486_v22 = vrot.slane %v2485_v41, 2  ;;  %v2435_v23 = vrot.slane %v2434_v21, 2  ;;  %v2495_v25 = vadd.f32 %v2494_v47, %v2493_v43  ;;  %v2426_v61 = vadd.f32 %v2425_v20, %v2424_v18 }
 0x64c   :  { %v2487_v1 = vadd.f32 %v2486_v22, %v2485_v41  ;;  %v2436_v26 = vadd.f32 %v2435_v23, %v2434_v21  ;;  %v2496_v27 = vrot.slane %v2495_v25, 2  ;;  %v2427_v30 = vrot.slane %v2426_v61, 1 }
 0x64e   :  { %v2437_v40 = vrot.slane %v2436_v26, 1  ;;  %v2497_v36 = vadd.f32 %v2496_v27, %v2495_v25  ;;  %v2488_v29 = vrot.slane %v2487_v1, 1  ;;  %v2428_v38 = vadd.f32 %v2427_v30, %v2426_v61 }
 0x650   :  { %v2498_v31 = vrot.slane %v2497_v36, 1  ;;  %v2489_v39 = vadd.f32 %v2488_v29, %v2487_v1  ;;  %v2438_v35 = vadd.f32 %v2437_v40, %v2436_v26 }
 0x652   :  { %v2499_v46 = vadd.f32 %v2498_v31, %v2497_v36  ;;  %v2523_v48 = vsel %vm535_vm6, %v2428_v38, %v2489_v39 }
 0x654   :  { %v2524_v42 = vsel %vm535_vm6, %v2438_v35, %v2499_v46 }
 0x655   :  { %2650 = vmatprep.mubr.f32.mxu1 %v2524_v42 }
 0x656   :  { %2651 = vmatmul.mubr.f32.vlgmr.msra.gmra.mxu1 %v2523_v48 }
 0x657   :  { %2830 = vmatprep.mubr.bf16.mxu1 %v7889_v32 }
 0x65e   :  { %v2294_v51 = vpop.f32.mrf.mxu0 }
 0x660   :  { %v2296_v52 = vpop.f32.mrf.mxu0 }
 0x662   :  { %v2298_v56 = vpop.f32.mrf.mxu0 }
 0x664   :  { %v2300_v58 = vpop.f32.mrf.mxu0 }
 0x666   :  { %v2304_v62 = vpop.f32.mrf.mxu0 }
 0x668   :  { %v2306_v63 = vpop.f32.mrf.mxu0 }
 0x66a   :  { %v2308_v3 = vpop.f32.mrf.mxu0 }
 0x66c   :  { %v2310_v6 = vpop.f32.mrf.mxu0 }
 0x672   :  { %v2347_v59 = vpop.f32.mrf.mxu1 }
 0x673   :  { %v2348_v8 = vadd.f32 %v2347_v59, %v2294_v51 }
 0x674   :  { %v2349_v60 = vpop.f32.mrf.mxu1 }
 0x675   :  { %v2350_v11 = vadd.f32 %v2349_v60, %v2296_v52 }
 0x676   :  { %v2351_v57 = vpop.f32.mrf.mxu1 }
 0x677   :  { %v2352_v55 = vadd.f32 %v2351_v57, %v2298_v56 }
 0x678   :  { %v2353_v2 = vpop.f32.mrf.mxu1 }
 0x679   :  { %v2354_v14 = vadd.f32 %v2353_v2, %v2300_v58 }
 0x67a   :  { %v2357_v4 = vpop.f32.mrf.mxu1 }
 0x67b   :  { %v2358_v17 = vadd.f32 %v2357_v4, %v2304_v62 }
 0x67c   :  { %v2359_v7 = vpop.f32.mrf.mxu1 }
 0x67d   :  { %v2360_v20 = vadd.f32 %v2359_v7, %v2306_v63 }
 0x67e   :  { %v2361_v12 = vpop.f32.mrf.mxu1 }
 0x67f   :  { %v2362_v25 = vadd.f32 %v2361_v12, %v2308_v3 }
 0x680   :  { %v2363_v24 = vpop.f32.mrf.mxu1 }
 0x681   :  { %v2364_v61 = vadd.f32 %v2363_v24, %v2310_v6 }
 0x683   :  { %v2400_v16 = vpop.f32.mrf.mxu0 }
 0x684   :  { %v9186_v19 = vadd.f32 %v2400_v16, %v2348_v8 }
 0x685   :  { %v2402_v9 = vpop.f32.mrf.mxu0 }
 0x686   :  { %v9180_v15 = vadd.f32 %v2402_v9, %v2350_v11  ;;  %v2466_v27 = vmul.f32 %v9186_v19, %v9186_v19 }
 0x687   :  { %v2404_v13 = vpop.f32.mrf.mxu0 }
 0x688   :  { %v9182_v28 = vadd.f32 %v2404_v13, %v2352_v55  ;;  %v2467_v47 = vmul.f32 %v9180_v15, %v9180_v15  ;;  %v2450_v40 = vsel %vm2449_vm11, %v9180_v15, 0.0 }
 0x689   :  { %v2406_v33 = vpop.f32.mrf.mxu0 }
 0x68a   :  { %v9184_v18 = vadd.f32 %v2406_v33, %v2354_v14  ;;  %v2470_v22 = vmul.f32 %v9182_v28, %v9182_v28  ;;  %v2439_v36 = vadd.f32 %v9182_v28, %v9186_v19  ;;  %v2510_v38 = vsel %vm2449_vm11, %v2467_v47, 0.0 }
 0x68b   :  { %v2410_v43 = vpop.f32.mrf.mxu0 }
 0x68c   :  { %v2471_v41 = vmul.f32 %v9184_v18, %v9184_v18  ;;  %v9190_v21 = vadd.f32 %v2410_v43, %v2358_v17  ;;  %v2451_v1 = vsel %vm2449_vm11, %v9184_v18, 0.0  ;;  %v2500_v42 = vadd.f32 %v2470_v22, %v2466_v27 }
 0x68d   :  { %v2412_v23 = vpop.f32.mrf.mxu0  ;;  %v2452_v48 = vadd.f32 %v2451_v1, %v2450_v40 }
 0x68e   :  { %v9198_v26 = vadd.f32 %v2412_v23, %v2360_v20  ;;  %v2474_v29 = vmul.f32 %v9190_v21, %v9190_v21  ;;  %v2511_v31 = vsel %vm2449_vm11, %v2471_v41, 0.0  ;;  %v2440_v51 = vadd.f32 %v2439_v36, %v9190_v21 }
 0x68f   :  { %v2414_v30 = vpop.f32.mrf.mxu0  ;;  %v2512_v62 = vadd.f32 %v2511_v31, %v2510_v38 }
 0x690   :  { %v2453_v39 = vsel %vm2449_vm11, %v9198_v26, 0.0  ;;  %v2475_v35 = vmul.f32 %v9198_v26, %v9198_v26  ;;  %v9213_v46 = vadd.f32 %v2414_v30, %v2362_v25  ;;  %v2501_v57 = vadd.f32 %v2500_v42, %v2474_v29 }
 0x691   :  { %v2416_v52 = vpop.f32.mrf.mxu0  ;;  %v2454_v63 = vadd.f32 %v2453_v39, %v2452_v48  ;;  %v7490_v48 = vld [vmem:[%s10448_s9 + $0x20] ss:$16 sps:$4 sm:$0xff]  }
 0x692   :  { %v2513_v56 = vsel %vm2449_vm11, %v2475_v35, 0.0  ;;  %v2441_v58 = vsel %vm113_vm0, %v9213_v46, 0.0  ;;  %v2478_v59 = vmul.f32 %v9213_v46, %v9213_v46  ;;  %v9222_v60 = vadd.f32 %v2416_v52, %v2364_v61  ;;  %v7495_v52 = vld [vmem:[%s10448_s9 + $0x4] ss:$16 sps:$4 sm:$0xff]  }
 0x693   :  { %v2442_v2 = vadd.f32 %v2441_v58, %v2440_v51  ;;  %v2514_v7 = vadd.f32 %v2513_v56, %v2512_v62  ;;  %v7492_v51 = vld [vmem:[%s10448_s9 + $0x24] ss:$16 sps:$4 sm:$0xff]   ;;  %v7493_v56 = vld [vmem:[%s10448_s9] ss:$16 sps:$4 sm:$0xff]   ;;  %v7498_v58 = vld [vmem:[%s10448_s9 + $0x2c] ss:$16 sps:$4 sm:$0xff]  }
 0x694   :  { %v2502_v3 = vsel %vm113_vm0, %v2478_v59, 0.0  ;;  %v2456_v4 = vsel %vm2455_vm12, %v9222_v60, 0.0  ;;  %v2479_v6 = vmul.f32 %v9222_v60, %v9222_v60  ;;  %2810 = vmatprep.subr.bf16.mxu1 %v7492_v51  ;;  %vm4856_vm0 = vcmask 1046528  }
 0x695   :  { %v2443_v16 = vrot.slane %v2442_v2, 4  ;;  %v2503_v9 = vadd.f32 %v2502_v3, %v2501_v57  ;;  %v2457_v11 = vadd.f32 %v2456_v4, %v2454_v63  ;;  %2811 = vmatpush1.bf16.msra.mxu1 %v7490_v48 }
 0x696   :  { %v2515_v55 = vsel %vm2455_vm12, %v2479_v6, 0.0  ;;  %2812 = vmatprep.subr.bf16.mxu1 %v7495_v52 }
 0x697   :  { %v2444_v12 = vadd.f32 %v2443_v16, %v2442_v2  ;;  %v2504_v13 = vrot.slane %v2503_v9, 4  ;;  %v2458_v14 = vrot.slane %v2457_v11, 4  ;;  %v2516_v8 = vadd.f32 %v2515_v55, %v2514_v7 }
 0x699   :  { %v2445_v33 = vrot.slane %v2444_v12, 2  ;;  %v2505_v17 = vadd.f32 %v2504_v13, %v2503_v9  ;;  %v2459_v24 = vadd.f32 %v2458_v14, %v2457_v11  ;;  %v2517_v43 = vrot.slane %v2516_v8, 4  ;;  %2813 = vmatpush1.bf16.msra.mxu1 %v7493_v56  ;;  %v2726_v11 = vld [vmem:[%s10449_s10] sm:$0x1]  ;;  %v2738_v13 = vld [vmem:[%s10449_s10 + $0x1] sm:$0x1] }
 0x69a   :  { %2851 = vmatprep.subr.bf16.mxu1 %v7498_v58 }
 0x69b   :  { %v2506_v20 = vrot.slane %v2505_v17, 2  ;;  %v2460_v41 = vrot.slane %v2459_v24, 2  ;;  %v2518_v47 = vadd.f32 %v2517_v43, %v2516_v8  ;;  %v2446_v22 = vadd.f32 %v2445_v33, %v2444_v12 }
 0x69d   :  { %v2507_v23 = vadd.f32 %v2506_v20, %v2505_v17  ;;  %v2461_v25 = vadd.f32 %v2460_v41, %v2459_v24  ;;  %v2519_v61 = vrot.slane %v2518_v47, 2  ;;  %v2447_v36 = vrot.slane %v2446_v22, 1  ;;  %v7496_v24 = vld [vmem:[%s10448_s9 + $0x28] ss:$16 sps:$4 sm:$0xff]   ;;  %v7501_v20 = vld [vmem:[%s10448_s9 + $0xc] ss:$16 sps:$4 sm:$0xff]  }
 0x69e   :  { %v7499_v41 = vld [vmem:[%s10448_s9 + $0x8] ss:$16 sps:$4 sm:$0xff]  }
 0x69f   :  { %v2462_v1 = vrot.slane %v2461_v25, 1  ;;  %v2520_v27 = vadd.f32 %v2519_v61, %v2518_v47  ;;  %v2508_v40 = vrot.slane %v2507_v23, 1  ;;  %v2448_v35 = vadd.f32 %v2447_v36, %v2446_v22 }
 0x6a1   :  { %v2521_v29 = vrot.slane %v2520_v27, 1  ;;  %v2509_v30 = vadd.f32 %v2508_v40, %v2507_v23  ;;  %v2463_v31 = vadd.f32 %v2462_v1, %v2461_v25 }
 0x6a3   :  { %v2522_v39 = vadd.f32 %v2521_v29, %v2520_v27  ;;  %v2525_v42 = vsel %vm535_vm6, %v2448_v35, %v2509_v30 }
 0x6a5   :  { %v2526_v38 = vsel %vm535_vm6, %v2463_v31, %v2522_v39 }
 0x6a6   :  { %6571 = vmatprep.mubr.msk.f32.mxu0 %vm2449_vm11, %v2526_v38 }
 0x6a7   :  { %2721 = vmatmul.mubr.f32.vlgmr.msra.gmra.mxu0 %v2525_v42 }
 0x6a8   :  { %3119 = vmatprep.mubr.bf16.mxu0 %v7889_v32 }
 0x716   :  { %v6944_v59 = vpop.f32.mrf.mxu1 }
 0x718   :  { %v6945_v62 = vpop.f32.mrf.mxu1 }
 0x719   :  { %v6946_v57 = vadd.f32 %v6945_v62, %v6944_v59 }
 0x767   :  { %v2722_v63 = vpop.f32.mrf.mxu0 }
 0x768   :  { %v2723_v2 = vadd.f32 %v6946_v57, %v2722_v63 }
 0x769   :  { %v2724_v3 = vpop.f32.mrf.mxu0 }
 0x76a   :  { %v2727_v4 = vmul.f32 %v2723_v2, %v2723_v2 }
 0x76c   :  { %v2729_v6 = vrot.slane %v2727_v4, 7 }
 0x76e   :  { %v2731_v7 = vsub.f32 %v2723_v2, %v2729_v6 }
 0x770   :  { %v2732_v16 = vadd.f32 1e-05, %v2731_v7 }
 0x772   :  { %7863 = vrsqrt.f32 %v2732_v16 }
 0x77f   :  { %v7864_v9 = vpop.eup %7863 }
 0x780   :  { %v2735_v55 = vrot.slane %v7864_v9, 1 }
 0x782   :  { %v2737_v12 = vmul.f32 %v2735_v55, %v2726_v11 }
 0x784   :  { %v2739_v14 = vmul.f32 %v2737_v12, %v2723_v2 }
 0x786   :  { %v2740_v8 = vsub.f32 %v2738_v13, %v2739_v14 }
 0x788   :  { %v2742_v33 = vrot.slane %v2740_v8, 7 }
 0x78a   :  { %v2744_v17 = vsel %vm535_vm6, %v2737_v12, %v2742_v33 }
 0x78b   :  { %v2745_v43 = vpack.c.bf16 %v2744_v17, %v2744_v17 }
 0x78d   :  { %6580 = vmatmul.mubr.msk.bf16.vlgmr.msra.gmra.mxu1 %vm2794_vm13, %v2745_v43 }
 0x78e   :  { %2852 = vmatpush1.bf16.msra.mxu1 %v7496_v24  ;;  %2871 = vmatprep.mubr.bf16.mxu1 %v7889_v32 }
 0x78f   :  { %2853 = vmatprep.subr.bf16.mxu1 %v7501_v20 }
 0x792   :  { %2854 = vmatpush1.bf16.msra.mxu1 %v7499_v41 }
 0x795   :  { %6581 = vmatmul.mubr.msk.bf16.vlgmr.msra.gmra.mxu1 %vm2794_vm13, %v2745_v43 }
 0x796   :  { %3022 = vmatprep.mubr.bf16.mxu1 %v7889_v32 }
 0x84d   :  { %v2832_v47 = vpop.f32.mrf.mxu1 }
 0x84e   :  { %v2883_v22 = vrot.slane %v2832_v47, %v8306_v53  ;;  %v2915_v23 = vrot.slane %v2832_v47, %v8308_v54 }
 0x84f   :  { %v2834_v25 = vpop.f32.mrf.mxu1 }
 0x850   :  { %v2896_v61 = vmul.f32 %v2883_v22, %v9135_v37  ;;  %v2900_v1 = vmul.f32 %v2883_v22, %v9133_v10  ;;  %v2904_v27 = vmul.f32 %v2883_v22, %v9141_v45  ;;  %v2908_v40 = vmul.f32 %v2883_v22, %v9157_v5 }
 0x851   :  { %v2887_v36 = vrot.slane %v2834_v25, %v8306_v53  ;;  %v2836_v29 = vpop.f32.mrf.mxu1  ;;  %v2919_v30 = vrot.slane %v2834_v25, %v8308_v54 }
 0x852   :  { %v2936_v31 = vadd.f32 %v2915_v23, %v2904_v27  ;;  %v2940_v39 = vadd.f32 %v2915_v23, %v2908_v40  ;;  %v2928_v48 = vadd.f32 %v2915_v23, %v2896_v61  ;;  %v2932_v45 = vadd.f32 %v2915_v23, %v2900_v1  ;;  %v7502_v1 = vld [vmem:[%s10450_s11] sm:$0x7f]  }
 0x853   :  { %v2905_v35 = vmul.f32 %v2887_v36, %v9145_v49  ;;  %v2909_v38 = vmul.f32 %v2887_v36, %v9168_v0  ;;  %v2837_v42 = vpop.f32.mrf.mxu1  ;;  %v2897_v37 = vmul.f32 %v2887_v36, %v9139_v44  ;;  %v2901_v10 = vmul.f32 %v2887_v36, %v9137_v34 }
 0x854   :  { %v2952_v51 = vmax.f32 %v2936_v31, 0.0  ;;  %v2956_v5 = vmax.f32 %v2940_v39, 0.0  ;;  %v2944_v7 = vmax.f32 %v2928_v48, 0.0  ;;  %v2948_v12 = vmax.f32 %v2932_v45, 0.0  ;;  %v7504_v48 = vld [vmem:[%s10451_s12 + $0x70] ss:$8 sps:$4 sm:$0xff]  }
 0x855   :  { %v2937_v52 = vadd.f32 %v2919_v30, %v2905_v35  ;;  %v2941_v56 = vadd.f32 %v2919_v30, %v2909_v38  ;;  %v2873_v58 = vpop.f32.mrf.mxu1  ;;  %v2929_v59 = vadd.f32 %v2919_v30, %v2897_v37  ;;  %v2933_v62 = vadd.f32 %v2919_v30, %v2901_v10  ;;  %v7506_v37 = vld [vmem:[%s10451_s12 + $0x74] ss:$8 sps:$4 sm:$0xff]   ;;  %v7510_v45 = vld [vmem:[%s10451_s12 + $0x64] ss:$8 sps:$4 sm:$0xff]  }
 0x856   :  { %v2891_v57 = vrot.slane %v2873_v58, %v8306_v53  ;;  %v2964_v63 = vpack.c.bf16 %v2956_v5, %v2952_v51  ;;  %v2923_v6 = vrot.slane %v2873_v58, %v8308_v54  ;;  %v7507_v10 = vld [vmem:[%s10450_s11 + $0x10] sm:$0x7f]   ;;  %v7508_v51 = vld [vmem:[%s10451_s12 + $0x60] ss:$8 sps:$4 sm:$0xff]  }
 0x857   :  { %v2875_v49 = vpop.f32.mrf.mxu1  ;;  %v2953_v2 = vmax.f32 %v2937_v52, 0.0  ;;  %v2957_v0 = vmax.f32 %v2941_v56, 0.0  ;;  %v2945_v3 = vmax.f32 %v2929_v59, 0.0  ;;  %v2949_v4 = vmax.f32 %v2933_v62, 0.0  ;;  %v7513_v5 = vld [vmem:[%s10451_s12 + $0x54] ss:$8 sps:$4 sm:$0xff]  }
 0x858   :  { %v2906_v44 = vmul.f32 %v2891_v57, %v9190_v21  ;;  %v2910_v34 = vmul.f32 %v2891_v57, %v9213_v46  ;;  %v2898_v16 = vmul.f32 %v2891_v57, %v9186_v19  ;;  %v2895_v9 = vrot.slane %v2875_v49, %v8306_v53  ;;  %v7511_v52 = vld [vmem:[%s10451_s12 + $0x50] ss:$8 sps:$4 sm:$0xff]   ;;  %v7516_v56 = vld [vmem:[%s10451_s12 + $0x44] ss:$8 sps:$4 sm:$0xff]   ;;  %v7514_v58 = vld [vmem:[%s10451_s12 + $0x40] ss:$8 sps:$4 sm:$0xff]  }
 0x859   :  { %v2877_v11 = vpop.f32.mrf.mxu1  ;;  %v2965_v55 = vpack.c.bf16 %v2957_v0, %v2953_v2  ;;  %v2902_v13 = vmul.f32 %v2891_v57, %v9182_v28  ;;  %v2927_v14 = vrot.slane %v2875_v49, %v8308_v54  ;;  %v2961_v8 = vpack.c.bf16 %v2949_v4, %v2945_v3  ;;  %v7519_v59 = vld [vmem:[%s10451_s12 + $0x34] ss:$8 sps:$4 sm:$0xff]   ;;  %v7517_v62 = vld [vmem:[%s10451_s12 + $0x30] ss:$8 sps:$4 sm:$0xff]   ;;  %v7522_v57 = vld [vmem:[%s10451_s12 + $0x24] ss:$8 sps:$4 sm:$0xff]  }
 0x85a   :  { %v2938_v33 = vadd.f32 %v2923_v6, %v2906_v44  ;;  %v2907_v21 = vmul.f32 %v2895_v9, %v9198_v26  ;;  %v2911_v46 = vmul.f32 %v2895_v9, %v9222_v60  ;;  %v2979_v17 = vsel %vm459_vm4, %v2964_v63, 0  ;;  %v7520_v63 = vld [vmem:[%s10451_s12 + $0x20] ss:$8 sps:$4 sm:$0xff]   ;;  %v7525_v49 = vld [vmem:[%s10451_s12 + $0x14] ss:$8 sps:$4 sm:$0xff]  }
 0x85b   :  { %6583 = vmatprep.subr.msk.bf16.mxu1 %vm459_vm4, %v2965_v55  ;;  %6590 = vmatprep.subr.msk.bf16.mxu0 %vm459_vm4, %v2965_v55  ;;  %v2878_v19 = vpop.f32.mrf.mxu1  ;;  %v2942_v24 = vadd.f32 %v2923_v6, %v2910_v34  ;;  %v2899_v28 = vmul.f32 %v2895_v9, %v9180_v15  ;;  %v2903_v20 = vmul.f32 %v2895_v9, %v9184_v18  ;;  %v7503_v15 = vld [vmem:[%s10450_s11 + $0x8] sm:$0x7f]   ;;  %v7523_v2 = vld [vmem:[%s10451_s12 + $0x10] ss:$8 sps:$4 sm:$0xff]   ;;  %v7531_v4 = vld [vmem:[%s10451_s12 + $0xf4] ss:$8 sps:$4 sm:$0xff]  }
 0x85c   :  { %3003 = vmatpush1.bf16.msra.mxu1 %v2979_v17  ;;  %3100 = vmatpush1.bf16.msra.mxu0 %v2979_v17  ;;  %v2954_v43 = vmax.f32 %v2938_v33, 0.0  ;;  %v2939_v41 = vadd.f32 %v2927_v14, %v2907_v21  ;;  %v2943_v47 = vadd.f32 %v2927_v14, %v2911_v46  ;;  %v2960_v26 = vpack.c.bf16 %v2948_v12, %v2944_v7  ;;  %v7528_v0 = vld [vmem:[%s10451_s12 + $0x4] ss:$8 sps:$4 sm:$0xff]   ;;  %v7526_v3 = vld [vmem:[%s10451_s12] ss:$8 sps:$4 sm:$0xff]  }
 0x85d   :  { %3004 = vmatprep.subr.bf16.mxu1 %v2961_v8  ;;  %3101 = vmatprep.subr.bf16.mxu0 %v2961_v8  ;;  %v2958_v60 = vmax.f32 %v2942_v24, 0.0  ;;  %v2930_v22 = vadd.f32 %v2923_v6, %v2898_v16  ;;  %v2934_v23 = vadd.f32 %v2923_v6, %v2902_v13  ;;  %v2931_v25 = vadd.f32 %v2927_v14, %v2899_v28  ;;  %v7529_v44 = vld [vmem:[%s10451_s12 + $0xf0] ss:$8 sps:$4 sm:$0xff]   ;;  %v7534_v34 = vld [vmem:[%s10451_s12 + $0xe4] ss:$8 sps:$4 sm:$0xff]  }
 0x85e   :  { %v2935_v61 = vadd.f32 %v2927_v14, %v2903_v20  ;;  %v2955_v27 = vmax.f32 %v2939_v41, 0.0  ;;  %v2959_v40 = vmax.f32 %v2943_v47, 0.0  ;;  %v7532_v6 = vld [vmem:[%s10451_s12 + $0xe0] ss:$8 sps:$4 sm:$0xff]   ;;  %v7537_v7 = vld [vmem:[%s10451_s12 + $0xd4] ss:$8 sps:$4 sm:$0xff]  }
 0x85f   :  { %v2966_v36 = vpack.c.bf16 %v2958_v60, %v2954_v43  ;;  %v2947_v18 = vmax.f32 %v2931_v25, 0.0  ;;  %v2946_v31 = vmax.f32 %v2930_v22, 0.0  ;;  %v2950_v39 = vmax.f32 %v2934_v23, 0.0  ;;  %v7535_v16 = vld [vmem:[%s10451_s12 + $0xd0] ss:$8 sps:$4 sm:$0xff]  }
 0x860   :  { %3005 = vmatpush1.bf16.msra.mxu1 %v2960_v26  ;;  %3102 = vmatpush1.bf16.msra.mxu0 %v2960_v26  ;;  %v2951_v29 = vmax.f32 %v2935_v61, 0.0  ;;  %v2967_v30 = vpack.c.bf16 %v2959_v40, %v2955_v27  ;;  %v7540_v9 = vld [vmem:[%s10451_s12 + $0xc4] ss:$8 sps:$4 sm:$0xff]   ;;  %v7538_v11 = vld [vmem:[%s10451_s12 + $0xc0] ss:$8 sps:$4 sm:$0xff]  }
 0x861   :  { %6597 = vmatprep.subr.msk.bf16.mxu0 %vm459_vm4, %v2965_v55  ;;  %v2985_v35 = vsel %vm459_vm4, %v2966_v36, 0  ;;  %v2962_v42 = vpack.c.bf16 %v2950_v39, %v2946_v31  ;;  %v7543_v55 = vld [vmem:[%s10451_s12 + $0xb4] ss:$8 sps:$4 sm:$0xff]   ;;  %v7541_v12 = vld [vmem:[%s10451_s12 + $0xb0] ss:$8 sps:$4 sm:$0xff]  }
 0x862   :  { %6585 = vmatprep.subr.msk.bf16.mxu1 %vm459_vm4, %v2967_v30  ;;  %v2963_v38 = vpack.c.bf16 %v2951_v29, %v2947_v18  ;;  %v7546_v13 = vld [vmem:[%s10451_s12 + $0xa4] ss:$8 sps:$4 sm:$0xff]   ;;  %v7544_v14 = vld [vmem:[%s10451_s12 + $0xa0] ss:$8 sps:$4 sm:$0xff]   ;;  %v7549_v33 = vld [vmem:[%s10451_s12 + $0x94] ss:$8 sps:$4 sm:$0xff]  }
 0x863   :  { %6584 = vmatmul.mubr.msk.bf16.vlgmr.msra.gmra.mxu1 %vm311_vm2, %v7502_v1  ;;  %6591 = vmatmul.mubr.msk.bf16.vlgmr.msra.gmra.mxu0 %vm311_vm2, %v7503_v15  ;;  %v7550_v21 = vld [vmem:[%s10451_s12 + $0x80] ss:$8 sps:$4 sm:$0xff]   ;;  %v7552_v46 = vld [vmem:[%s10451_s12 + $0x84] ss:$8 sps:$4 sm:$0xff]   ;;  %v7553_v19 = vld [vmem:[%s10451_s12 + $0x170] ss:$8 sps:$4 sm:$0xff]  }
 0x864   :  { %3046 = vmatpush1.bf16.msra.mxu1 %v2985_v35  ;;  %3197 = vmatpush1.bf16.msra.mxu0 %v2979_v17  ;;  %v7555_v17 = vld [vmem:[%s10451_s12 + $0x174] ss:$8 sps:$4 sm:$0xff]   ;;  %v7558_v24 = vld [vmem:[%s10451_s12 + $0x164] ss:$8 sps:$4 sm:$0xff]   ;;  %v7556_v43 = vld [vmem:[%s10451_s12 + $0x160] ss:$8 sps:$4 sm:$0xff]  }
 0x865   :  { %3047 = vmatprep.subr.bf16.mxu1 %v2963_v38  ;;  %3198 = vmatprep.subr.bf16.mxu0 %v2961_v8  ;;  %v7547_v8 = vld [vmem:[%s10451_s12 + $0x90] ss:$8 sps:$4 sm:$0xff]   ;;  %v7570_v28 = vld [vmem:[%s10451_s12 + $0x274] ss:$8 sps:$4 sm:$0xff]   ;;  %v7564_v47 = vld [vmem:[%s10451_s12 + $0x144] ss:$8 sps:$4 sm:$0xff]  }
 0x866   :  { %3065 = vmatprep.mubr.bf16.mxu1 %v7889_v32  ;;  %3216 = vmatprep.mubr.bf16.mxu0 %v7889_v32  ;;  %v7561_v20 = vld [vmem:[%s10451_s12 + $0x154] ss:$8 sps:$4 sm:$0xff]   ;;  %v7559_v41 = vld [vmem:[%s10451_s12 + $0x150] ss:$8 sps:$4 sm:$0xff]   ;;  %v7573_v23 = vld [vmem:[%s10451_s12 + $0x124] ss:$8 sps:$4 sm:$0xff]  }
 0x867   :  { %v7567_v60 = vld [vmem:[%s10451_s12 + $0x134] ss:$8 sps:$4 sm:$0xff]   ;;  %v7565_v22 = vld [vmem:[%s10451_s12 + $0x130] ss:$8 sps:$4 sm:$0xff]   ;;  %v7571_v25 = vld [vmem:[%s10451_s12 + $0x120] ss:$8 sps:$4 sm:$0xff]  }
 0x868   :  { %3048 = vmatpush1.bf16.msra.mxu1 %v2962_v42  ;;  %3199 = vmatpush1.bf16.msra.mxu0 %v2960_v26  ;;  %v7562_v26 = vld [vmem:[%s10451_s12 + $0x140] ss:$8 sps:$4 sm:$0xff]   ;;  %v7579_v61 = vld [vmem:[%s10451_s12 + $0x114] ss:$8 sps:$4 sm:$0xff]   ;;  %v7585_v27 = vld [vmem:[%s10451_s12 + $0x104] ss:$8 sps:$4 sm:$0xff]  }
 0x869   :  { %6592 = vmatprep.subr.msk.bf16.mxu1 %vm459_vm4, %v2967_v30  ;;  %4332 = vmatprep.subr.bf16.mxu0 %v7506_v37  ;;  %v7583_v40 = vld [vmem:[%s10451_s12 + $0x100] ss:$8 sps:$4 sm:$0xff]   ;;  %v7591_v36 = vld [vmem:[%s10451_s12 + $0x1f4] ss:$8 sps:$4 sm:$0xff]   ;;  %v7597_v18 = vld [vmem:[%s10451_s12 + $0x1e4] ss:$8 sps:$4 sm:$0xff]  }
 0x86a   :  { %v7595_v29 = vld [vmem:[%s10451_s12 + $0x1e0] ss:$8 sps:$4 sm:$0xff]   ;;  %v7601_v31 = vld [vmem:[%s10451_s12 + $0x1d0] ss:$8 sps:$4 sm:$0xff]   ;;  %v7609_v39 = vld [vmem:[%s10451_s12 + $0x1c4] ss:$8 sps:$4 sm:$0xff]  }
 0x86b   :  { %6586 = vmatmul.mubr.msk.bf16.vlgmr.msra.gmra.mxu1 %vm311_vm2, %v7502_v1  ;;  %6598 = vmatmul.mubr.msk.bf16.vlgmr.msra.gmra.mxu0 %vm311_vm2, %v7507_v10  ;;  %v7577_v1 = vld [vmem:[%s10451_s12 + $0x110] ss:$8 sps:$4 sm:$0xff]   ;;  %v7621_v37 = vld [vmem:[%s10451_s12 + $0x1a4] ss:$8 sps:$4 sm:$0xff]  }
 0x86c   :  { %3143 = vmatpush1.bf16.msra.mxu1 %v2985_v35  ;;  %3162 = vmatprep.mubr.bf16.mxu1 %v7889_v32 }
 0x86d   :  { %3144 = vmatprep.subr.bf16.mxu1 %v2963_v38  ;;  %4333 = vmatpush1.bf16.msra.mxu0 %v7504_v48  ;;  %v7627_v48 = vld [vmem:[%s10451_s12 + $0x194] ss:$8 sps:$4 sm:$0xff]  }
 0x86e   :  { %4334 = vmatprep.subr.bf16.mxu0 %v7510_v45  ;;  %v7625_v45 = vld [vmem:[%s10451_s12 + $0x190] ss:$8 sps:$4 sm:$0xff]  }
 0x870   :  { %3145 = vmatpush1.bf16.msra.mxu1 %v2962_v42 }
 0x871   :  { %6599 = vmatprep.subr.msk.bf16.mxu1 %vm459_vm4, %v2967_v30  ;;  %4335 = vmatpush1.bf16.msra.mxu0 %v7508_v51  ;;  %v7603_v30 = vld [vmem:[%s10451_s12 + $0x1d4] ss:$8 sps:$4 sm:$0xff]   ;;  %v7631_v51 = vld [vmem:[%s10451_s12 + $0x180] ss:$8 sps:$4 sm:$0xff]  }
 0x872   :  { %4336 = vmatprep.subr.bf16.mxu0 %v7513_v5  ;;  %v7633_v5 = vld [vmem:[%s10451_s12 + $0x184] ss:$8 sps:$4 sm:$0xff]  }
 0x873   :  { %6593 = vmatmul.mubr.msk.bf16.vlgmr.msra.gmra.mxu1 %vm311_vm2, %v7503_v15  ;;  %v7589_v15 = vld [vmem:[%s10451_s12 + $0x1f0] ss:$8 sps:$4 sm:$0xff]  }
 0x874   :  { %3240 = vmatpush1.bf16.msra.mxu1 %v2985_v35  ;;  %3259 = vmatprep.mubr.bf16.mxu1 %v7889_v32  ;;  %v7607_v35 = vld [vmem:[%s10451_s12 + $0x1c0] ss:$8 sps:$4 sm:$0xff]  }
 0x875   :  { %3241 = vmatprep.subr.bf16.mxu1 %v2963_v38  ;;  %4337 = vmatpush1.bf16.msra.mxu0 %v7511_v52  ;;  %v7615_v38 = vld [vmem:[%s10451_s12 + $0x1b4] ss:$8 sps:$4 sm:$0xff]  }
 0x876   :  { %4338 = vmatprep.subr.bf16.mxu0 %v7516_v56 }
 0x878   :  { %3242 = vmatpush1.bf16.msra.mxu1 %v2962_v42  ;;  %v7613_v42 = vld [vmem:[%s10451_s12 + $0x1b0] ss:$8 sps:$4 sm:$0xff]  }
 0x879   :  { %4339 = vmatpush1.bf16.msra.mxu0 %v7514_v58  ;;  %4375 = vmatprep.subr.bf16.mxu1 %v7555_v17  ;;  %v7642_v58 = vld [vmem:[%s10451_s12 + $0x374] ss:$8 sps:$4 sm:$0xff]  }
 0x87a   :  { %4340 = vmatprep.subr.bf16.mxu0 %v7519_v59  ;;  %v7594_v17 = vld [vmem:[%s10451_s12 + $0x234] ss:$8 sps:$4 sm:$0xff]  }
 0x87b   :  { %6600 = vmatmul.mubr.msk.bf16.vlgmr.msra.gmra.mxu1 %vm311_vm2, %v7507_v10  ;;  %v7619_v10 = vld [vmem:[%s10451_s12 + $0x1a0] ss:$8 sps:$4 sm:$0xff]   ;;  %vm7897_vm2 = vmmov 0  }
 0x87c   :  { %4376 = vmatpush1.bf16.msra.mxu1 %v7553_v19 }
 0x87d   :  { %4341 = vmatpush1.bf16.msra.mxu0 %v7517_v62  ;;  %4377 = vmatprep.subr.bf16.mxu1 %v7558_v24 }
 0x87e   :  { %4342 = vmatprep.subr.bf16.mxu0 %v7522_v57 }
 0x880   :  { %4378 = vmatpush1.bf16.msra.mxu1 %v7556_v43 }
 0x881   :  { %4343 = vmatpush1.bf16.msra.mxu0 %v7520_v63  ;;  %4379 = vmatprep.subr.bf16.mxu1 %v7561_v20  ;;  %v7592_v20 = vld [vmem:[%s10451_s12 + $0x230] ss:$8 sps:$4 sm:$0xff]  }
 0x882   :  { %4344 = vmatprep.subr.bf16.mxu0 %v7525_v49 }
 0x884   :  { %4380 = vmatpush1.bf16.msra.mxu1 %v7559_v41  ;;  %v7600_v41 = vld [vmem:[%s10451_s12 + $0x224] ss:$8 sps:$4 sm:$0xff]  }
 0x885   :  { %4345 = vmatpush1.bf16.msra.mxu0 %v7523_v2  ;;  %4381 = vmatprep.subr.bf16.mxu1 %v7564_v47  ;;  %v7598_v47 = vld [vmem:[%s10451_s12 + $0x220] ss:$8 sps:$4 sm:$0xff]  }
 0x886   :  { %4346 = vmatprep.subr.bf16.mxu0 %v7528_v0 }
 0x888   :  { %4382 = vmatpush1.bf16.msra.mxu1 %v7562_v26  ;;  %v7606_v26 = vld [vmem:[%s10451_s12 + $0x214] ss:$8 sps:$4 sm:$0xff]  }
 0x889   :  { %4347 = vmatpush1.bf16.msra.mxu0 %v7526_v3  ;;  %4383 = vmatprep.subr.bf16.mxu1 %v7567_v60  ;;  %v7568_v3 = vld [vmem:[%s10451_s12 + $0x270] ss:$8 sps:$4 sm:$0xff]  }
 0x88a   :  { %4348 = vmatprep.subr.bf16.mxu0 %v7531_v4  ;;  %v7604_v60 = vld [vmem:[%s10451_s12 + $0x210] ss:$8 sps:$4 sm:$0xff]  }
 0x88c   :  { %4384 = vmatpush1.bf16.msra.mxu1 %v7565_v22  ;;  %v7612_v22 = vld [vmem:[%s10451_s12 + $0x204] ss:$8 sps:$4 sm:$0xff]  }
 0x88d   :  { %4349 = vmatpush2.bf16.msra.mxu0 %v7529_v44  ;;  %4385 = vmatprep.subr.bf16.mxu1 %v7573_v23  ;;  %v7610_v23 = vld [vmem:[%s10451_s12 + $0x200] ss:$8 sps:$4 sm:$0xff]  }
 0x88e   :  { %4350 = vmatprep.subr.bf16.mxu0 %v7534_v34  ;;  %v7576_v34 = vld [vmem:[%s10451_s12 + $0x264] ss:$8 sps:$4 sm:$0xff]  }
 0x890   :  { %4386 = vmatpush1.bf16.msra.mxu1 %v7571_v25  ;;  %v7618_v25 = vld [vmem:[%s10451_s12 + $0x2f4] ss:$8 sps:$4 sm:$0xff]  }
 0x891   :  { %4351 = vmatpush2.bf16.msra.mxu0 %v7532_v6  ;;  %4387 = vmatprep.subr.bf16.mxu1 %v7579_v61  ;;  %v7616_v61 = vld [vmem:[%s10451_s12 + $0x2f0] ss:$8 sps:$4 sm:$0xff]  }
 0x892   :  { %4352 = vmatprep.subr.bf16.mxu0 %v7537_v7  ;;  %v7574_v7 = vld [vmem:[%s10451_s12 + $0x260] ss:$8 sps:$4 sm:$0xff]  }
 0x894   :  { %4388 = vmatpush1.bf16.msra.mxu1 %v7577_v1  ;;  %v7624_v1 = vld [vmem:[%s10451_s12 + $0x2e4] ss:$8 sps:$4 sm:$0xff]  }
 0x895   :  { %4353 = vmatpush2.bf16.msra.mxu0 %v7535_v16  ;;  %4389 = vmatprep.subr.bf16.mxu1 %v7585_v27  ;;  %v7622_v27 = vld [vmem:[%s10451_s12 + $0x2e0] ss:$8 sps:$4 sm:$0xff]  }
 0x896   :  { %4354 = vmatprep.subr.bf16.mxu0 %v7540_v9  ;;  %v7582_v9 = vld [vmem:[%s10451_s12 + $0x254] ss:$8 sps:$4 sm:$0xff]  }
 0x898   :  { %4390 = vmatpush1.bf16.msra.mxu1 %v7583_v40  ;;  %v7630_v40 = vld [vmem:[%s10451_s12 + $0x2d4] ss:$8 sps:$4 sm:$0xff]  }
 0x899   :  { %4355 = vmatpush2.bf16.msra.mxu0 %v7538_v11  ;;  %4391 = vmatprep.subr.bf16.mxu1 %v7591_v36  ;;  %v7628_v36 = vld [vmem:[%s10451_s12 + $0x2d0] ss:$8 sps:$4 sm:$0xff]  }
 0x89a   :  { %4356 = vmatprep.subr.bf16.mxu0 %v7543_v55 }
 0x89c   :  { %4392 = vmatpush2.bf16.msra.mxu1 %v7589_v15  ;;  %v7636_v15 = vld [vmem:[%s10451_s12 + $0x2c4] ss:$8 sps:$4 sm:$0xff]  }
 0x89d   :  { %4357 = vmatpush2.bf16.msra.mxu0 %v7541_v12  ;;  %4393 = vmatprep.subr.bf16.mxu1 %v7597_v18  ;;  %v7580_v12 = vld [vmem:[%s10451_s12 + $0x250] ss:$8 sps:$4 sm:$0xff]   ;;  %v7634_v18 = vld [vmem:[%s10451_s12 + $0x2c0] ss:$8 sps:$4 sm:$0xff]  }
 0x89e   :  { %4358 = vmatprep.subr.bf16.mxu0 %v7546_v13 }
 0x8a0   :  { %4394 = vmatpush2.bf16.msra.mxu1 %v7595_v29  ;;  %v7639_v29 = vld [vmem:[%s10451_s12 + $0x2b4] ss:$8 sps:$4 sm:$0xff]  }
 0x8a1   :  { %4359 = vmatpush2.bf16.msra.mxu0 %v7544_v14  ;;  %4395 = vmatprep.subr.bf16.mxu1 %v7603_v30  ;;  %v7588_v14 = vld [vmem:[%s10451_s12 + $0x244] ss:$8 sps:$4 sm:$0xff]   ;;  %v7637_v30 = vld [vmem:[%s10451_s12 + $0x2b0] ss:$8 sps:$4 sm:$0xff]  }
 0x8a2   :  { %4360 = vmatprep.subr.bf16.mxu0 %v7549_v33 }
 0x8a4   :  { %4396 = vmatpush2.bf16.msra.mxu1 %v7601_v31  ;;  %v7645_v31 = vld [vmem:[%s10451_s12 + $0x2a4] ss:$8 sps:$4 sm:$0xff]  }
 0x8a5   :  { %4361 = vmatpush2.bf16.msra.mxu0 %v7547_v8  ;;  %4397 = vmatprep.subr.bf16.mxu1 %v7609_v39  ;;  %v7643_v39 = vld [vmem:[%s10451_s12 + $0x2a0] ss:$8 sps:$4 sm:$0xff]  }
 0x8a6   :  { %4362 = vmatprep.subr.bf16.mxu0 %v7552_v46 }
 0x8a8   :  { %4398 = vmatpush2.bf16.msra.mxu1 %v7607_v35  ;;  %v7651_v35 = vld [vmem:[%s10451_s12 + $0x294] ss:$8 sps:$4 sm:$0xff]  }
 0x8a9   :  { %4363 = vmatpush2.bf16.msra.mxu0 %v7550_v21  ;;  %4399 = vmatprep.subr.bf16.mxu1 %v7615_v38  ;;  %v7586_v21 = vld [vmem:[%s10451_s12 + $0x240] ss:$8 sps:$4 sm:$0xff]   ;;  %v7649_v38 = vld [vmem:[%s10451_s12 + $0x290] ss:$8 sps:$4 sm:$0xff]  }
 0x8aa   :  { %4418 = vmatprep.subr.bf16.mxu0 %v7570_v28 }
 0x8ac   :  { %4400 = vmatpush2.bf16.msra.mxu1 %v7613_v42  ;;  %v7657_v42 = vld [vmem:[%s10451_s12 + $0x284] ss:$8 sps:$4 sm:$0xff]  }
 0x8ad   :  { %4401 = vmatprep.subr.bf16.mxu1 %v7621_v37  ;;  %v7655_v37 = vld [vmem:[%s10451_s12 + $0x280] ss:$8 sps:$4 sm:$0xff]  }
 0x8b0   :  { %4402 = vmatpush2.bf16.msra.mxu1 %v7619_v10  ;;  %v7666_v10 = vld [vmem:[%s10451_s12 + $0x474] ss:$8 sps:$4 sm:$0xff]  }
 0x8b1   :  { %4403 = vmatprep.subr.bf16.mxu1 %v7627_v48 }
 0x8b4   :  { %4404 = vmatpush2.bf16.msra.mxu1 %v7625_v45 }
 0x8b5   :  { %4405 = vmatprep.subr.bf16.mxu1 %v7633_v5 }
 0x8b8   :  { %4406 = vmatpush2.bf16.msra.mxu1 %v7631_v51 }
 0x8b9   :  { %4461 = vmatprep.subr.bf16.mxu1 %v7642_v58 }
 0x923   :  { %v3024_v52 = vpop.f32.mrf.mxu1  ;;  %v3121_v56 = vpop.f32.mrf.mxu0 }
 0x925   :  { %v3026_v59 = vpop.f32.mrf.mxu1  ;;  %v3123_v62 = vpop.f32.mrf.mxu0 }
 0x927   :  { %v3028_v57 = vpop.f32.mrf.mxu1  ;;  %v3125_v63 = vpop.f32.mrf.mxu0 }
 0x928   :  { %v7189_v49 = vpack.i.bf16 %v3125_v63, %v3121_v56  ;;  %v3310_v4 = vpack.c.bf16 %v3028_v57, %v3024_v52  ;;  %v7640_v57 = vld [vmem:[%s10451_s12 + $0x370] ss:$8 sps:$4 sm:$0xff]  }
 0x929   :  { %v3030_v2 = vpop.f32.mrf.mxu1  ;;  %v3127_v46 = vpop.f32.mrf.mxu0 }
 0x92a   :  { %v3311_v0 = vpack.c.bf16 %v3030_v2, %v3026_v59  ;;  %7190 = vrot.lane.b32.xlu0 %v7189_v49, %s7894_s8  ;;  %v7648_v49 = vld [vmem:[%s10451_s12 + $0x364] ss:$8 sps:$4 sm:$0xff]   ;;  %v7646_v2 = vld [vmem:[%s10451_s12 + $0x360] ss:$8 sps:$4 sm:$0xff]  }
 0x92b   :  { %v9522_v44 = vpop.f32.mrf.mxu1  ;;  %v3218_v48 = vpop.f32.mrf.mxu0 }
 0x92c   :  { %4364 = vmatprep.mubr.bf16.mxu0 %v3311_v0  ;;  %v7654_v0 = vld [vmem:[%s10451_s12 + $0x354] ss:$8 sps:$4 sm:$0xff]  }
 0x92d   :  { %v9527_v6 = vpop.f32.mrf.mxu1  ;;  %4365 = vmatmul.mubr.bf16.vlgmr.msra.gmra.mxu0 %v3310_v4  ;;  %v9628_v45 = vpop.f32.mrf.mxu0 }
 0x92e   :  { %4419 = vmatpush1.bf16.msra.mxu0 %v7568_v3 }
 0x92f   :  { %v9532_v16 = vpop.f32.mrf.mxu1  ;;  %4420 = vmatprep.subr.bf16.mxu0 %v7576_v34  ;;  %v3222_v59 = vpop.f32.mrf.mxu0  ;;  %v7660_v34 = vld [vmem:[%s10451_s12 + $0x344] ss:$8 sps:$4 sm:$0xff]  }
 0x930   :  { %v3312_v11 = vpack.c.bf16 %v9532_v16, %v9522_v44  ;;  %v3317_v63 = vpack.c.bf16 %v3222_v59, %v3218_v48  ;;  %v7652_v44 = vld [vmem:[%s10451_s12 + $0x350] ss:$8 sps:$4 sm:$0xff]   ;;  %v7708_v48 = vld [vmem:[%s10451_s12 + $0x404] ss:$8 sps:$4 sm:$0xff]  }
 0x931   :  { %v9539_v55 = vpop.f32.mrf.mxu1  ;;  %v7712_v59 = vld [vmem:[%s10451_s12 + $0x4f0] ss:$8 sps:$4 sm:$0xff]  }
 0x932   :  { %4421 = vmatpush1.bf16.msra.mxu0 %v7574_v7 }
 0x933   :  { %v3164_v13 = vpop.f32.mrf.mxu1  ;;  %4422 = vmatprep.subr.bf16.mxu0 %v7582_v9 }
 0x934   :  { %v7194_v8 = vpack.i.bf16 %v3164_v13, %v3123_v62  ;;  %v7663_v13 = vld [vmem:[%s10451_s12 + $0x334] ss:$8 sps:$4 sm:$0xff]  }
 0x935   :  { %v3166_v33 = vpop.f32.mrf.mxu1 }
 0x936   :  { %7195 = vrot.lane.b32.xlu1 %v7194_v8, %s7894_s8  ;;  %4423 = vmatpush1.bf16.msra.mxu0 %v7580_v12  ;;  %v7658_v12 = vld [vmem:[%s10451_s12 + $0x340] ss:$8 sps:$4 sm:$0xff]  }
 0x937   :  { %v3168_v19 = vpop.f32.mrf.mxu1  ;;  %4424 = vmatprep.subr.bf16.mxu0 %v7588_v14 }
 0x938   :  { %v7199_v24 = vpack.i.bf16 %v3168_v19, %v3127_v46 }
 0x939   :  { %v3170_v43 = vpop.f32.mrf.mxu1 }
 0x93a   :  { %v7204_v28 = vpack.i.bf16 %v3170_v43, %v3166_v33  ;;  %7200 = vrot.lane.b32.xlu0 %v7199_v24, %s7894_s8  ;;  %4425 = vmatpush1.bf16.msra.mxu0 %v7586_v21  ;;  %v7664_v24 = vld [vmem:[%s10451_s12 + $0x470] ss:$8 sps:$4 sm:$0xff]  }
 0x93b   :  { %4426 = vmatprep.subr.bf16.mxu0 %v7594_v17  ;;  %v3261_v3 = vpop.f32.mrf.mxu1 }
 0x93c   :  { %7205 = vrot.lane.b32.xlu1 %v7204_v28, %s7894_s8  ;;  %v7661_v28 = vld [vmem:[%s10451_s12 + $0x330] ss:$8 sps:$4 sm:$0xff]  }
 0x93d   :  { %v9659_v16 = vpop.f32.mrf.mxu1 }
 0x93e   :  { %4427 = vmatpush1.bf16.msra.mxu0 %v7592_v20  ;;  %v7672_v20 = vld [vmem:[%s10451_s12 + $0x464] ss:$8 sps:$4 sm:$0xff]  }
 0x93f   :  { %4428 = vmatprep.subr.bf16.mxu0 %v7600_v41  ;;  %v3265_v46 = vpop.f32.mrf.mxu1  ;;  %v7669_v41 = vld [vmem:[%s10451_s12 + $0x324] ss:$8 sps:$4 sm:$0xff]  }
 0x940   :  { %v3319_v43 = vpack.c.bf16 %v3265_v46, %v3261_v3  ;;  %v7723_v3 = vld [vmem:[%s10451_s12 + $0x394] ss:$8 sps:$4 sm:$0xff]  }
 0x941   :  { %v7738_v46 = vld [vmem:[%s10451_s12 + $0x534] ss:$8 sps:$4 sm:$0xff]  }
 0x942   :  { %4429 = vmatpush1.bf16.msra.mxu0 %v7598_v47  ;;  %v7670_v47 = vld [vmem:[%s10451_s12 + $0x460] ss:$8 sps:$4 sm:$0xff]  }
 0x943   :  { %4430 = vmatprep.subr.bf16.mxu0 %v7606_v26  ;;  %v7667_v26 = vld [vmem:[%s10451_s12 + $0x320] ss:$8 sps:$4 sm:$0xff]  }
 0x946   :  { %4431 = vmatpush1.bf16.msra.mxu0 %v7604_v60  ;;  %v7678_v60 = vld [vmem:[%s10451_s12 + $0x454] ss:$8 sps:$4 sm:$0xff]  }
 0x947   :  { %4432 = vmatprep.subr.bf16.mxu0 %v7612_v22  ;;  %v7675_v22 = vld [vmem:[%s10451_s12 + $0x314] ss:$8 sps:$4 sm:$0xff]  }
 0x94a   :  { %4433 = vmatpush1.bf16.msra.mxu0 %v7610_v23  ;;  %v7676_v23 = vld [vmem:[%s10451_s12 + $0x450] ss:$8 sps:$4 sm:$0xff]  }
 0x94b   :  { %4434 = vmatprep.subr.bf16.mxu0 %v7618_v25  ;;  %v7673_v25 = vld [vmem:[%s10451_s12 + $0x310] ss:$8 sps:$4 sm:$0xff]  }
 0x94e   :  { %4435 = vmatpush2.bf16.msra.mxu0 %v7616_v61  ;;  %v7684_v61 = vld [vmem:[%s10451_s12 + $0x444] ss:$8 sps:$4 sm:$0xff]  }
 0x94f   :  { %4436 = vmatprep.subr.bf16.mxu0 %v7624_v1  ;;  %v7681_v1 = vld [vmem:[%s10451_s12 + $0x304] ss:$8 sps:$4 sm:$0xff]  }
 0x952   :  { %4437 = vmatpush2.bf16.msra.mxu0 %v7622_v27  ;;  %v7682_v27 = vld [vmem:[%s10451_s12 + $0x440] ss:$8 sps:$4 sm:$0xff]  }
 0x953   :  { %4438 = vmatprep.subr.bf16.mxu0 %v7630_v40  ;;  %v7679_v40 = vld [vmem:[%s10451_s12 + $0x300] ss:$8 sps:$4 sm:$0xff]  }
 0x956   :  { %4439 = vmatpush2.bf16.msra.mxu0 %v7628_v36  ;;  %v7690_v36 = vld [vmem:[%s10451_s12 + $0x434] ss:$8 sps:$4 sm:$0xff]  }
 0x957   :  { %4440 = vmatprep.subr.bf16.mxu0 %v7636_v15  ;;  %v7687_v15 = vld [vmem:[%s10451_s12 + $0x3f4] ss:$8 sps:$4 sm:$0xff]  }
 0x95a   :  { %4441 = vmatpush2.bf16.msra.mxu0 %v7634_v18  ;;  %v7688_v18 = vld [vmem:[%s10451_s12 + $0x430] ss:$8 sps:$4 sm:$0xff]  }
 0x95b   :  { %4442 = vmatprep.subr.bf16.mxu0 %v7639_v29  ;;  %v7685_v29 = vld [vmem:[%s10451_s12 + $0x3f0] ss:$8 sps:$4 sm:$0xff]  }
 0x95e   :  { %4443 = vmatpush2.bf16.msra.mxu0 %v7637_v30  ;;  %v7696_v30 = vld [vmem:[%s10451_s12 + $0x424] ss:$8 sps:$4 sm:$0xff]  }
 0x95f   :  { %4444 = vmatprep.subr.bf16.mxu0 %v7645_v31  ;;  %v7693_v31 = vld [vmem:[%s10451_s12 + $0x3e4] ss:$8 sps:$4 sm:$0xff]  }
 0x962   :  { %4445 = vmatpush2.bf16.msra.mxu0 %v7643_v39  ;;  %v7694_v39 = vld [vmem:[%s10451_s12 + $0x420] ss:$8 sps:$4 sm:$0xff]  }
 0x963   :  { %4446 = vmatprep.subr.bf16.mxu0 %v7651_v35  ;;  %v7691_v35 = vld [vmem:[%s10451_s12 + $0x3e0] ss:$8 sps:$4 sm:$0xff]  }
 0x966   :  { %4447 = vmatpush2.bf16.msra.mxu0 %v7649_v38  ;;  %v7702_v38 = vld [vmem:[%s10451_s12 + $0x414] ss:$8 sps:$4 sm:$0xff]  }
 0x967   :  { %4448 = vmatprep.subr.bf16.mxu0 %v7657_v42  ;;  %v7699_v42 = vld [vmem:[%s10451_s12 + $0x3d4] ss:$8 sps:$4 sm:$0xff]  }
 0x96a   :  { %4449 = vmatpush2.bf16.msra.mxu0 %v7655_v37  ;;  %v7700_v37 = vld [vmem:[%s10451_s12 + $0x410] ss:$8 sps:$4 sm:$0xff]  }
 0x96b   :  { %4504 = vmatprep.subr.bf16.mxu0 %v7666_v10  ;;  %v7697_v10 = vld [vmem:[%s10451_s12 + $0x3d0] ss:$8 sps:$4 sm:$0xff]  }
 0x99c   :  { %v7191_v51 = vpop.permute.xlu0 %7190 }
 0x99d   :  { %v7193_v5 = vunpack.i.h.bf16 %v7191_v51  ;;  %v7192_v52 = vunpack.i.l.bf16 %v7191_v51  ;;  %v7705_v51 = vld [vmem:[%s10451_s12 + $0x3c4] ss:$8 sps:$4 sm:$0xff]  }
 0x99f   :  { %v3308_v56 = vsel %vm2449_vm11, %v9527_v6, %v7192_v52  ;;  %v3309_v58 = vsel %vm2449_vm11, %v9539_v55, %v7193_v5 }
 0x9a0   :  { %v3313_v62 = vpack.c.bf16 %v3309_v58, %v3308_v56  ;;  %v7714_v56 = vld [vmem:[%s10451_s12 + $0x4f4] ss:$8 sps:$4 sm:$0xff]  }
 0x9a1   :  { %v7711_v58 = vld [vmem:[%s10451_s12 + $0x3b4] ss:$8 sps:$4 sm:$0xff]  }
 0x9a2   :  { %4407 = vmatprep.mubr.bf16.mxu1 %v3313_v62  ;;  %v7709_v62 = vld [vmem:[%s10451_s12 + $0x3b0] ss:$8 sps:$4 sm:$0xff]  }
 0x9a3   :  { %4408 = vmatmul.mubr.bf16.vlgmr.msra.gmra.mxu1 %v3312_v11 }
 0x9a4   :  { %4462 = vmatpush1.bf16.msra.mxu1 %v7640_v57  ;;  %4493 = vmatprep.mubr.bf16.mxu1 %v3317_v63  ;;  %v7720_v57 = vld [vmem:[%s10451_s12 + $0x4e4] ss:$8 sps:$4 sm:$0xff]  }
 0x9a5   :  { %4463 = vmatprep.subr.bf16.mxu1 %v7648_v49  ;;  %v7717_v63 = vld [vmem:[%s10451_s12 + $0x3a4] ss:$8 sps:$4 sm:$0xff]   ;;  %v7718_v49 = vld [vmem:[%s10451_s12 + $0x4e0] ss:$8 sps:$4 sm:$0xff]  }
 0x9a8   :  { %v9649_v4 = vpop.permute.xlu1 %7195  ;;  %4464 = vmatpush1.bf16.msra.mxu1 %v7646_v2  ;;  %v7715_v2 = vld [vmem:[%s10451_s12 + $0x3a0] ss:$8 sps:$4 sm:$0xff]  }
 0x9a9   :  { %4465 = vmatprep.subr.bf16.mxu1 %v7654_v0  ;;  %v7198_v6 = vunpack.i.h.bf16 %v9649_v4  ;;  %v7197_v7 = vunpack.i.l.bf16 %v9649_v4  ;;  %v7726_v0 = vld [vmem:[%s10451_s12 + $0x4d4] ss:$8 sps:$4 sm:$0xff]   ;;  %v7744_v4 = vld [vmem:[%s10451_s12 + $0x524] ss:$8 sps:$4 sm:$0xff]  }
 0x9ab   :  { %v3294_v14 = vsel %vm2449_vm11, %v7192_v52, %v7197_v7  ;;  %v3295_v33 = vsel %vm2449_vm11, %v7197_v7, %v7198_v6  ;;  %v7703_v52 = vld [vmem:[%s10451_s12 + $0x3c0] ss:$8 sps:$4 sm:$0xff]   ;;  %v7721_v7 = vld [vmem:[%s10451_s12 + $0x390] ss:$8 sps:$4 sm:$0xff]  }
 0x9ac   :  { %v9661_v9 = vpop.permute.xlu0 %7200  ;;  %4466 = vmatpush1.bf16.msra.mxu1 %v7652_v44 }
 0x9ad   :  { %v7203_v11 = vunpack.i.h.bf16 %v9661_v9  ;;  %v7202_v55 = vunpack.i.l.bf16 %v9661_v9  ;;  %4467 = vmatprep.subr.bf16.mxu1 %v7660_v34  ;;  %v7724_v34 = vld [vmem:[%s10451_s12 + $0x4d0] ss:$8 sps:$4 sm:$0xff]   ;;  %v7741_v9 = vld [vmem:[%s10451_s12 + $0x4a4] ss:$8 sps:$4 sm:$0xff]  }
 0x9ae   :  { %v7206_v44 = vpop.permute.xlu1 %7205 }
 0x9af   :  { %v3297_v8 = vsel %vm2449_vm11, %v7193_v5, %v7202_v55  ;;  %v3298_v21 = vsel %vm2449_vm11, %v7202_v55, %v7203_v11  ;;  %v7706_v5 = vld [vmem:[%s10451_s12 + $0x400] ss:$8 sps:$4 sm:$0xff]   ;;  %v7732_v55 = vld [vmem:[%s10451_s12 + $0x4c4] ss:$8 sps:$4 sm:$0xff]  }
 0x9b0   :  { %v3314_v19 = vpack.c.bf16 %v3297_v8, %v3294_v14  ;;  %v3315_v17 = vpack.c.bf16 %v3298_v21, %v3295_v33  ;;  %4468 = vmatpush1.bf16.msra.mxu1 %v7658_v12  ;;  %v7729_v12 = vld [vmem:[%s10451_s12 + $0x384] ss:$8 sps:$4 sm:$0xff]   ;;  %v7207_v14 = vunpack.i.l.bf16 %v7206_v44  ;;  %v7730_v8 = vld [vmem:[%s10451_s12 + $0x4c0] ss:$8 sps:$4 sm:$0xff]   ;;  %v7735_v21 = vld [vmem:[%s10451_s12 + $0x4b4] ss:$8 sps:$4 sm:$0xff]  }
 0x9b1   :  { %4469 = vmatprep.subr.bf16.mxu1 %v7663_v13  ;;  %v7208_v13 = vunpack.i.h.bf16 %v7206_v44  ;;  %v7727_v33 = vld [vmem:[%s10451_s12 + $0x380] ss:$8 sps:$4 sm:$0xff]  }
 0x9b2   :  { %4450 = vmatprep.mubr.bf16.mxu0 %v3315_v17  ;;  %v3296_v17 = vsel %vm2449_vm11, %v7198_v6, %v7207_v14  ;;  %v7739_v6 = vld [vmem:[%s10451_s12 + $0x4a0] ss:$8 sps:$4 sm:$0xff]  }
 0x9b3   :  { %4451 = vmatmul.mubr.bf16.vlgmr.msra.gmra.mxu0 %v3314_v19  ;;  %v3299_v19 = vsel %vm2449_vm11, %v7203_v11, %v7208_v13 }
 0x9b4   :  { %4505 = vmatpush1.bf16.msra.mxu0 %v7664_v24  ;;  %4536 = vmatprep.mubr.bf16.mxu0 %v3319_v43  ;;  %v7733_v24 = vld [vmem:[%s10451_s12 + $0x4b0] ss:$8 sps:$4 sm:$0xff]   ;;  %v3316_v11 = vpack.c.bf16 %v3299_v19, %v3296_v17 }
 0x9b5   :  { %4470 = vmatpush1.bf16.msra.mxu1 %v7661_v28  ;;  %4506 = vmatprep.subr.bf16.mxu0 %v7672_v20  ;;  %v7736_v43 = vld [vmem:[%s10451_s12 + $0x530] ss:$8 sps:$4 sm:$0xff]   ;;  %v7742_v28 = vld [vmem:[%s10451_s12 + $0x520] ss:$8 sps:$4 sm:$0xff]   ;;  %v7747_v20 = vld [vmem:[%s10451_s12 + $0x494] ss:$8 sps:$4 sm:$0xff]  }
 0x9b6   :  { %4471 = vmatprep.subr.bf16.mxu1 %v7669_v41  ;;  %v7750_v41 = vld [vmem:[%s10451_s12 + $0x514] ss:$8 sps:$4 sm:$0xff]  }
 0x9b8   :  { %4507 = vmatpush1.bf16.msra.mxu0 %v7670_v47  ;;  %v7745_v47 = vld [vmem:[%s10451_s12 + $0x490] ss:$8 sps:$4 sm:$0xff]  }
 0x9b9   :  { %4472 = vmatpush1.bf16.msra.mxu1 %v7667_v26  ;;  %4508 = vmatprep.subr.bf16.mxu0 %v7678_v60  ;;  %v7748_v26 = vld [vmem:[%s10451_s12 + $0x510] ss:$8 sps:$4 sm:$0xff]   ;;  %v7753_v60 = vld [vmem:[%s10451_s12 + $0x484] ss:$8 sps:$4 sm:$0xff]  }
 0x9ba   :  { %4473 = vmatprep.subr.bf16.mxu1 %v7675_v22  ;;  %v7756_v22 = vld [vmem:[%s10451_s12 + $0x504] ss:$8 sps:$4 sm:$0xff]  }
 0x9bc   :  { %4509 = vmatpush1.bf16.msra.mxu0 %v7676_v23  ;;  %v7751_v23 = vld [vmem:[%s10451_s12 + $0x480] ss:$8 sps:$4 sm:$0xff]  }
 0x9bd   :  { %4474 = vmatpush1.bf16.msra.mxu1 %v7673_v25  ;;  %4510 = vmatprep.subr.bf16.mxu0 %v7684_v61  ;;  %v7754_v25 = vld [vmem:[%s10451_s12 + $0x500] ss:$8 sps:$4 sm:$0xff]   ;;  %v3224_v61 = vpop.f32.mrf.mxu0 }
 0x9be   :  { %4475 = vmatprep.subr.bf16.mxu1 %v7681_v1  ;;  %v3267_v1 = vpop.f32.mrf.mxu1 }
 0x9c0   :  { %4511 = vmatpush1.bf16.msra.mxu0 %v7682_v27  ;;  %v3318_v27 = vpack.c.bf16 %v3224_v61, %v9628_v45  ;;  %v4645_v45 = vld [vmem:[%s10452_s13 + $0x68] sm:$0xff] }
 0x9c1   :  { %4476 = vmatpush1.bf16.msra.mxu1 %v7679_v40  ;;  %4512 = vmatprep.subr.bf16.mxu0 %v7690_v36  ;;  %v3320_v40 = vpack.c.bf16 %v3267_v1, %v9659_v16  ;;  %v4647_v36 = vld [vmem:[%s10452_s13 + $0x78] sm:$0xff]  ;;  %v4644_v16 = vld [vmem:[%s10452_s13 + $0x60] sm:$0xff] }
 0x9c2   :  { %4477 = vmatprep.subr.bf16.mxu1 %v7687_v15  ;;  %v4646_v15 = vld [vmem:[%s10452_s13 + $0x70] sm:$0xff] }
 0x9c4   :  { %4513 = vmatpush1.bf16.msra.mxu0 %v7688_v18  ;;  %v4643_v18 = vld [vmem:[%s10452_s13 + $0x58] sm:$0xff] }
 0x9c5   :  { %4478 = vmatpush2.bf16.msra.mxu1 %v7685_v29  ;;  %4514 = vmatprep.subr.bf16.mxu0 %v7696_v30  ;;  %v4642_v29 = vld [vmem:[%s10452_s13 + $0x50] sm:$0xff]  ;;  %v4641_v30 = vld [vmem:[%s10452_s13 + $0x48] sm:$0xff] }
 0x9c6   :  { %4479 = vmatprep.subr.bf16.mxu1 %v7693_v31  ;;  %v4640_v31 = vld [vmem:[%s10452_s13 + $0x40] sm:$0xff] }
 0x9c8   :  { %4515 = vmatpush1.bf16.msra.mxu0 %v7694_v39  ;;  %v4639_v39 = vld [vmem:[%s10452_s13 + $0x38] sm:$0xff] }
 0x9c9   :  { %4480 = vmatpush2.bf16.msra.mxu1 %v7691_v35  ;;  %4516 = vmatprep.subr.bf16.mxu0 %v7702_v38  ;;  %v4638_v35 = vld [vmem:[%s10452_s13 + $0x30] sm:$0xff]  ;;  %v4637_v38 = vld [vmem:[%s10452_s13 + $0x28] sm:$0xff] }
 0x9ca   :  { %4481 = vmatprep.subr.bf16.mxu1 %v7699_v42  ;;  %v4636_v42 = vld [vmem:[%s10452_s13 + $0x20] sm:$0xff] }
 0x9cc   :  { %4517 = vmatpush1.bf16.msra.mxu0 %v7700_v37  ;;  %v4635_v37 = vld [vmem:[%s10452_s13 + $0x18] sm:$0xff] }
 0x9cd   :  { %4482 = vmatpush2.bf16.msra.mxu1 %v7697_v10  ;;  %4518 = vmatprep.subr.bf16.mxu0 %v7708_v48  ;;  %v4634_v10 = vld [vmem:[%s10452_s13 + $0x10] sm:$0xff]  ;;  %v4633_v48 = vld [vmem:[%s10452_s13 + $0x8] sm:$0xff] }
 0x9ce   :  { %4483 = vmatprep.subr.bf16.mxu1 %v7705_v51  ;;  %v4632_v51 = vld [vmem:[%s10452_s13] sm:$0xff] }
 0x9d0   :  { %4519 = vmatpush1.bf16.msra.mxu0 %v7706_v5  ;;  %v4659_v5 = vld [vmem:[%s10452_s13 + $0xd8] sm:$0xff] }
 0x9d1   :  { %4484 = vmatpush2.bf16.msra.mxu1 %v7703_v52  ;;  %4520 = vmatprep.subr.bf16.mxu0 %v7714_v56  ;;  %v4658_v52 = vld [vmem:[%s10452_s13 + $0xd0] sm:$0xff]  ;;  %v4657_v56 = vld [vmem:[%s10452_s13 + $0xc8] sm:$0xff] }
 0x9d2   :  { %4485 = vmatprep.subr.bf16.mxu1 %v7711_v58  ;;  %v4656_v58 = vld [vmem:[%s10452_s13 + $0xc0] sm:$0xff] }
 0x9d4   :  { %4521 = vmatpush2.bf16.msra.mxu0 %v7712_v59  ;;  %v4655_v59 = vld [vmem:[%s10452_s13 + $0xb8] sm:$0xff] }
 0x9d5   :  { %4486 = vmatpush2.bf16.msra.mxu1 %v7709_v62  ;;  %4522 = vmatprep.subr.bf16.mxu0 %v7720_v57  ;;  %v4654_v62 = vld [vmem:[%s10452_s13 + $0xb0] sm:$0xff]  ;;  %v4653_v57 = vld [vmem:[%s10452_s13 + $0xa8] sm:$0xff] }
 0x9d6   :  { %4487 = vmatprep.subr.bf16.mxu1 %v7717_v63  ;;  %v4652_v63 = vld [vmem:[%s10452_s13 + $0xa0] sm:$0xff] }
 0x9d8   :  { %4523 = vmatpush2.bf16.msra.mxu0 %v7718_v49  ;;  %v4651_v49 = vld [vmem:[%s10452_s13 + $0x98] sm:$0xff] }
 0x9d9   :  { %4488 = vmatpush2.bf16.msra.mxu1 %v7715_v2  ;;  %4524 = vmatprep.subr.bf16.mxu0 %v7726_v0  ;;  %v4650_v2 = vld [vmem:[%s10452_s13 + $0x90] sm:$0xff]  ;;  %v4649_v0 = vld [vmem:[%s10452_s13 + $0x88] sm:$0xff] }
 0x9da   :  { %4489 = vmatprep.subr.bf16.mxu1 %v7723_v3  ;;  %v4648_v3 = vld [vmem:[%s10452_s13 + $0x80] sm:$0xff] }
 0x9dc   :  { %4525 = vmatpush2.bf16.msra.mxu0 %v7724_v34 }
 0x9dd   :  { %4490 = vmatpush2.bf16.msra.mxu1 %v7721_v7  ;;  %4526 = vmatprep.subr.bf16.mxu0 %v7732_v55 }
 0x9de   :  { %4491 = vmatprep.subr.bf16.mxu1 %v7729_v12 }
 0x9e0   :  { %4527 = vmatpush2.bf16.msra.mxu0 %v7730_v8 }
 0x9e1   :  { %4492 = vmatpush2.bf16.msra.mxu1 %v7727_v33  ;;  %4528 = vmatprep.subr.bf16.mxu0 %v7735_v21 }
 0x9e2   :  { %4555 = vmatprep.subr.bf16.mxu1 %v7738_v46 }
 0x9e4   :  { %4494 = vmatmul.mubr.bf16.vlgmr.msra.gmra.mxu1 %v3316_v11  ;;  %4529 = vmatpush2.bf16.msra.mxu0 %v7733_v24 }
 0x9e5   :  { %4556 = vmatpush1.bf16.msra.mxu1 %v7736_v43  ;;  %4530 = vmatprep.subr.bf16.mxu0 %v7741_v9 }
 0x9e6   :  { %4557 = vmatprep.subr.bf16.mxu1 %v7744_v4  ;;  %4579 = vmatprep.mubr.bf16.mxu1 %v7889_v32 }
 0x9e8   :  { %4531 = vmatpush2.bf16.msra.mxu0 %v7739_v6 }
 0x9e9   :  { %4558 = vmatpush1.bf16.msra.mxu1 %v7742_v28  ;;  %4532 = vmatprep.subr.bf16.mxu0 %v7747_v20 }
 0x9ea   :  { %4559 = vmatprep.subr.bf16.mxu1 %v7750_v41 }
 0x9ec   :  { %4533 = vmatpush2.bf16.msra.mxu0 %v7745_v47 }
 0x9ed   :  { %4560 = vmatpush1.bf16.msra.mxu1 %v7748_v26  ;;  %4534 = vmatprep.subr.bf16.mxu0 %v7753_v60  ;;  %v4366_v44 = vpop.f32.mrf.mxu0 }
 0x9ee   :  { %4561 = vmatprep.subr.bf16.mxu1 %v7756_v22 }
 0x9ef   :  { %v4368_v7 = vpop.f32.mrf.mxu0 }
 0x9f0   :  { %4535 = vmatpush2.bf16.msra.mxu0 %v7751_v23 }
 0x9f1   :  { %4562 = vmatpush1.bf16.msra.mxu1 %v7754_v25  ;;  %v4370_v12 = vpop.f32.mrf.mxu0 }
 0x9f2   :  { %4663 = vmatprep.subr.mxu1 %v7891_v50 }
 0x9f3   :  { %4537 = vmatmul.mubr.bf16.vlgmr.msra.gmra.mxu0 %v3318_v27  ;;  %v4372_v14 = vpop.f32.mrf.mxu0 }
 0x9f4   :  { %6769 = vmatmul.mubr.msk.bf16.vlgmr.msra.gmra.mxu1 %vm2449_vm11, %v3320_v40  ;;  %4812 = vmatprep.mubr.bf16.mxu0 %v7889_v32 }
 0x9f5   :  { %4664 = vmatpush1.msra.mxu1 %v4647_v36 }
 0x9f6   :  { %4665 = vmatprep.subr.mxu1 %v7891_v50 }
 0x9f7   :  { %4666 = vmatpush1.msra.mxu1 %v4646_v15 }
 0x9f8   :  { %4667 = vmatprep.subr.mxu1 %v7891_v50 }
 0x9f9   :  { %4668 = vmatpush1.msra.mxu1 %v4645_v45 }
 0x9fa   :  { %4669 = vmatprep.subr.mxu1 %v7891_v50 }
 0x9fb   :  { %4670 = vmatpush1.msra.mxu1 %v4644_v16 }
 0x9fc   :  { %4671 = vmatprep.subr.mxu1 %v7891_v50 }
 0x9fd   :  { %4672 = vmatpush1.msra.mxu1 %v4643_v18 }
 0x9fe   :  { %4673 = vmatprep.subr.mxu1 %v7891_v50 }
 0x9ff   :  { %4674 = vmatpush1.msra.mxu1 %v4642_v29 }
 0xa00   :  { %4675 = vmatprep.subr.mxu1 %v7891_v50 }
 0xa01   :  { %4676 = vmatpush1.msra.mxu1 %v4641_v30 }
 0xa02   :  { %4677 = vmatprep.subr.mxu1 %v7891_v50 }
 0xa03   :  { %4678 = vmatpush1.msra.mxu1 %v4640_v31 }
 0xa04   :  { %4679 = vmatprep.subr.mxu1 %v7891_v50 }
 0xa05   :  { %4680 = vmatpush1.msra.mxu1 %v4639_v39 }
 0xa06   :  { %4681 = vmatprep.subr.mxu1 %v7891_v50 }
 0xa07   :  { %4682 = vmatpush1.msra.mxu1 %v4638_v35 }
 0xa08   :  { %4683 = vmatprep.subr.mxu1 %v7891_v50 }
 0xa09   :  { %4684 = vmatpush1.msra.mxu1 %v4637_v38 }
 0xa0a   :  { %4685 = vmatprep.subr.mxu1 %v7891_v50 }
 0xa0b   :  { %4686 = vmatpush1.msra.mxu1 %v4636_v42 }
 0xa0c   :  { %4687 = vmatprep.subr.mxu1 %v7891_v50 }
 0xa0d   :  { %4688 = vmatpush1.msra.mxu1 %v4635_v37 }
 0xa0e   :  { %4689 = vmatprep.subr.mxu1 %v7891_v50 }
 0xa0f   :  { %4690 = vmatpush1.msra.mxu1 %v4634_v10 }
 0xa10   :  { %4691 = vmatprep.subr.mxu1 %v7891_v50 }
 0xa11   :  { %4692 = vmatpush1.msra.mxu1 %v4633_v48 }
 0xa12   :  { %4693 = vmatprep.subr.mxu1 %v7891_v50 }
 0xa13   :  { %4694 = vmatpush1.msra.mxu1 %v4632_v51 }
 0xa14   :  { %4703 = vmatprep.subr.mxu1 %v7891_v50 }
 0xa15   :  { %4704 = vmatpush2.msra.mxu1 %v4659_v5 }
 0xa16   :  { %4705 = vmatprep.subr.mxu1 %v7891_v50 }
 0xa17   :  { %4706 = vmatpush2.msra.mxu1 %v4658_v52 }
 0xa18   :  { %4707 = vmatprep.subr.mxu1 %v7891_v50 }
 0xa19   :  { %4708 = vmatpush2.msra.mxu1 %v4657_v56 }
 0xa1a   :  { %4709 = vmatprep.subr.mxu1 %v7891_v50 }
 0xa1b   :  { %4710 = vmatpush2.msra.mxu1 %v4656_v58 }
 0xa1c   :  { %4711 = vmatprep.subr.mxu1 %v7891_v50 }
 0xa1d   :  { %4712 = vmatpush2.msra.mxu1 %v4655_v59 }
 0xa1e   :  { %4713 = vmatprep.subr.mxu1 %v7891_v50 }
 0xa1f   :  { %4714 = vmatpush2.msra.mxu1 %v4654_v62 }
 0xa20   :  { %4715 = vmatprep.subr.mxu1 %v7891_v50 }
 0xa21   :  { %4716 = vmatpush2.msra.mxu1 %v4653_v57 }
 0xa22   :  { %4717 = vmatprep.subr.mxu1 %v7891_v50 }
 0xa23   :  { %4718 = vmatpush2.msra.mxu1 %v4652_v63 }
 0xa24   :  { %4719 = vmatprep.subr.mxu1 %v7891_v50 }
 0xa25   :  { %4720 = vmatpush2.msra.mxu1 %v4651_v49 }
 0xa26   :  { %4721 = vmatprep.subr.mxu1 %v7891_v50 }
 0xa27   :  { %4722 = vmatpush2.msra.mxu1 %v4650_v2 }
 0xa28   :  { %4723 = vmatprep.subr.mxu1 %v7891_v50 }
 0xa29   :  { %4724 = vmatpush2.msra.mxu1 %v4649_v0 }
 0xa2a   :  { %4725 = vmatprep.subr.mxu1 %v7891_v50 }
 0xa2b   :  { %4726 = vmatpush2.msra.mxu1 %v4648_v3 }
 0xa63   :  { %v4409_v34 = vpop.f32.mrf.mxu1 }
 0xa64   :  { %v4410_v43 = vadd.f32 %v4409_v34, %v4366_v44 }
 0xa65   :  { %v4411_v55 = vpop.f32.mrf.mxu1 }
 0xa66   :  { %v4412_v9 = vadd.f32 %v4411_v55, %v4368_v7 }
 0xa67   :  { %v4413_v13 = vpop.f32.mrf.mxu1 }
 0xa68   :  { %v4414_v6 = vadd.f32 %v4413_v13, %v4370_v12 }
 0xa69   :  { %v4415_v8 = vpop.f32.mrf.mxu1 }
 0xa6a   :  { %v4416_v26 = vadd.f32 %v4415_v8, %v4372_v14 }
 0xa73   :  { %v4452_v33 = vpop.f32.mrf.mxu0 }
 0xa74   :  { %v4453_v11 = vadd.f32 %v4452_v33, %v4410_v43 }
 0xa75   :  { %v4454_v46 = vpop.f32.mrf.mxu0 }
 0xa76   :  { %v4455_v28 = vadd.f32 %v4454_v46, %v4412_v9 }
 0xa77   :  { %v4456_v17 = vpop.f32.mrf.mxu0 }
 0xa78   :  { %v4457_v60 = vadd.f32 %v4456_v17, %v4414_v6 }
 0xa79   :  { %v4458_v4 = vpop.f32.mrf.mxu0 }
 0xa7a   :  { %v4459_v1 = vadd.f32 %v4458_v4, %v4416_v26 }
 0xaa4   :  { %v4495_v21 = vpop.f32.mrf.mxu1 }
 0xaa5   :  { %v4496_v41 = vadd.f32 %v4495_v21, %v4453_v11 }
 0xaa6   :  { %v4497_v19 = vpop.f32.mrf.mxu1 }
 0xaa7   :  { %v4498_v22 = vadd.f32 %v4497_v19, %v4455_v28 }
 0xaa8   :  { %v4499_v24 = vpop.f32.mrf.mxu1 }
 0xaa9   :  { %v4500_v27 = vadd.f32 %v4499_v24, %v4457_v60  ;;  %v7759_v60 = vld [vmem:[%s10453_s14 + $0x14] ss:$8 sps:$4 sm:$0xff]  }
 0xaaa   :  { %v4501_v20 = vpop.f32.mrf.mxu1  ;;  %4792 = vmatprep.subr.bf16.mxu0 %v7759_v60  ;;  %v7780_v60 = vld [vmem:[%s10456_s17 + $0xe0] sm:$0xff]  }
 0xaab   :  { %v4502_v45 = vadd.f32 %v4501_v20, %v4459_v1 }
 0xab3   :  { %v4538_v47 = vpop.f32.mrf.mxu0 }
 0xab4   :  { %v4581_v23 = vpop.f32.mrf.mxu1  ;;  %v4539_v25 = vadd.f32 %v4538_v47, %v4496_v41 }
 0xab5   :  { %v4540_v61 = vpop.f32.mrf.mxu0 }
 0xab6   :  { %v4541_v40 = vadd.f32 %v4540_v61, %v4498_v22  ;;  %v4583_v36 = vpop.f32.mrf.mxu1  ;;  %v9990_v30 = vadd.f32 %v4581_v23, %v4539_v25  ;;  %v7757_v22 = vld [vmem:[%s10453_s14 + $0x10] ss:$8 sps:$4 sm:$0xff]   ;;  %v7762_v23 = vld [vmem:[%s10453_s14 + $0x4] ss:$8 sps:$4 sm:$0xff]   ;;  %v7760_v25 = vld [vmem:[%s10453_s14] ss:$8 sps:$4 sm:$0xff]  }
 0xab7   :  { %v4542_v15 = vpop.f32.mrf.mxu0  ;;  %4793 = vmatpush1.bf16.msra.mxu0 %v7757_v22  ;;  %v7773_v22 = vld [vmem:[%s10456_s17 + $0x20] sm:$0xff]  }
 0xab8   :  { %v9988_v16 = vadd.f32 %v4583_v36, %v4541_v40  ;;  %v4543_v18 = vadd.f32 %v4542_v15, %v4500_v27  ;;  %v4585_v29 = vpop.f32.mrf.mxu1  ;;  %v4609_v51 = vmul.f32 %v9990_v30, %v9990_v30  ;;  %4794 = vmatprep.subr.bf16.mxu0 %v7762_v23  ;;  %v7775_v23 = vld [vmem:[%s10456_s17 + $0x58] sm:$0xff]  }
 0xab9   :  { %v4544_v31 = vpop.f32.mrf.mxu0 }
 0xaba   :  { %v9992_v39 = vadd.f32 %v4585_v29, %v4543_v18  ;;  %v4545_v35 = vadd.f32 %v4544_v31, %v4502_v45  ;;  %v4587_v38 = vpop.f32.mrf.mxu1  ;;  %v4610_v42 = vmul.f32 %v9988_v16, %v9988_v16  ;;  %v4599_v52 = vsel %vm4598_vm14, %v9988_v16, 0.0  ;;  %v4733_v18 = vld [vmem:[%s10454_s15] sm:$0x1] }
 0xabb   :  { %4795 = vmatpush1.bf16.msra.mxu0 %v7760_v25  ;;  %v7782_v25 = vld [vmem:[%s10456_s17 + $0xa0] sm:$0xff]  }
 0xabc   :  { %v4590_v37 = vsel %vm459_vm4, %v9992_v39, 0.0  ;;  %v4611_v10 = vmul.f32 %v9992_v39, %v9992_v39  ;;  %v10000_v48 = vadd.f32 %v4587_v38, %v4545_v35  ;;  %v4621_v49 = vsel %vm4598_vm14, %v4610_v42, 0.0  ;;  %v4745_v35 = vld [vmem:[%s10454_s15 + $0x1] sm:$0x1]  ;;  %s7895_s15 = smov 96  }
 0xabd   :  { %v4591_v5 = vadd.f32 %v4590_v37, %v9990_v30 }
 0xabe   :  { %v4613_v56 = vsel %vm459_vm4, %v4611_v10, 0.0  ;;  %v4601_v58 = vsel %vm4600_vm15, %v10000_v48, 0.0  ;;  %v4612_v59 = vmul.f32 %v10000_v48, %v10000_v48 }
 0xabf   :  { %v4592_v62 = vrot.slane %v4591_v5, 4  ;;  %v4614_v57 = vadd.f32 %v4613_v56, %v4609_v51  ;;  %v4602_v63 = vadd.f32 %v4601_v58, %v4599_v52 }
 0xac0   :  { %v4622_v2 = vsel %vm4600_vm15, %v4612_v59, 0.0 }
 0xac1   :  { %v4593_v0 = vadd.f32 %v4592_v62, %v4591_v5  ;;  %v4615_v3 = vrot.slane %v4614_v57, 4  ;;  %v4603_v44 = vrot.slane %v4602_v63, 4  ;;  %v4623_v34 = vadd.f32 %v4622_v2, %v4621_v49 }
 0xac3   :  { %v4594_v7 = vrot.slane %v4593_v0, 2  ;;  %v4616_v55 = vadd.f32 %v4615_v3, %v4614_v57  ;;  %v4604_v12 = vadd.f32 %v4603_v44, %v4602_v63  ;;  %v4624_v13 = vrot.slane %v4623_v34, 4 }
 0xac5   :  { %v4605_v14 = vrot.slane %v4604_v12, 2  ;;  %v4625_v8 = vadd.f32 %v4624_v13, %v4623_v34  ;;  %v4617_v33 = vrot.slane %v4616_v55, 2  ;;  %v4595_v21 = vadd.f32 %v4594_v7, %v4593_v0 }
 0xac7   :  { %v4606_v46 = vadd.f32 %v4605_v14, %v4604_v12  ;;  %v4626_v19 = vrot.slane %v4625_v8, 2  ;;  %v4618_v17 = vadd.f32 %v4617_v33, %v4616_v55  ;;  %v4596_v11 = vrot.slane %v4595_v21, 1  ;;  %v6784_v33 = vld [vmem:[%s10455_s16 + $0x3] sm:$0x1] }
 0xac9   :  { %v4607_v24 = vrot.slane %v4606_v46, 1  ;;  %v4627_v43 = vadd.f32 %v4626_v19, %v4625_v8  ;;  %v4619_v9 = vrot.slane %v4618_v17, 1  ;;  %v4597_v41 = vadd.f32 %v4596_v11, %v4595_v21  ;;  %v6787_v21 = vld [vmem:[%s10455_s16 + $0x4] sm:$0x1]  ;;  %v6793_v19 = vld [vmem:[%s10455_s16 + $0x6] sm:$0x1] }
 0xaca   :  { %v7766_v11 = vld [vmem:[%s10456_s17 + $0x30] sm:$0xff]  }
 0xacb   :  { %v4628_v4 = vrot.slane %v4627_v43, 1  ;;  %v4620_v6 = vadd.f32 %v4619_v9, %v4618_v17  ;;  %v4608_v28 = vadd.f32 %v4607_v24, %v4606_v46  ;;  %v6790_v46 = vld [vmem:[%s10455_s16 + $0x5] sm:$0x1]  ;;  %v7763_v17 = vld [vmem:[%s10456_s17 + $0x78] sm:$0xff]  }
 0xacc   :  { %v7764_v24 = vld [vmem:[%s10456_s17 + $0x38] sm:$0xff]  }
 0xacd   :  { %v4629_v20 = vadd.f32 %v4628_v4, %v4627_v43  ;;  %v4630_v26 = vsel %vm535_vm6, %v4597_v41, %v4620_v6  ;;  %v7765_v43 = vld [vmem:[%s10456_s17 + $0x70] sm:$0xff]   ;;  %v7770_v9 = vld [vmem:[%s10456_s17 + $0xb8] sm:$0xff]   ;;  %v7767_v6 = vld [vmem:[%s10456_s17 + $0x68] sm:$0xff]  }
 0xace   :  { %v7772_v4 = vld [vmem:[%s10456_s17 + $0xf0] sm:$0xff]   ;;  %v7769_v41 = vld [vmem:[%s10456_s17 + $0x28] sm:$0xff]  }
 0xacf   :  { %v4631_v47 = vsel %vm535_vm6, %v4608_v28, %v4629_v20  ;;  %v7774_v28 = vld [vmem:[%s10456_s17 + $0xb0] sm:$0xff]   ;;  %v7776_v20 = vld [vmem:[%s10456_s17 + $0xe8] sm:$0xff]  }
 0xad0   :  { %6770 = vmatprep.mubr.msk.f32.mxu1 %vm4598_vm14, %v4631_v47  ;;  %v7771_v47 = vld [vmem:[%s10456_s17 + $0x60] sm:$0xff]  }
 0xad1   :  { %4728 = vmatmul.mubr.f32.vlgmr.msra.gmra.mxu1 %v4630_v26  ;;  %v7778_v26 = vld [vmem:[%s10456_s17 + $0xa8] sm:$0xff]  }
 0xad2   :  { %4941 = vmatprep.mubr.bf16.mxu1 %v7889_v32 }
 0xb91   :  { %v4729_v61 = vpop.f32.mrf.mxu1 }
 0xb92   :  { %v4734_v1 = vmul.f32 %v4729_v61, %v4729_v61 }
 0xb93   :  { %v4731_v27 = vpop.f32.mrf.mxu1 }
 0xb94   :  { %v4736_v40 = vrot.slane %v4734_v1, 7  ;;  %v7777_v1 = vld [vmem:[%s10456_s17 + $0x18] sm:$0xff]   ;;  %v7779_v27 = vld [vmem:[%s10456_s17 + $0x50] sm:$0xff]  }
 0xb96   :  { %v4738_v36 = vsub.f32 %v4729_v61, %v4736_v40  ;;  %v7786_v40 = vld [vmem:[%s10456_s17 + $0x98] sm:$0xff]  }
 0xb98   :  { %v4739_v15 = vadd.f32 1e-05, %v4738_v36  ;;  %v7788_v36 = vld [vmem:[%s10456_s17 + $0xd0] sm:$0xff]  }
 0xb9a   :  { %7865 = vrsqrt.f32 %v4739_v15  ;;  %v7781_v15 = vld [vmem:[%s10456_s17 + $0x10] sm:$0xff]  }
 0xba7   :  { %v7866_v45 = vpop.eup %7865 }
 0xba8   :  { %v4742_v29 = vrot.slane %v7866_v45, 1  ;;  %v7783_v45 = vld [vmem:[%s10456_s17 + $0x48] sm:$0xff]  }
 0xbaa   :  { %v4744_v31 = vmul.f32 %v4742_v29, %v4733_v18  ;;  %v7785_v18 = vld [vmem:[%s10456_s17 + $0x8] sm:$0xff]   ;;  %v7787_v29 = vld [vmem:[%s10456_s17 + $0x40] sm:$0xff]  }
 0xbac   :  { %v4746_v38 = vmul.f32 %v4744_v31, %v4729_v61  ;;  %v7784_v61 = vld [vmem:[%s10456_s17 + $0xd8] sm:$0xff]  }
 0xbae   :  { %v4747_v42 = vsub.f32 %v4745_v35, %v4746_v38  ;;  %v7790_v35 = vld [vmem:[%s10456_s17 + $0x90] sm:$0xff]   ;;  %v7791_v38 = vld [vmem:[%s10456_s17 + $0xc8] sm:$0xff]  }
 0xbb0   :  { %v4749_v37 = vrot.slane %v4747_v42, 7  ;;  %v7792_v42 = vld [vmem:[%s10456_s17 + $0x178] sm:$0xff]  }
 0xbb2   :  { %v4751_v10 = vsel %vm535_vm6, %v4744_v31, %v4749_v37  ;;  %v7789_v31 = vld [vmem:[%s10456_s17] sm:$0xff]   ;;  %v7793_v37 = vld [vmem:[%s10456_s17 + $0x88] sm:$0xff]  }
 0xbb3   :  { %v4752_v51 = vpack.c.bf16 %v4751_v10, %v4751_v10  ;;  %v7795_v10 = vld [vmem:[%s10456_s17 + $0xc0] sm:$0xff]  }
 0xbb5   :  { %6775 = vmatmul.mubr.msk.bf16.vlgmr.msra.gmra.mxu0 %vm2794_vm13, %v4752_v51  ;;  %v7797_v51 = vld [vmem:[%s10456_s17 + $0x80] sm:$0xff]  }
 0xbb6   :  { %4895 = vmatprep.mubr.bf16.mxu0 %v7889_v32 }
 0xc75   :  { %v4814_v5 = vpop.f32.mrf.mxu0 }
 0xc76   :  { %v4824_v52 = vrot.slane %v4814_v5, %v8306_v53  ;;  %v4836_v62 = vrot.slane %v4814_v5, %v8308_v54  ;;  %v7800_v5 = vld [vmem:[%s10456_s17 + $0x1f8] sm:$0xff]  }
 0xc77   :  { %v4816_v56 = vpop.f32.mrf.mxu0 }
 0xc78   :  { %v4829_v58 = vmul.f32 %v4824_v52, %v9990_v30  ;;  %v4831_v59 = vmul.f32 %v4824_v52, %v9992_v39  ;;  %v4828_v57 = vrot.slane %v4816_v56, %v8306_v53  ;;  %v4840_v63 = vrot.slane %v4816_v56, %v8308_v54  ;;  %v4851_v54 = vld [vmem:[%s10455_s16] sm:$0x1] }
 0xc79   :  { %v4818_v49 = vpop.f32.mrf.mxu0 }
 0xc7a   :  { %v4841_v2 = vadd.f32 %v4836_v62, %v4829_v58  ;;  %v4843_v0 = vadd.f32 %v4836_v62, %v4831_v59  ;;  %v4830_v3 = vmul.f32 %v4828_v57, %v9988_v16  ;;  %v4832_v44 = vmul.f32 %v4828_v57, %v10000_v48  ;;  %v6778_v16 = vld [vmem:[%s10455_s16 + $0x1] sm:$0x1]  ;;  %v6781_v48 = vld [vmem:[%s10455_s16 + $0x2] sm:$0x1] }
 0xc7b   :  { %v4819_v34 = vpop.f32.mrf.mxu0 }
 0xc7c   :  { %v4845_v7 = vmax.f32 %v4841_v2, 0.0  ;;  %v4847_v55 = vmax.f32 %v4843_v0, 0.0  ;;  %v4842_v12 = vadd.f32 %v4840_v63, %v4830_v3  ;;  %v4844_v30 = vadd.f32 %v4840_v63, %v4832_v44 }
 0xc7e   :  { %v4849_v13 = vpack.c.bf16 %v4847_v55, %v4845_v7  ;;  %v4846_v39 = vmax.f32 %v4842_v12, 0.0  ;;  %v4848_v14 = vmax.f32 %v4844_v30, 0.0 }
 0xc80   :  { %v4850_v8 = vpack.c.bf16 %v4848_v14, %v4846_v39  ;;  %v4858_v53 = vsel %vm4856_vm0, %v4849_v13, 0 }
 0xc82   :  { %6776 = vmatprep.subr.msk.bf16.mxu0 %vm4856_vm0, %v4850_v8  ;;  %6779 = vmatprep.subr.msk.bf16.mxu1 %vm4856_vm0, %v4850_v8 }
 0xc83   :  { %4878 = vmatpush1.bf16.msra.mxu0 %v4858_v53  ;;  %4924 = vmatpush1.bf16.msra.mxu1 %v4858_v53 }
 0xc84   :  { %6782 = vmatprep.subr.msk.bf16.mxu0 %vm4856_vm0, %v4850_v8  ;;  %6785 = vmatprep.subr.msk.bf16.mxu1 %vm4856_vm0, %v4850_v8 }
 0xc86   :  { %6777 = vmatmul.mubr.msk.bf16.vlgmr.msra.gmra.mxu0 %vm4852_vm1, %v4851_v54  ;;  %6780 = vmatmul.mubr.msk.bf16.vlgmr.msra.gmra.mxu1 %vm4852_vm1, %v6778_v16 }
 0xc87   :  { %4970 = vmatpush1.bf16.msra.mxu0 %v4858_v53  ;;  %5016 = vmatpush1.bf16.msra.mxu1 %v4858_v53 }
 0xc88   :  { %6788 = vmatprep.subr.msk.bf16.mxu0 %vm4856_vm0, %v4850_v8  ;;  %6791 = vmatprep.subr.msk.bf16.mxu1 %vm4856_vm0, %v4850_v8 }
 0xc89   :  { %4987 = vmatprep.mubr.bf16.mxu0 %v7889_v32  ;;  %5033 = vmatprep.mubr.bf16.mxu1 %v7889_v32 }
 0xc8e   :  { %6783 = vmatmul.mubr.msk.bf16.vlgmr.msra.gmra.mxu0 %vm4852_vm1, %v6781_v48  ;;  %6786 = vmatmul.mubr.msk.bf16.vlgmr.msra.gmra.mxu1 %vm4852_vm1, %v6784_v33 }
 0xc8f   :  { %5062 = vmatpush1.bf16.msra.mxu0 %v4858_v53  ;;  %5108 = vmatpush1.bf16.msra.mxu1 %v4858_v53 }
 0xc90   :  { %6794 = vmatprep.subr.msk.bf16.mxu0 %vm4856_vm0, %v4850_v8  ;;  %5079 = vmatprep.mubr.bf16.mxu0 %v7889_v32 }
 0xc91   :  { %5125 = vmatprep.mubr.bf16.mxu1 %v7889_v32  ;;  %6947 = vmatprep.subr.bf16.mxu1 %v7763_v17 }
 0xc96   :  { %6789 = vmatmul.mubr.msk.bf16.vlgmr.msra.gmra.mxu0 %vm4852_vm1, %v6787_v21  ;;  %6792 = vmatmul.mubr.msk.bf16.vlgmr.msra.gmra.mxu1 %vm4852_vm1, %v6790_v46 }
 0xc97   :  { %5154 = vmatpush1.bf16.msra.mxu0 %v4858_v53  ;;  %5171 = vmatprep.mubr.bf16.mxu0 %v7889_v32  ;;  %v7768_v32 = vld [vmem:[%s10456_s17 + $0xf8] sm:$0xff]  }
 0xc98   :  { %6948 = vmatpush3.bf16.msra.mxu1 %v7764_v24  ;;  %6969 = vmatprep.subr.bf16.mxu0 %v7768_v32 }
 0xc99   :  { %6949 = vmatprep.subr.bf16.mxu1 %v7765_v43 }
 0xc9c   :  { %6950 = vmatpush3.bf16.msra.mxu1 %v7766_v11 }
 0xc9d   :  { %6951 = vmatprep.subr.bf16.mxu1 %v7767_v6 }
 0xc9e   :  { %6795 = vmatmul.mubr.msk.bf16.vlgmr.msra.gmra.mxu0 %vm4852_vm1, %v6793_v19 }
 0xc9f   :  { %6970 = vmatpush3.bf16.msra.mxu0 %v7770_v9  ;;  %v7794_v9 = vld [vmem:[%s10456_s17 + $0x138] sm:$0xff]  }
 0xca0   :  { %6971 = vmatprep.subr.bf16.mxu0 %v7772_v4  ;;  %6952 = vmatpush3.bf16.msra.mxu1 %v7769_v41  ;;  %v7796_v4 = vld [vmem:[%s10456_s17 + $0x170] sm:$0xff]  }
 0xca1   :  { %6953 = vmatprep.subr.bf16.mxu1 %v7771_v47 }
 0xca3   :  { %6972 = vmatpush3.bf16.msra.mxu0 %v7774_v28  ;;  %v7798_v28 = vld [vmem:[%s10456_s17 + $0x130] sm:$0xff]  }
 0xca4   :  { %6973 = vmatprep.subr.bf16.mxu0 %v7776_v20  ;;  %6954 = vmatpush3.bf16.msra.mxu1 %v7773_v22  ;;  %v7799_v20 = vld [vmem:[%s10456_s17 + $0x168] sm:$0xff]  }
 0xca5   :  { %6955 = vmatprep.subr.bf16.mxu1 %v7775_v23  ;;  %v7801_v22 = vld [vmem:[%s10456_s17 + $0x128] sm:$0xff]   ;;  %v7802_v23 = vld [vmem:[%s10456_s17 + $0x1b8] sm:$0xff]  }
 0xca7   :  { %6974 = vmatpush3.bf16.msra.mxu0 %v7778_v26 }
 0xca8   :  { %6975 = vmatprep.subr.bf16.mxu0 %v7780_v60  ;;  %6956 = vmatpush3.bf16.msra.mxu1 %v7777_v1 }
 0xca9   :  { %6957 = vmatprep.subr.bf16.mxu1 %v7779_v27 }
 0xcab   :  { %6976 = vmatpush3.bf16.msra.mxu0 %v7782_v25 }
 0xcac   :  { %6977 = vmatprep.subr.bf16.mxu0 %v7784_v61  ;;  %6958 = vmatpush3.bf16.msra.mxu1 %v7781_v15  ;;  %v7803_v61 = vld [vmem:[%s10456_s17 + $0x160] sm:$0xff]  }
 0xcad   :  { %6959 = vmatprep.subr.bf16.mxu1 %v7783_v45 }
 0xcaf   :  { %6978 = vmatpush3.bf16.msra.mxu0 %v7786_v40  ;;  %v7804_v40 = vld [vmem:[%s10456_s17 + $0x1f0] sm:$0xff]  }
 0xcb0   :  { %6979 = vmatprep.subr.bf16.mxu0 %v7788_v36  ;;  %6960 = vmatpush3.bf16.msra.mxu1 %v7785_v18  ;;  %v7805_v18 = vld [vmem:[%s10456_s17 + $0x120] sm:$0xff]  }
 0xcb1   :  { %6961 = vmatprep.subr.bf16.mxu1 %v7787_v29  ;;  %v7806_v29 = vld [vmem:[%s10456_s17 + $0x1b0] sm:$0xff]  }
 0xcb3   :  { %6980 = vmatpush3.bf16.msra.mxu0 %v7790_v35  ;;  %v7808_v35 = vld [vmem:[%s10456_s17 + $0x1e8] sm:$0xff]  }
 0xcb4   :  { %6962 = vmatpush3.bf16.msra.mxu1 %v7789_v31  ;;  %6981 = vmatprep.subr.bf16.mxu0 %v7791_v38  ;;  %v7807_v31 = vld [vmem:[%s10456_s17 + $0x158] sm:$0xff]  }
 0xcb5   :  { %6991 = vmatprep.subr.bf16.mxu1 %v7792_v42  ;;  %v7809_v38 = vld [vmem:[%s10456_s17 + $0x118] sm:$0xff]   ;;  %v7810_v42 = vld [vmem:[%s10456_s17 + $0x1a8] sm:$0xff]  }
 0xcb7   :  { %6982 = vmatpush3.bf16.msra.mxu0 %v7793_v37  ;;  %v7811_v37 = vld [vmem:[%s10456_s17 + $0x150] sm:$0xff]  }
 0xcb8   :  { %6983 = vmatprep.subr.bf16.mxu0 %v7795_v10  ;;  %v7812_v10 = vld [vmem:[%s10456_s17 + $0x1e0] sm:$0xff]  }
 0xcbb   :  { %6984 = vmatpush3.bf16.msra.mxu0 %v7797_v51  ;;  %v7813_v51 = vld [vmem:[%s10456_s17 + $0x110] sm:$0xff]  }
 0xcbc   :  { %7013 = vmatprep.subr.bf16.mxu0 %v7800_v5  ;;  %v7814_v5 = vld [vmem:[%s10456_s17 + $0x1a0] sm:$0xff]  }
 0xd46   :  { %v4897_v52 = vpop.f32.mrf.mxu0  ;;  %v4943_v56 = vpop.f32.mrf.mxu1 }
 0xd47   :  { %5182 = vrot.lane.b32.xlu0 %v4943_v56, %s7895_s15  ;;  %v5234_v11 = vpack.c.bf16 %v4897_v52, %v4897_v52  ;;  %v7815_v52 = vld [vmem:[%s10456_s17 + $0x148] sm:$0xff]   ;;  %v7816_v56 = vld [vmem:[%s10456_s17 + $0x1d8] sm:$0xff]  }
 0xd48   :  { %v4899_v58 = vpop.f32.mrf.mxu0  ;;  %v4945_v59 = vpop.f32.mrf.mxu1 }
 0xd49   :  { %5184 = vrot.lane.b32.xlu1 %v4945_v59, %s7895_s15  ;;  %v7818_v59 = vld [vmem:[%s10456_s17 + $0x198] sm:$0xff]  }
 0xd4a   :  { %v4901_v62 = vpop.f32.mrf.mxu0  ;;  %v4947_v57 = vpop.f32.mrf.mxu1 }
 0xd4b   :  { %v7819_v62 = vld [vmem:[%s10456_s17 + $0x140] sm:$0xff]   ;;  %v7820_v57 = vld [vmem:[%s10456_s17 + $0x1d0] sm:$0xff]  }
 0xd4c   :  { %v4902_v63 = vpop.f32.mrf.mxu0  ;;  %v4948_v49 = vpop.f32.mrf.mxu1 }
 0xd4e   :  { %v4989_v2 = vpop.f32.mrf.mxu0  ;;  %v5035_v0 = vpop.f32.mrf.mxu1 }
 0xd4f   :  { %5192 = vrot.lane.b32.xlu0 %v4989_v2, %s7894_s8  ;;  %v7821_v2 = vld [vmem:[%s10456_s17 + $0x100] sm:$0xff]  }
 0xd50   :  { %v4991_v3 = vpop.f32.mrf.mxu0  ;;  %v5037_v44 = vpop.f32.mrf.mxu1 }
 0xd51   :  { %5194 = vrot.lane.b32.xlu1 %v4991_v3, %s7894_s8 }
 0xd52   :  { %v4993_v34 = vpop.f32.mrf.mxu0  ;;  %v5039_v7 = vpop.f32.mrf.mxu1 }
 0xd53   :  { %5202 = vrot.lane.b32.xlu0 %v5035_v0, %s7896_s22  ;;  %v7822_v0 = vld [vmem:[%s10456_s17 + $0x190] sm:$0xff]   ;;  %v7824_v34 = vld [vmem:[%s10456_s17 + $0x278] sm:$0xff]  }
 0xd54   :  { %v4994_v55 = vpop.f32.mrf.mxu0  ;;  %v5040_v12 = vpop.f32.mrf.mxu1 }
 0xd55   :  { %5204 = vrot.lane.b32.xlu1 %v5037_v44, %s7896_s22  ;;  %v7823_v44 = vld [vmem:[%s10456_s17 + $0x1c8] sm:$0xff]  }
 0xd56   :  { %v5127_v30 = vpop.f32.mrf.mxu1  ;;  %v5081_v13 = vpop.f32.mrf.mxu0 }
 0xd57   :  { %v5241_v36 = vpack.c.bf16 %v5081_v13, %v5081_v13  ;;  %v7826_v13 = vld [vmem:[%s10456_s17 + $0x238] sm:$0xff]  }
 0xd58   :  { %v5129_v39 = vpop.f32.mrf.mxu1  ;;  %v10190_v14 = vpop.f32.mrf.mxu0 }
 0xd59   :  { %v7209_v8 = vpack.i.bf16 %v5129_v39, %v5127_v30  ;;  %v7825_v30 = vld [vmem:[%s10456_s17 + $0x188] sm:$0xff]  }
 0xd5a   :  { %v5085_v53 = vpop.f32.mrf.mxu0  ;;  %v5131_v54 = vpop.f32.mrf.mxu1 }
 0xd5b   :  { %7210 = vrot.lane.b32.xlu0 %v7209_v8, %s7895_s15  ;;  %v7827_v8 = vld [vmem:[%s10456_s17 + $0x1c0] sm:$0xff]   ;;  %v7828_v53 = vld [vmem:[%s10456_s17 + $0x270] sm:$0xff]  }
 0xd5c   :  { %v5086_v16 = vpop.f32.mrf.mxu0  ;;  %v5132_v48 = vpop.f32.mrf.mxu1 }
 0xd5e   :  { %v5173_v33 = vpop.f32.mrf.mxu0 }
 0xd60   :  { %v5175_v21 = vpop.f32.mrf.mxu0 }
 0xd61   :  { %v7214_v46 = vpack.i.bf16 %v5175_v21, %v5173_v33  ;;  %v7829_v33 = vld [vmem:[%s10456_s17 + $0x180] sm:$0xff]   ;;  %v7830_v21 = vld [vmem:[%s10456_s17 + $0x230] sm:$0xff]  }
 0xd62   :  { %v5177_v19 = vpop.f32.mrf.mxu0 }
 0xd63   :  { %7215 = vrot.lane.b32.xlu1 %v7214_v46, %s7894_s8  ;;  %v7831_v46 = vld [vmem:[%s10456_s17 + $0x268] sm:$0xff]   ;;  %v7832_v19 = vld [vmem:[%s10456_s17 + $0x2f8] sm:$0xff]  }
 0xd64   :  { %v5178_v17 = vpop.f32.mrf.mxu0 }
 0xdb9   :  { %v5183_v24 = vpop.permute.xlu0 %5182 }
 0xdba   :  { %v5229_v43 = vsel %vm4598_vm14, %v4899_v58, %v5183_v24  ;;  %v7817_v58 = vld [vmem:[%s10456_s17 + $0x108] sm:$0xff]  }
 0xdbb   :  { %v5235_v32 = vpack.c.bf16 %v5229_v43, %v5229_v43  ;;  %v5185_v6 = vpop.permute.xlu1 %5184 }
 0xdbc   :  { %v5186_v47 = vsel %vm4598_vm14, %v5183_v24, %v5185_v6 }
 0xdbd   :  { %6073 = vmatprep.mubr.bf16.mxu1 %v5235_v32  ;;  %v5236_v25 = vpack.c.bf16 %v5186_v47, %v5186_v47  ;;  %v7833_v32 = vld [vmem:[%s10456_s17 + $0x228] sm:$0xff]   ;;  %v7839_v47 = vld [vmem:[%s10456_s17 + $0x258] sm:$0xff]  }
 0xdbe   :  { %6074 = vmatmul.mubr.bf16.vlgmr.msra.gmra.mxu1 %v5234_v11 }
 0xdbf   :  { %6992 = vmatpush3.bf16.msra.mxu1 %v7794_v9  ;;  %v7834_v9 = vld [vmem:[%s10456_s17 + $0x2b8] sm:$0xff]  }
 0xdc0   :  { %6993 = vmatprep.subr.bf16.mxu1 %v7796_v4  ;;  %v7835_v4 = vld [vmem:[%s10456_s17 + $0x260] sm:$0xff]  }
 0xdc1   :  { %v10206_v41 = vpop.permute.xlu0 %5192 }
 0xdc2   :  { %v5230_v26 = vsel %vm2449_vm11, %v5185_v6, %v10206_v41  ;;  %v7836_v6 = vld [vmem:[%s10456_s17 + $0x2f0] sm:$0xff]  }
 0xdc3   :  { %v5237_v60 = vpack.c.bf16 %v5230_v26, %v5230_v26  ;;  %6994 = vmatpush3.bf16.msra.mxu1 %v7798_v28  ;;  %v5195_v1 = vpop.permute.xlu1 %5194  ;;  %v7840_v26 = vld [vmem:[%s10456_s17 + $0x2e8] sm:$0xff]  }
 0xdc4   :  { %6995 = vmatprep.subr.bf16.mxu1 %v7799_v20  ;;  %v5196_v7 = vsel %vm2449_vm11, %v10206_v41, %v5195_v1  ;;  %v7837_v20 = vld [vmem:[%s10456_s17 + $0x220] sm:$0xff]   ;;  %v7838_v41 = vld [vmem:[%s10456_s17 + $0x2b0] sm:$0xff]  }
 0xdc5   :  { %6113 = vmatprep.mubr.bf16.mxu0 %v5237_v60  ;;  %v10220_v27 = vpop.permute.xlu0 %5202  ;;  %v5238_v39 = vpack.c.bf16 %v5196_v7, %v5196_v7  ;;  %v7841_v60 = vld [vmem:[%s10456_s17 + $0x218] sm:$0xff]  }
 0xdc6   :  { %6114 = vmatmul.mubr.bf16.vlgmr.msra.gmra.mxu0 %v5236_v25  ;;  %v5231_v15 = vsel %vm2794_vm13, %v5195_v1, %v10220_v27  ;;  %v7844_v25 = vld [vmem:[%s10456_s17 + $0x2e0] sm:$0xff]  }
 0xdc7   :  { %6996 = vmatpush3.bf16.msra.mxu1 %v7801_v22  ;;  %7014 = vmatpush3.bf16.msra.mxu0 %v7802_v23  ;;  %v5239_v45 = vpack.c.bf16 %v5231_v15, %v5231_v15  ;;  %v5205_v55 = vpop.permute.xlu1 %5204  ;;  %v7842_v22 = vld [vmem:[%s10456_s17 + $0x2a8] sm:$0xff]   ;;  %v7843_v23 = vld [vmem:[%s10456_s17 + $0x250] sm:$0xff]   ;;  %v7846_v1 = vld [vmem:[%s10456_s17 + $0x2a0] sm:$0xff]  }
 0xdc8   :  { %6193 = vmatprep.mubr.bf16.mxu0 %v5241_v36  ;;  %6997 = vmatprep.subr.bf16.mxu1 %v7803_v61  ;;  %v5206_v24 = vsel %vm2794_vm13, %v10220_v27, %v5205_v55  ;;  %v7845_v61 = vld [vmem:[%s10456_s17 + $0x210] sm:$0xff]   ;;  %v7847_v27 = vld [vmem:[%s10456_s17 + $0x248] sm:$0xff]   ;;  %v7850_v15 = vld [vmem:[%s10456_s17 + $0x298] sm:$0xff]  }
 0xdc9   :  { %7015 = vmatprep.subr.bf16.mxu0 %v7804_v40  ;;  %6153 = vmatprep.mubr.bf16.mxu1 %v5239_v45  ;;  %v5240_v11 = vpack.c.bf16 %v5206_v24, %v5206_v24  ;;  %v7848_v40 = vld [vmem:[%s10456_s17 + $0x2d8] sm:$0xff]   ;;  %v7849_v36 = vld [vmem:[%s10456_s17 + $0x208] sm:$0xff]   ;;  %v7851_v45 = vld [vmem:[%s10456_s17 + $0x240] sm:$0xff]  }
 0xdcb   :  { %6998 = vmatpush3.bf16.msra.mxu1 %v7805_v18  ;;  %7016 = vmatpush3.bf16.msra.mxu0 %v7806_v29  ;;  %v7852_v18 = vld [vmem:[%s10456_s17 + $0x2d0] sm:$0xff]   ;;  %v7853_v29 = vld [vmem:[%s10456_s17 + $0x200] sm:$0xff]  }
 0xdcc   :  { %6999 = vmatprep.subr.bf16.mxu1 %v7807_v31  ;;  %7017 = vmatprep.subr.bf16.mxu0 %v7808_v35  ;;  %v7854_v31 = vld [vmem:[%s10456_s17 + $0x290] sm:$0xff]   ;;  %v7855_v35 = vld [vmem:[%s10456_s17 + $0x2c8] sm:$0xff]  }
 0xdcd   :  { %v10275_v63 = vpop.permute.xlu0 %7210 }
 0xdce   :  { %v7213_v49 = vunpack.i.h.bf16 %v10275_v63  ;;  %v7212_v3 = vunpack.i.l.bf16 %v10275_v63 }
 0xdcf   :  { %7000 = vmatpush3.bf16.msra.mxu1 %v7809_v38  ;;  %7018 = vmatpush3.bf16.msra.mxu0 %v7810_v42  ;;  %v7856_v42 = vld [vmem:[%s10456_s17 + $0x288] sm:$0xff]  }
 0xdd0   :  { %7001 = vmatprep.subr.bf16.mxu1 %v7811_v37  ;;  %7019 = vmatprep.subr.bf16.mxu0 %v7812_v10  ;;  %v5215_v12 = vsel %vm4598_vm14, %v7212_v3, %v7213_v49  ;;  %v5232_v38 = vsel %vm4598_vm14, %v10190_v14, %v7212_v3  ;;  %v7857_v37 = vld [vmem:[%s10456_s17 + $0x308] sm:$0xff]   ;;  %v7859_v14 = vld [vmem:[%s10456_s17 + $0x280] sm:$0xff]  }
 0xdd1   :  { %v5243_v54 = vpack.c.bf16 %v5215_v12, %v5215_v12  ;;  %v5242_v10 = vpack.c.bf16 %v5232_v38, %v5232_v38 }
 0xdd3   :  { %7002 = vmatpush3.bf16.msra.mxu1 %v7813_v51  ;;  %7020 = vmatpush3.bf16.msra.mxu0 %v7814_v5  ;;  %v7858_v51 = vld [vmem:[%s10456_s17 + $0x2c0] sm:$0xff]  }
 0xdd4   :  { %7003 = vmatprep.subr.bf16.mxu1 %v7815_v52  ;;  %7021 = vmatprep.subr.bf16.mxu0 %v7816_v56  ;;  %v7860_v5 = vld [vmem:[%s10456_s17 + $0x300] sm:$0xff]  }
 0xdd5   :  { %v10310_v16 = vpop.permute.xlu1 %7215 }
 0xdd6   :  { %v10313_v48 = vunpack.i.h.bf16 %v10310_v16  ;;  %v7217_v17 = vunpack.i.l.bf16 %v10310_v16 }
 0xdd7   :  { %7004 = vmatpush3.bf16.msra.mxu1 %v7817_v58  ;;  %7022 = vmatpush3.bf16.msra.mxu0 %v7818_v59 }
 0xdd8   :  { %7005 = vmatprep.subr.bf16.mxu1 %v7819_v62  ;;  %7023 = vmatprep.subr.bf16.mxu0 %v7820_v57  ;;  %v5225_v43 = vsel %vm2449_vm11, %v7217_v17, %v10313_v48  ;;  %v5233_v52 = vsel %vm2449_vm11, %v7213_v49, %v7217_v17  ;;  %v5246_v56 = vpack.c.bf16 %v10313_v48, %v10313_v48 }
 0xdd9   :  { %v5245_v28 = vpack.c.bf16 %v5225_v43, %v5225_v43  ;;  %v5244_v58 = vpack.c.bf16 %v5233_v52, %v5233_v52 }
 0xddb   :  { %7006 = vmatpush3.bf16.msra.mxu1 %v7821_v2  ;;  %7024 = vmatpush3.bf16.msra.mxu0 %v7822_v0 }
 0xddc   :  { %7025 = vmatprep.subr.bf16.mxu0 %v7823_v44  ;;  %7035 = vmatprep.subr.bf16.mxu1 %v7824_v34 }
 0xdde   :  { %6154 = vmatmul.mubr.bf16.vlgmr.msra.gmra.mxu1 %v5238_v39 }
 0xddf   :  { %7026 = vmatpush3.bf16.msra.mxu0 %v7825_v30  ;;  %7036 = vmatpush3.bf16.msra.mxu1 %v7826_v13 }
 0xde0   :  { %7027 = vmatprep.subr.bf16.mxu0 %v7827_v8  ;;  %7037 = vmatprep.subr.bf16.mxu1 %v7828_v53  ;;  %v6796_v8 = vld [vmem:[%s10457_s18] ss:$0 sm:$0xff]  ;;  %s7898_s18 = smov [#allocation2]  }
 0xde1   :  { %6233 = vmatprep.mubr.bf16.mxu1 %v5243_v54  ;;  %s6329_s0 = sshll.u32 %s7898_s18, 4  ;;  %s6330_s0 = int_to_ptr.vmem [resolvable:$true] %s6329_s0 }
 0xde2   :  { %s7867_s30 = scalar_lea.vmem %s6330_s0, 32  ;;  %p7872_p1 = scmp.lt.s32.totalorder %s6330_s0, %s6330_s0 }
 0xde3   :  { %7028 = vmatpush3.bf16.msra.mxu0 %v7829_v33  ;;  %7038 = vmatpush3.bf16.msra.mxu1 %v7830_v21  ;;  %p7868_p0 = scmp.ne.s32.totalorder %s6330_s0, %s7867_s30  ;;  %p7873_p2 = scmp.lt.s32.totalorder %s7867_s30, %s7867_s30 }
 0xde4   :  { %7039 = vmatprep.subr.bf16.mxu1 %v7831_v46  ;;  %7057 = vmatprep.subr.bf16.mxu0 %v7832_v19 }
 0xde5   :  { %p7874_p3 = por %p7873_p2, %p7872_p1 }
 0xde6   :  { %6194 = vmatmul.mubr.bf16.vlgmr.msra.gmra.mxu0 %v5240_v11 }
 0xde7   :  { %7040 = vmatpush3.bf16.msra.mxu1 %v7833_v32  ;;  %7058 = vmatpush3.bf16.msra.mxu0 %v7834_v9  ;;  %p7875_p4 = pnand %p7874_p3, %p7868_p0 }
 0xde8   :  { %7041 = vmatprep.subr.bf16.mxu1 %v7835_v4  ;;  %7059 = vmatprep.subr.bf16.mxu0 %v7836_v6 }
 0xde9   :  { %6273 = vmatprep.mubr.bf16.mxu0 %v5245_v28 }
 0xdeb   :  { %7042 = vmatpush3.bf16.msra.mxu1 %v7837_v20  ;;  %7060 = vmatpush3.bf16.msra.mxu0 %v7838_v41 }
 0xdec   :  { %7043 = vmatprep.subr.bf16.mxu1 %v7839_v47  ;;  %7061 = vmatprep.subr.bf16.mxu0 %v7840_v26 }
 0xdef   :  { %7044 = vmatpush3.bf16.msra.mxu1 %v7841_v60  ;;  %7062 = vmatpush3.bf16.msra.mxu0 %v7842_v22 }
 0xdf0   :  { %7045 = vmatprep.subr.bf16.mxu1 %v7843_v23  ;;  %7063 = vmatprep.subr.bf16.mxu0 %v7844_v25 }
 0xdf3   :  { %7046 = vmatpush3.bf16.msra.mxu1 %v7845_v61  ;;  %7064 = vmatpush3.bf16.msra.mxu0 %v7846_v1 }
 0xdf4   :  { %7047 = vmatprep.subr.bf16.mxu1 %v7847_v27  ;;  %7065 = vmatprep.subr.bf16.mxu0 %v7848_v40 }
 0xdf7   :  { %7048 = vmatpush3.bf16.msra.mxu1 %v7849_v36  ;;  %7066 = vmatpush3.bf16.msra.mxu0 %v7850_v15 }
 0xdf8   :  { %7049 = vmatprep.subr.bf16.mxu1 %v7851_v45  ;;  %7067 = vmatprep.subr.bf16.mxu0 %v7852_v18 }
 0xdfb   :  { %7050 = vmatpush3.bf16.msra.mxu1 %v7853_v29  ;;  %7068 = vmatpush3.bf16.msra.mxu0 %v7854_v31 }
 0xdfc   :  { %7069 = vmatprep.subr.bf16.mxu0 %v7855_v35  ;;  %7114 = vmatprep.subr.bf16.mxu1 %v7891_v50 }
 0xdfe   :  { %6234 = vmatmul.mubr.bf16.vlgmr.msra.gmra.mxu1 %v5242_v10 }
 0xdff   :  { %7070 = vmatpush3.bf16.msra.mxu0 %v7856_v42  ;;  %7115 = vmatpush3.bf16.msra.mxu1 %v7857_v37 }
 0xe00   :  { %7071 = vmatprep.subr.bf16.mxu0 %v7858_v51  ;;  %7116 = vmatprep.subr.bf16.mxu1 %v7891_v50 }
 0xe01   :  { %7118 = vmatprep.mubr.msk.bf16.mxu1 %vm7897_vm2, %v7891_v50 }
 0xe03   :  { %7072 = vmatpush3.bf16.msra.mxu0 %v7859_v14  ;;  %7117 = vmatpush3.bf16.msra.mxu1 %v7860_v5 }
 0xe06   :  { %6274 = vmatmul.mubr.bf16.vlgmr.msra.gmra.mxu0 %v5244_v58  ;;  %7119 = vmatmul.mubr.msk.bf16.vlgmr.msra.gmra.mxu1 %vm2794_vm13, %v5246_v56 }
 0xe7e   :  { %v6963_v59 = vpop.f32.mrf.mxu1 }
 0xe80   :  { %v6964_v62 = vpop.f32.mrf.mxu1 }
 0xe81   :  { %v6965_v39 = vadd.f32 %v6964_v62, %v6963_v59 }
 0xe82   :  { %v6966_v57 = vpop.f32.mrf.mxu1 }
 0xe83   :  { %v6076_v48 = vadd.f32 %v6965_v39, %v6796_v8 }
 0xe84   :  { %v6967_v2 = vpop.f32.mrf.mxu1 }
 0xe86   :  { %v6985_v0 = vpop.f32.mrf.mxu0 }
 0xe88   :  { %v6986_v63 = vpop.f32.mrf.mxu0 }
 0xe89   :  { %v6987_v54 = vadd.f32 %v6986_v63, %v6985_v0 }
 0xe8a   :  { %v6988_v3 = vpop.f32.mrf.mxu0 }
 0xe8b   :  { %v6116_v46 = vadd.f32 %v6987_v54, %v6076_v48 }
 0xe8c   :  { %v6989_v49 = vpop.f32.mrf.mxu0 }
 0xe9e   :  { %v7007_v44 = vpop.f32.mrf.mxu1 }
 0xea0   :  { %v7008_v34 = vpop.f32.mrf.mxu1 }
 0xea1   :  { %v7009_v33 = vadd.f32 %v7008_v34, %v7007_v44 }
 0xea2   :  { %v7010_v50 = vpop.f32.mrf.mxu1 }
 0xea3   :  { %v6156_v24 = vadd.f32 %v7009_v33, %v6116_v46 }
 0xea4   :  { %v7011_v7 = vpop.f32.mrf.mxu1 }
 0xea6   :  { %v7029_v55 = vpop.f32.mrf.mxu0 }
 0xea8   :  { %v7030_v12 = vpop.f32.mrf.mxu0 }
 0xea9   :  { %v7031_v19 = vadd.f32 %v7030_v12, %v7029_v55 }
 0xeaa   :  { %v7032_v30 = vpop.f32.mrf.mxu0 }
 0xeab   :  { %v6196_v11 = vadd.f32 %v7031_v19, %v6156_v24 }
 0xeac   :  { %v7033_v13 = vpop.f32.mrf.mxu0 }
 0xebe   :  { %v7051_v53 = vpop.f32.mrf.mxu1 }
 0xec0   :  { %v7052_v16 = vpop.f32.mrf.mxu1 }
 0xec1   :  { %v7053_v43 = vadd.f32 %v7052_v16, %v7051_v53 }
 0xec2   :  { %v7054_v21 = vpop.f32.mrf.mxu1 }
 0xec3   :  { %v6236_v28 = vadd.f32 %v7053_v43, %v6196_v11 }
 0xec4   :  { %v7055_v17 = vpop.f32.mrf.mxu1 }
 0xec6   :  { %v7073_v32 = vpop.f32.mrf.mxu0  ;;  %v6315_v9 = vpop.f32.mrf.mxu1 }
 0xec8   :  { %v7074_v4 = vpop.f32.mrf.mxu0  ;;  %v7120_v6 = vpop.f32.mrf.mxu1 }
 0xec9   :  { %v7075_v20 = vadd.f32 %v7074_v4, %v7073_v32 }
 0xeca   :  { %v7076_v41 = vpop.f32.mrf.mxu0  ;;  %v6318_v47 = vpop.f32.mrf.mxu1 }
 0xecb   :  { %v6276_v26 = vadd.f32 %v7075_v20, %v6236_v28 }
 0xecc   :  { %v7077_v60 = vpop.f32.mrf.mxu0  ;;  %v7121_v22 = vpop.f32.mrf.mxu1 }
 0xecd   :  { %v6316_v23 = vadd.f32 %v6315_v9, %v6276_v26 }
 0xecf   :  { %6322 = vst.msk [vmem:[#allocation2] sm:$0x3] %vm6321_vm3, %v6316_v23 }
 0xed0   :  { %7878 = shalt.err (!%p7875_p4)
}
 0xed1   :  { %6332 = dma.vmem_to_hbm [thread:$0]  %s6330_s0, 32, %s10458_s19, [#allocation3]  }
 0xed2   :  { %7887 = dma.done.wait [#allocation3], 32  }
 0xed3   :  { %7888 = vsyncadd [#allocation3], 4294967264 }
 0xed4   :  { %6336 = vsyncpa [#allocation3], 1 }

</bundles_post_ra>
